<compile_context>
chip_gen: v7x
topology: tpu7x:2x2x1
jax: 0.10.0
libtpu: 0.0.40
codegen_flags: <defaults>
</compile_context>

<pallas_src>
import functools

import jax
import jax.numpy as jnp
import numpy as np
from jax.experimental import pallas as pl
from jax.experimental.pallas import tpu as pltpu


def _temporal_pooling_kernel(
    clips, t,
    # inputs
    x_ref, w1_ref, b1_ref, wt_ref, bt_ref, pooled_ref,
    wl_ref, bl_ref, wc_ref, bc_ref,
    # outputs
    f_ref, y_ref,
    # scratch
    acc_ref,
):
  f32 = jnp.float32
  bf16 = jnp.bfloat16
  k = pl.program_id(1)
  nk = pl.num_programs(1)
  rows = clips * t

  # ---- attention_conv: Conv2d(C, 512, [H, W]) over full spatial == matmul,
  #      accumulated over K tiles of chw (f32 accumulator in VMEM scratch).
  @pl.when(k == 0)
  def _():
    acc_ref[...] = jnp.zeros_like(acc_ref)

  x_bf = x_ref[...].astype(bf16)                                  # (rows, tk)
  acc_ref[...] += jnp.dot(x_bf, w1_ref[...], preferred_element_type=f32)

  # ---- everything downstream of the conv runs once per clip-block (last K tile)
  @pl.when(k == nk - 1)
  def _():
    a1 = jnp.maximum(acc_ref[...] + b1_ref[...], 0.0)             # (rows, 512) f32

    # attention_tconv: Conv1d(512, 1, k=3, padding=1) along t inside each clip.
    # v[:, j] = a1 @ wt[:, j];  out[n] = v0[n-1] + v1[n] + v2[n+1] (zero-padded
    # at clip boundaries).  Rolls are over the whole block; the per-position
    # masks zero the terms that would cross a clip boundary.
    v = jnp.dot(a1.astype(bf16), wt_ref[...], preferred_element_type=f32)  # (rows, 128)
    v_prev = pltpu.roll(v, shift=1, axis=0)                       # row n <- v[n-1] (cyclic)
    v_next = pltpu.roll(v, shift=rows - 1, axis=0)                # row n <- v[n+1] (cyclic)

    p0 = v_prev[:, 0:1].reshape(clips, t, 1)
    p1 = v[:, 1:2].reshape(clips, t, 1)
    p2 = v_next[:, 2:3].reshape(clips, t, 1)
    pos = jax.lax.broadcasted_iota(jnp.int32, (clips, t, 1), 1)   # position within clip
    pre = (jnp.where(pos == 0, 0.0, p0)                           # zero-pad at clip start
           + p1
           + jnp.where(pos == t - 1, 0.0, p2)                     # zero-pad at clip end
           + bt_ref[...])
    att = jnp.maximum(pre, 0.0)                                   # (clips, t, 1)

    # softmax over t, per clip (per-clip max -> numerically robust)
    m = jnp.max(att, axis=1, keepdims=True)                       # (clips, 1, 1)
    e = jnp.exp(att - m)
    a_soft = e / jnp.sum(e, axis=1, keepdims=True)                # (clips, t, 1)

    # attention-weighted temporal sum of the (f32) spatially-pooled features
    pooled = pooled_ref[...].reshape(clips, t, -1)                # (clips, t, C) f32
    f = jnp.sum(a_soft * pooled, axis=1)                          # (clips, C) f32
    f_ref[0] = f

    # ClassBlock (eval): Linear(C->512) with BatchNorm1d folded in, then
    # classifier Linear(512->nc).  bf16 operands, f32 accumulation.
    z = jnp.dot(f.astype(bf16), wl_ref[...], preferred_element_type=f32) + bl_ref[...]
    y = jnp.dot(z.astype(bf16), wc_ref[...], preferred_element_type=f32) + bc_ref[...]
    y_ref[0] = y


def _pick_clips(b, t, target_rows):
  """Largest divisor of b with clips*t <= target_rows; keep >=2 grid steps if possible."""
  target = max(1, target_rows // t)
  best = 1
  for d in range(1, b + 1):
    if b % d == 0 and d <= target:
      best = d
  if b // best < 2:                       # keep both v7x TensorCores busy if we can
    for d in range(best, 0, -1):
      if b % d == 0 and b // d >= 2:
        best = d
        break
  return best


def _pick_k_tile(chw, max_tile):
  """Largest lane-aligned divisor of chw not exceeding max_tile."""
  if chw <= max_tile or chw % 128 != 0:
    return chw
  for tk in range(max_tile - (max_tile % 128), 127, -128):
    if chw % tk == 0:
      return tk
  return chw


def temporal_pooling_forward(x, params, b, t, *, target_rows=256, max_k_tile=4096):
  """x: (b*t, C, H, W) float32 NCHW.  Returns (y, f) (eval-mode ClassBlock)."""
  n, c, h, w = x.shape
  assert n == b * t
  assert t % 8 == 0, "t must be a multiple of 8 (sublane-aligned per-clip rows)"
  assert c % 128 == 0, "feat_dim must be a multiple of 128 (lane-dense feature blocks)"
  hw = h * w
  chw = c * hw
  middle_dim = params["w1"].shape[0]
  bottleneck = params["wl"].shape[1]
  num_classes = params["wc"].shape[1]
  nc_pad = ((num_classes + 127) // 128) * 128     # lane-dense classifier output

  clips = _pick_clips(b, t, target_rows)          # clips per grid step (M = clips*t)
  nb = b // clips
  rows = clips * t
  tk = _pick_k_tile(chw, max_k_tile)              # K tile of the conv reduction axis
  nk = chw // tk

  # x stays f32 (cast to bf16 inside the kernel); spatial avg-pool precomputed in f32.
  x_mat = x.reshape(n, chw)
  pooled = x.mean(axis=(2, 3))                                            # (n, C) f32

  w1t = params["w1"].reshape(middle_dim, chw).T.astype(jnp.bfloat16)      # (chw, 512)
  b1 = params["b1"].reshape(1, middle_dim).astype(jnp.float32)

  # Conv1d weight (1, M, 3) -> (M, 3), zero-padded to 128 lanes, bf16
  wt = params["wt"].reshape(middle_dim, 3)
  wt_pad = (jnp.zeros((middle_dim, 128), jnp.float32).at[:, :3].set(wt)
            .astype(jnp.bfloat16))
  bt = params["bt"].reshape(1, 1).astype(jnp.float32)

  # Fold BatchNorm1d (eval running stats) into the first ClassBlock Linear
  eps = 1e-5
  bn_scale = params["bn_gamma"] / jnp.sqrt(params["bn_var"] + eps)
  wl_bn = (params["wl"] * bn_scale[None, :]).astype(jnp.bfloat16)         # (C, 512)
  bl_bn = (params["bl"] * bn_scale
           + params["bn_beta"] - params["bn_mean"] * bn_scale).reshape(1, -1).astype(jnp.float32)

  # classifier Linear padded to a lane-dense width (sliced back after the call)
  wc_pad = (jnp.zeros((bottleneck, nc_pad), jnp.float32)
            .at[:, :num_classes].set(params["wc"]).astype(jnp.bfloat16))
  bc_pad = jnp.zeros((1, nc_pad), jnp.float32).at[:, :num_classes].set(
      params["bc"].reshape(1, -1))

  kernel = functools.partial(_temporal_pooling_kernel, clips, t)

  flops = (2 * n * chw * middle_dim + 2 * n * middle_dim * 128
           + 2 * b * c * bottleneck + 2 * b * bottleneck * nc_pad)
  bytes_accessed = (x_mat.size * 4 + w1t.size * 2 * nb + pooled.size * 4
                    + wt_pad.size * 2 + wl_bn.size * 2 + wc_pad.size * 2
                    + b * (c + nc_pad) * 4)
  cost = pl.CostEstimate(flops=int(flops), transcendentals=int(n),
                         bytes_accessed=int(bytes_accessed))

  f3, y3 = pl.pallas_call(
      kernel,
      out_shape=(
          jax.ShapeDtypeStruct((nb, clips, c), jnp.float32),
          jax.ShapeDtypeStruct((nb, clips, nc_pad), jnp.float32),
      ),
      grid=(nb, nk),
      in_specs=[
          pl.BlockSpec((rows, tk), lambda i, k: (i, k)),           # x rows of clip-block i
          pl.BlockSpec((tk, middle_dim), lambda i, k: (k, 0)),     # K tile of conv weight
          pl.BlockSpec((1, middle_dim), lambda i, k: (0, 0)),      # resident small operands
          pl.BlockSpec((middle_dim, 128), lambda i, k: (0, 0)),
          pl.BlockSpec((1, 1), lambda i, k: (0, 0)),
          pl.BlockSpec((rows, c), lambda i, k: (i, 0)),            # pooled rows (f32)
          pl.BlockSpec((c, bottleneck), lambda i, k: (0, 0)),
          pl.BlockSpec((1, bottleneck), lambda i, k: (0, 0)),
          pl.BlockSpec((bottleneck, nc_pad), lambda i, k: (0, 0)),
          pl.BlockSpec((1, nc_pad), lambda i, k: (0, 0)),
      ],
      out_specs=(
          pl.BlockSpec((1, clips, c), lambda i, k: (i, 0, 0)),
          pl.BlockSpec((1, clips, nc_pad), lambda i, k: (i, 0, 0)),
      ),
      scratch_shapes=[pltpu.VMEM((rows, middle_dim), jnp.float32)],
      compiler_params=pltpu.CompilerParams(
          dimension_semantics=("parallel", "arbitrary")),
      cost_estimate=cost,
  )(x_mat, w1t, b1, wt_pad, bt, pooled, wl_bn, bl_bn, wc_pad, bc_pad)

  f = f3.reshape(b, c)
  y = y3.reshape(b, nc_pad)[:, :num_classes]
  return y, f


def _reference(x, params, b, t):
  """Pure-JAX f32 reference of the same forward pass (eval-mode ClassBlock)."""
  n, c, h, w = x.shape
  middle_dim = params["w1"].shape[0]
  a = jnp.einsum("nchw,mchw->nm", x, params["w1"]) + params["b1"]
  a = jnp.maximum(a, 0.0).reshape(b, t, middle_dim).transpose(0, 2, 1)   # (b, M, t)
  a_pad = jnp.pad(a, ((0, 0), (0, 0), (1, 1)))
  wt = params["wt"].reshape(middle_dim, 3)
  conv = sum(jnp.einsum("bmt,m->bt", a_pad[:, :, k:k + t], wt[:, k]) for k in range(3))
  att = jnp.maximum(conv + params["bt"][0], 0.0)
  a_soft = jax.nn.softmax(att, axis=1)                                   # (b, t)
  pooled = x.mean(axis=(2, 3)).reshape(b, t, c)
  f = jnp.sum(pooled * a_soft[:, :, None], axis=1)                       # (b, C)
  eps = 1e-5
  scale = params["bn_gamma"] / jnp.sqrt(params["bn_var"] + eps)
  shift = params["bn_beta"] - params["bn_mean"] * scale
  z = f @ params["wl"] + params["bl"]
  z = z * scale + shift
  y = z @ params["wc"] + params["bc"]
  return y, f


def init_params(key, feat_dim, num_classes, h, w):
  middle_dim = 512
  bottleneck = 512
  ks = jax.random.split(key, 8)
  fan_in_conv = feat_dim * h * w
  params = {
      # attention_conv: Conv2d(feat_dim, 512, [h, w]) kaiming fan_in
      "w1": jax.random.normal(ks[0], (middle_dim, feat_dim, h, w), jnp.float32)
            * np.sqrt(2.0 / fan_in_conv),
      "b1": jax.random.uniform(ks[1], (middle_dim,), jnp.float32,
                               -1.0 / np.sqrt(fan_in_conv), 1.0 / np.sqrt(fan_in_conv)),
      # attention_tconv: Conv1d(512, 1, 3, padding=1)
      "wt": jax.random.uniform(ks[2], (1, middle_dim, 3), jnp.float32,
                               -1.0 / np.sqrt(middle_dim * 3), 1.0 / np.sqrt(middle_dim * 3)),
      "bt": jax.random.uniform(ks[3], (1,), jnp.float32, -0.02, 0.02),
      # ClassBlock: Linear(feat_dim, 512) kaiming fan_out, bias 0
      "wl": jax.random.normal(ks[4], (feat_dim, bottleneck), jnp.float32)
            * np.sqrt(2.0 / bottleneck),
      "bl": jnp.zeros((bottleneck,), jnp.float32),
      # BatchNorm1d(512): gamma ~ N(1, 0.02), beta 0, fresh running stats (eval mode)
      "bn_gamma": 1.0 + 0.02 * jax.random.normal(ks[5], (bottleneck,), jnp.float32),
      "bn_beta": jnp.zeros((bottleneck,), jnp.float32),
      "bn_mean": jnp.zeros((bottleneck,), jnp.float32),
      "bn_var": jnp.ones((bottleneck,), jnp.float32),
      # classifier Linear(512, num_classes): std=0.001, bias 0
      "wc": 0.001 * jax.random.normal(ks[6], (bottleneck, num_classes), jnp.float32),
      "bc": jnp.zeros((num_classes,), jnp.float32),
  }
  return params


if __name__ == "__main__":
  b, t = 4, 8
  feat_dim, num_classes = 128, 16
  h, w = 4, 4   # module built with w=4, h=4 so Conv2d output spatial is 1x1

  key = jax.random.PRNGKey(0)
  kx, kp = jax.random.split(key)
  x = jax.random.normal(kx, (b * t, feat_dim, h, w), jnp.float32)
  params = init_params(kp, feat_dim, num_classes, h, w)

  y, f = temporal_pooling_forward(x, params, b, t)
  y, f = jax.block_until_ready((y, f))

  y_ref, f_ref = _reference(x, params, b, t)
  # bf16 matmul operands (f32 accumulation) vs. the all-f32 reference
  np.testing.assert_allclose(np.asarray(f), np.asarray(f_ref), rtol=2e-2, atol=5e-3)
  np.testing.assert_allclose(np.asarray(y), np.asarray(y_ref), rtol=2e-2, atol=1e-3)

  print("KERNEL_OK")
</pallas_src>

<mosaic_0001>
module attributes {stable_mosaic.version = 11 : i64} {
  func.func @_temporal_pooling_kernel(%arg0: i32, %arg1: i32, %arg2: memref<16x2048xf32, #tpu.memory_space<vmem>>, %arg3: memref<2048x512xbf16, #tpu.memory_space<vmem>>, %arg4: memref<1x512xf32, #tpu.memory_space<vmem>>, %arg5: memref<512x128xbf16, #tpu.memory_space<vmem>>, %arg6: memref<1x1xf32, #tpu.memory_space<vmem>>, %arg7: memref<16x128xf32, #tpu.memory_space<vmem>>, %arg8: memref<128x512xbf16, #tpu.memory_space<vmem>>, %arg9: memref<1x512xf32, #tpu.memory_space<vmem>>, %arg10: memref<512x128xbf16, #tpu.memory_space<vmem>>, %arg11: memref<1x128xf32, #tpu.memory_space<vmem>>, %arg12: memref<1x2x128xf32, #tpu.memory_space<vmem>>, %arg13: memref<1x2x128xf32, #tpu.memory_space<vmem>>, %arg14: memref<16x512xf32, #tpu.memory_space<vmem>>) attributes {dimension_semantics = [#tpu.dimension_semantics<parallel>, #tpu.dimension_semantics<arbitrary>], iteration_bounds = array<i64: 2, 1>, scalar_prefetch = 0 : i64, scratch_operands = 1 : i64, tpu.core_type = #tpu.core_type<tc>, window_params = [{transform_indices = @transform_0, window_bounds = array<i64: 16, 2048>}, {transform_indices = @transform_1, window_bounds = array<i64: 2048, 512>}, {pipeline_mode = #tpu.pipeline_mode<synchronous>, transform_indices = @transform_2, window_bounds = array<i64: 1, 512>}, {pipeline_mode = #tpu.pipeline_mode<synchronous>, transform_indices = @transform_3, window_bounds = array<i64: 512, 128>}, {pipeline_mode = #tpu.pipeline_mode<synchronous>, transform_indices = @transform_4, window_bounds = array<i64: 1, 1>}, {transform_indices = @transform_5, window_bounds = array<i64: 16, 128>}, {pipeline_mode = #tpu.pipeline_mode<synchronous>, transform_indices = @transform_6, window_bounds = array<i64: 128, 512>}, {pipeline_mode = #tpu.pipeline_mode<synchronous>, transform_indices = @transform_7, window_bounds = array<i64: 1, 512>}, {pipeline_mode = #tpu.pipeline_mode<synchronous>, transform_indices = @transform_8, window_bounds = array<i64: 512, 128>}, {pipeline_mode = #tpu.pipeline_mode<synchronous>, transform_indices = @transform_9, window_bounds = array<i64: 1, 128>}, {transform_indices = @transform_10, window_bounds = array<i64: 1, 2, 128>}, {transform_indices = @transform_11, window_bounds = array<i64: 1, 2, 128>}]} {
    %c0_i32 = arith.constant 0 : i32
    %0 = arith.cmpi eq, %arg1, %c0_i32 : i32
    %1 = arith.extui %0 : i1 to i32
    %c0_i32_0 = arith.constant 0 : i32
    %2 = arith.cmpi ne, %1, %c0_i32_0 : i32
    scf.if %2 {
      %cst_10 = arith.constant 0.000000e+00 : f32
      %13 = vector.broadcast %cst_10 : f32 to vector<16x512xf32>
      %c0_11 = arith.constant 0 : index
      %c0_12 = arith.constant 0 : index
      %14 = vector.load %arg14[%c0_11, %c0_12] : memref<16x512xf32, #tpu.memory_space<vmem>>, vector<16x512xf32>
      tpu.vector_store %arg14[%c0_11, %c0_12], %13 {strides = array<i32>} : memref<16x512xf32, #tpu.memory_space<vmem>>, vector<16x512xf32>,
    } else {
    }
    %c0 = arith.constant 0 : index
    %c0_1 = arith.constant 0 : index
    %3 = vector.load %arg2[%c0, %c0_1] : memref<16x2048xf32, #tpu.memory_space<vmem>>, vector<16x2048xf32>
    %4 = arith.truncf %3 : vector<16x2048xf32> to vector<16x2048xbf16>
    %c0_2 = arith.constant 0 : index
    %c0_3 = arith.constant 0 : index
    %5 = vector.load %arg14[%c0_2, %c0_3] : memref<16x512xf32, #tpu.memory_space<vmem>>, vector<16x512xf32>
    %c0_4 = arith.constant 0 : index
    %c0_5 = arith.constant 0 : index
    %6 = vector.load %arg3[%c0_4, %c0_5] : memref<2048x512xbf16, #tpu.memory_space<vmem>>, vector<2048x512xbf16>
    %cst = arith.constant dense<0.000000e+00> : vector<16x512xf32>
    %7 = tpu.matmul %4, %6, %cst {dimension_numbers = #tpu.dot_dimension_numbers<[1], [0], [0], [1], [0, 0, 1, 1], [], []>} : vector<16x2048xbf16>, vector<2048x512xbf16>, vector<16x512xf32> -> vector<16x512xf32>
    %8 = arith.addf %5, %7 : vector<16x512xf32>
    %c0_6 = arith.constant 0 : index
    %c0_7 = arith.constant 0 : index
    %9 = vector.load %arg14[%c0_6, %c0_7] : memref<16x512xf32, #tpu.memory_space<vmem>>, vector<16x512xf32>
    tpu.vector_store %arg14[%c0_6, %c0_7], %8 {strides = array<i32>} : memref<16x512xf32, #tpu.memory_space<vmem>>, vector<16x512xf32>,
    %c0_i32_8 = arith.constant 0 : i32
    %10 = arith.cmpi eq, %arg1, %c0_i32_8 : i32
    %11 = arith.extui %10 : i1 to i32
    %c0_i32_9 = arith.constant 0 : i32
    %12 = arith.cmpi ne, %11, %c0_i32_9 : i32
    scf.if %12 {
      %c0_10 = arith.constant 0 : index
      %c0_11 = arith.constant 0 : index
      %13 = vector.load %arg14[%c0_10, %c0_11] : memref<16x512xf32, #tpu.memory_space<vmem>>, vector<16x512xf32>
      %c0_12 = arith.constant 0 : index
      %c0_13 = arith.constant 0 : index
      %14 = vector.load %arg4[%c0_12, %c0_13] : memref<1x512xf32, #tpu.memory_space<vmem>>, vector<1x512xf32>
      %15 = vector.broadcast %14 : vector<1x512xf32> to vector<16x512xf32>
      %16 = arith.addf %13, %15 : vector<16x512xf32>
      %cst_14 = arith.constant 0.000000e+00 : f32
      %17 = vector.broadcast %cst_14 : f32 to vector<16x512xf32>
      %18 = arith.maximumf %16, %17 : vector<16x512xf32>
      %19 = arith.truncf %18 : vector<16x512xf32> to vector<16x512xbf16>
      %c0_15 = arith.constant 0 : index
      %c0_16 = arith.constant 0 : index
      %20 = vector.load %arg5[%c0_15, %c0_16] : memref<512x128xbf16, #tpu.memory_space<vmem>>, vector<512x128xbf16>
      %cst_17 = arith.constant dense<0.000000e+00> : vector<16x128xf32>
      %21 = tpu.matmul %19, %20, %cst_17 {dimension_numbers = #tpu.dot_dimension_numbers<[1], [0], [0], [1], [0, 0, 1, 1], [], []>} : vector<16x512xbf16>, vector<512x128xbf16>, vector<16x128xf32> -> vector<16x128xf32>
      %c1_i32 = arith.constant 1 : i32
      %22 = tpu.dynamic_rotate %21 by %c1_i32 dim 0 : vector<16x128xf32>, i32 -> vector<16x128xf32>
      %c15_i32 = arith.constant 15 : i32
      %23 = tpu.dynamic_rotate %21 by %c15_i32 dim 0 : vector<16x128xf32>, i32 -> vector<16x128xf32>
      %24 = vector.extract_strided_slice %22 {offsets = [0, 0], sizes = [16, 1], strides = [1, 1]} : vector<16x128xf32> to vector<16x1xf32>
      %25 = vector.shape_cast %24 : vector<16x1xf32> to vector<2x8x1xf32>
      %26 = vector.extract_strided_slice %21 {offsets = [0, 1], sizes = [16, 1], strides = [1, 1]} : vector<16x128xf32> to vector<16x1xf32>
      %27 = vector.shape_cast %26 : vector<16x1xf32> to vector<2x8x1xf32>
      %28 = vector.extract_strided_slice %23 {offsets = [0, 2], sizes = [16, 1], strides = [1, 1]} : vector<16x128xf32> to vector<16x1xf32>
      %29 = vector.shape_cast %28 : vector<16x1xf32> to vector<2x8x1xf32>
      %30 = tpu.iota {dimensions = array<i32: 1>} : vector<2x8x1xi32>
      %c0_i32_18 = arith.constant 0 : i32
      %31 = vector.broadcast %c0_i32_18 : i32 to vector<2x8x1xi32>
      %32 = arith.cmpi eq, %30, %31 : vector<2x8x1xi32>
      %cst_19 = arith.constant 0.000000e+00 : f32
      %33 = vector.broadcast %cst_19 : f32 to vector<2x8x1xf32>
      %34 = arith.select %32, %33, %25 : vector<2x8x1xi1>, vector<2x8x1xf32>
      %35 = arith.addf %34, %27 : vector<2x8x1xf32>
      %c7_i32 = arith.constant 7 : i32
      %36 = vector.broadcast %c7_i32 : i32 to vector<2x8x1xi32>
      %37 = arith.cmpi eq, %30, %36 : vector<2x8x1xi32>
      %cst_20 = arith.constant 0.000000e+00 : f32
      %38 = vector.broadcast %cst_20 : f32 to vector<2x8x1xf32>
      %39 = arith.select %37, %38, %29 : vector<2x8x1xi1>, vector<2x8x1xf32>
      %40 = arith.addf %35, %39 : vector<2x8x1xf32>
      %c0_21 = arith.constant 0 : index
      %c0_22 = arith.constant 0 : index
      %41 = vector.load %arg6[%c0_21, %c0_22] : memref<1x1xf32, #tpu.memory_space<vmem>>, vector<1x1xf32>
      %42 = vector.shape_cast %41 : vector<1x1xf32> to vector<1x1x1xf32>
      %43 = vector.broadcast %42 : vector<1x1x1xf32> to vector<2x8x1xf32>
      %44 = arith.addf %40, %43 : vector<2x8x1xf32>
      %cst_23 = arith.constant 0.000000e+00 : f32
      %45 = vector.broadcast %cst_23 : f32 to vector<2x8x1xf32>
      %46 = arith.maximumf %44, %45 : vector<2x8x1xf32>
      %cst_24 = arith.constant dense<0xFF800000> : vector<2x1xf32>
      %47 = vector.multi_reduction <maximumf>, %46, %cst_24 [1] : vector<2x8x1xf32> to vector<2x1xf32>
      %48 = vector.shape_cast %47 : vector<2x1xf32> to vector<2x1x1xf32>
      %49 = vector.broadcast %48 : vector<2x1x1xf32> to vector<2x8x1xf32>
      %50 = arith.subf %46, %49 : vector<2x8x1xf32>
      %51 = math.exp %50 : vector<2x8x1xf32>
      %cst_25 = arith.constant dense<0.000000e+00> : vector<2x1xf32>
      %52 = vector.multi_reduction <add>, %51, %cst_25 [1] : vector<2x8x1xf32> to vector<2x1xf32>
      %53 = vector.shape_cast %52 : vector<2x1xf32> to vector<2x1x1xf32>
      %54 = vector.broadcast %53 : vector<2x1x1xf32> to vector<2x8x1xf32>
      %55 = arith.divf %51, %54 : vector<2x8x1xf32>
      %c0_26 = arith.constant 0 : index
      %c0_27 = arith.constant 0 : index
      %56 = vector.load %arg7[%c0_26, %c0_27] : memref<16x128xf32, #tpu.memory_space<vmem>>, vector<16x128xf32>
      %57 = vector.shape_cast %56 : vector<16x128xf32> to vector<2x8x128xf32>
      %58 = vector.broadcast %55 : vector<2x8x1xf32> to vector<2x8x128xf32>
      %59 = arith.mulf %58, %57 : vector<2x8x128xf32>
      %cst_28 = arith.constant dense<0.000000e+00> : vector<2x128xf32>
      %60 = vector.multi_reduction <add>, %59, %cst_28 [1] : vector<2x8x128xf32> to vector<2x128xf32>
      %c0_29 = arith.constant 0 : index
      %c0_30 = arith.constant 0 : index
      %c0_31 = arith.constant 0 : index
      %61 = vector.load %arg12[%c0_29, %c0_30, %c0_31] : memref<1x2x128xf32, #tpu.memory_space<vmem>>, vector<1x2x128xf32>
      %62 = vector.shape_cast %61 : vector<1x2x128xf32> to vector<2x128xf32>
      %63 = vector.shape_cast %60 : vector<2x128xf32> to vector<1x2x128xf32>
      tpu.vector_store %arg12[%c0_29, %c0_30, %c0_31], %63 {strides = array<i32>} : memref<1x2x128xf32, #tpu.memory_space<vmem>>, vector<1x2x128xf32>,
      %64 = arith.truncf %60 : vector<2x128xf32> to vector<2x128xbf16>
      %c0_32 = arith.constant 0 : index
      %c0_33 = arith.constant 0 : index
      %65 = vector.load %arg8[%c0_32, %c0_33] : memref<128x512xbf16, #tpu.memory_space<vmem>>, vector<128x512xbf16>
      %cst_34 = arith.constant dense<0.000000e+00> : vector<2x512xf32>
      %66 = tpu.matmul %64, %65, %cst_34 {dimension_numbers = #tpu.dot_dimension_numbers<[1], [0], [0], [1], [0, 0, 1, 1], [], []>} : vector<2x128xbf16>, vector<128x512xbf16>, vector<2x512xf32> -> vector<2x512xf32>
      %c0_35 = arith.constant 0 : index
      %c0_36 = arith.constant 0 : index
      %67 = vector.load %arg9[%c0_35, %c0_36] : memref<1x512xf32, #tpu.memory_space<vmem>>, vector<1x512xf32>
      %68 = vector.broadcast %67 : vector<1x512xf32> to vector<2x512xf32>
      %69 = arith.addf %66, %68 : vector<2x512xf32>
      %70 = arith.truncf %69 : vector<2x512xf32> to vector<2x512xbf16>
      %c0_37 = arith.constant 0 : index
      %c0_38 = arith.constant 0 : index
      %71 = vector.load %arg10[%c0_37, %c0_38] : memref<512x128xbf16, #tpu.memory_space<vmem>>, vector<512x128xbf16>
      %cst_39 = arith.constant dense<0.000000e+00> : vector<2x128xf32>
      %72 = tpu.matmul %70, %71, %cst_39 {dimension_numbers = #tpu.dot_dimension_numbers<[1], [0], [0], [1], [0, 0, 1, 1], [], []>} : vector<2x512xbf16>, vector<512x128xbf16>, vector<2x128xf32> -> vector<2x128xf32>
      %c0_40 = arith.constant 0 : index
      %c0_41 = arith.constant 0 : index
      %73 = vector.load %arg11[%c0_40, %c0_41] : memref<1x128xf32, #tpu.memory_space<vmem>>, vector<1x128xf32>
      %74 = vector.broadcast %73 : vector<1x128xf32> to vector<2x128xf32>
      %75 = arith.addf %72, %74 : vector<2x128xf32>
      %c0_42 = arith.constant 0 : index
      %c0_43 = arith.constant 0 : index
      %c0_44 = arith.constant 0 : index
      %76 = vector.load %arg13[%c0_42, %c0_43, %c0_44] : memref<1x2x128xf32, #tpu.memory_space<vmem>>, vector<1x2x128xf32>
      %77 = vector.shape_cast %76 : vector<1x2x128xf32> to vector<2x128xf32>
      %78 = vector.shape_cast %75 : vector<2x128xf32> to vector<1x2x128xf32>
      tpu.vector_store %arg13[%c0_42, %c0_43, %c0_44], %78 {strides = array<i32>} : memref<1x2x128xf32, #tpu.memory_space<vmem>>, vector<1x2x128xf32>,
    } else {
    }
    return
  }
  func.func @transform_0(%arg0: i32, %arg1: i32) -> (i32, i32) {
    %c0_i32 = arith.constant 0 : i32
    return %arg0, %arg1 : i32, i32
  }
  func.func @transform_1(%arg0: i32, %arg1: i32) -> (i32, i32) {
    %c0_i32 = arith.constant 0 : i32
    %c0_i32_0 = arith.constant 0 : i32
    return %arg1, %c0_i32 : i32, i32
  }
  func.func @transform_2(%arg0: i32, %arg1: i32) -> (i32, i32) {
    %c0_i32 = arith.constant 0 : i32
    %c0_i32_0 = arith.constant 0 : i32
    %c0_i32_1 = arith.constant 0 : i32
    return %c0_i32, %c0_i32_0 : i32, i32
  }
  func.func @transform_3(%arg0: i32, %arg1: i32) -> (i32, i32) {
    %c0_i32 = arith.constant 0 : i32
    %c0_i32_0 = arith.constant 0 : i32
    %c0_i32_1 = arith.constant 0 : i32
    return %c0_i32, %c0_i32_0 : i32, i32
  }
  func.func @transform_4(%arg0: i32, %arg1: i32) -> (i32, i32) {
    %c0_i32 = arith.constant 0 : i32
    %c0_i32_0 = arith.constant 0 : i32
    %c0_i32_1 = arith.constant 0 : i32
    return %c0_i32, %c0_i32_0 : i32, i32
  }
  func.func @transform_5(%arg0: i32, %arg1: i32) -> (i32, i32) {
    %c0_i32 = arith.constant 0 : i32
    %c0_i32_0 = arith.constant 0 : i32
    return %arg0, %c0_i32 : i32, i32
  }
  func.func @transform_6(%arg0: i32, %arg1: i32) -> (i32, i32) {
    %c0_i32 = arith.constant 0 : i32
    %c0_i32_0 = arith.constant 0 : i32
    %c0_i32_1 = arith.constant 0 : i32
    return %c0_i32, %c0_i32_0 : i32, i32
  }
  func.func @transform_7(%arg0: i32, %arg1: i32) -> (i32, i32) {
    %c0_i32 = arith.constant 0 : i32
    %c0_i32_0 = arith.constant 0 : i32
    %c0_i32_1 = arith.constant 0 : i32
    return %c0_i32, %c0_i32_0 : i32, i32
  }
  func.func @transform_8(%arg0: i32, %arg1: i32) -> (i32, i32) {
    %c0_i32 = arith.constant 0 : i32
    %c0_i32_0 = arith.constant 0 : i32
    %c0_i32_1 = arith.constant 0 : i32
    return %c0_i32, %c0_i32_0 : i32, i32
  }
  func.func @transform_9(%arg0: i32, %arg1: i32) -> (i32, i32) {
    %c0_i32 = arith.constant 0 : i32
    %c0_i32_0 = arith.constant 0 : i32
    %c0_i32_1 = arith.constant 0 : i32
    return %c0_i32, %c0_i32_0 : i32, i32
  }
  func.func @transform_10(%arg0: i32, %arg1: i32) -> (i32, i32, i32) {
    %c0_i32 = arith.constant 0 : i32
    %c0_i32_0 = arith.constant 0 : i32
    %c0_i32_1 = arith.constant 0 : i32
    return %arg0, %c0_i32, %c0_i32_0 : i32, i32, i32
  }
  func.func @transform_11(%arg0: i32, %arg1: i32) -> (i32, i32, i32) {
    %c0_i32 = arith.constant 0 : i32
    %c0_i32_0 = arith.constant 0 : i32
    %c0_i32_1 = arith.constant 0 : i32
    return %arg0, %c0_i32, %c0_i32_0 : i32, i32, i32
  }
}

</mosaic_0001>

<bundles_post_ra>
// kernel: tpu_custom_call.1
= control target key start
LH: loop header
LB: loop body
LE: loop exit
PB: predicated region body
PF: predicated region fallthrough
CT: control target
= control target key end

     0   :  { %s8655_s0 = inlined_call_operand.hbm [shape: f32[32,2048], index: 0, kind: input, shape index: {}]   ;;  %s8656_s1 = inlined_call_operand.hbm [shape: bf16[2048,512], index: 1, kind: input, shape index: {}]   ;;  %s8657_s2 = inlined_call_operand.hbm [shape: f32[1,512], index: 2, kind: input, shape index: {}]   ;;  %s8658_s3 = inlined_call_operand.hbm [shape: bf16[512,128], index: 3, kind: input, shape index: {}]   ;;  %s8659_s4 = inlined_call_operand.<no memory space> [shape: f32[1,1], index: 4, kind: input, shape index: {}]   ;;  %s8660_s5 = inlined_call_operand.hbm [shape: f32[32,128], index: 5, kind: input, shape index: {}]   ;;  %s8661_s6 = inlined_call_operand.hbm [shape: bf16[128,512], index: 6, kind: input, shape index: {}]   ;;  %s8662_s7 = inlined_call_operand.hbm [shape: f32[1,512], index: 7, kind: input, shape index: {}]   ;;  %s8663_s8 = inlined_call_operand.hbm [shape: bf16[512,128], index: 8, kind: input, shape index: {}]   ;;  %s8664_s9 = inlined_call_operand.hbm [shape: f32[1,128], index: 9, kind: input, shape index: {}]   ;;  %s8665_s10 = inlined_call_operand.hbm [shape: f32[2,2,128], index: 10, kind: output, shape index: {0}]   ;;  %s8666_s11 = inlined_call_operand.hbm [shape: f32[2,2,128], index: 11, kind: output, shape index: {1}]  }
   0x1   :  { %8687 = sst [smem:[#allocation36_spill]] %s8655_s0  ;;  %v17_v0 = vstv %s8659_s4 }
   0x2   :  { %8688 = sst [smem:[#allocation37_spill]] %s8656_s1  ;;  %18 = vst [vmem:[#allocation3] sm:$0x1] %v17_v0 }
   0x3   :  { %8689 = sst [smem:[#allocation38_spill]] %s8657_s2 }
   0x4   :  { %8690 = sst [smem:[#allocation39_spill]] %s8658_s3 }
   0x5   :  { %8691 = sst [smem:[#allocation40_spill]] %s8663_s8 }
   0x6   :  { %8692 = sst [smem:[#allocation41_spill]] %s8665_s10 }
   0x7   :  { %8693 = sst [smem:[#allocation42_spill]] %s8666_s11 }
   0x8   :  { %19 = vsyncpa [#allocation5], 0 }
   0x9   :  { %21 = vsyncpa [#allocation5 + $0x1], 0 }
   0xa   :  { %22 = vsyncpa [#allocation8], 0 }
   0xb   :  { %23 = vsyncpa [#allocation11], 0 }
   0xc   :  { %24 = vsyncpa [#allocation16], 0 }
   0xd   :  { %25 = vsyncpa [#allocation6], 0 }
   0xe   :  { %27 = vsyncpa [#allocation6 + $0x1], 0 }
   0xf   :  { %28 = vsyncpa [#allocation20], 0 }
  0x10   :  { %30 = vsyncpa [#allocation20 + $0x1], 0  ;;  %s8138_s19 = smov 0   ;;  %s8140_s20 = smov 0  }
  0x11   :  { %s8142_s21 = smov 0   ;;  %s8144_s22 = smov 0  }
  0x12   :  { %s8146_s23 = smov 0   ;;  %s8148_s4 = smov 0  }
  0x13 LB: > { %8694 = sst [smem:[#allocation30_spill]] %s8040_s21  ;;  %s8169_s24 = sadd.s32 4294967295, %s8052_s4   ;;  %s8052_s4 = sphi %s8148_s4, %s36_s4   ;;  %s8048_s23 = sphi %s8146_s23, %s8747_s23   ;;  %s8044_s22 = sphi %s8144_s22, %s8746_s22   ;;  %s8040_s21 = sphi %s8142_s21, %s8742_s21   ;;  %s8036_s20 = sphi %s8140_s20, %s8745_s20   ;;  %s8032_s19 = sphi %s8138_s19, %s8744_s19  }
  0x14   : > { %8695 = sst [smem:[#allocation31_spill]] %s8044_s22  ;;  %p5824_p0 = scmp.ge.s32.totalorder %s8052_s4, 1 }
  0x15   : > { %8696 = sst [smem:[#allocation32_spill]] %s8052_s4  ;;  %p8671_p1 = scmp.eq.s32.totalorder %s8169_s24, 0 }
  0x16   : > { %p332_p2 = scmp.lt.s32.totalorder %s8052_s4, 3  ;;  %s8054_s26 = smov [#allocation7]  }
  0x17   : > { %s348_s27 = sshll.u32 %s8054_s26, 4  ;;  %s8055_s29 = smov [#allocation9]   ;;  %s8178_s27 = int_to_ptr.vmem [resolvable:$true] %s348_s27 }
  0x18   : > { %p8174_p3 = pnand %p5824_p0, %p332_p2  ;;  %s362_s30 = sshll.u32 %s8055_s29, 4  ;;  %s8189_s30 = int_to_ptr.vmem [resolvable:$true] %s362_s30 }
  0x19   : > { %s8056_s12 = smov [#allocation10]   ;;  %s8700_s1 = sld [smem:[#allocation37_spill]] }
  0x1a   : > { %s8697_s25 = scalar_select %p8174_p3, 1, 0 }
  0x1b   : > { %p6651_p4 = pneg %p8174_p3  ;;  %s8191_s13 = sshll.u32 %s8056_s12, 4  ;;  %s373_s13 = int_to_ptr.vmem [resolvable:$true] %s8191_s13 }
  0x1c   : > { %8698 = sst [smem:[#allocation33_spill]] %s8697_s25 }
  0x1d   : > { %p8185_p6 = pnand %p6651_p4, %p8671_p1 }
  0x1f   : > { %s8699_s28 = scalar_select %p8185_p6, 1, 0 }
  0x20   : > { %s7658_s16 = scalar_lea.hbm %s8700_s1, 65536  ;;  %p8201_p8 = pneg %p8185_p6 }
  0x21   : > { %p7659_p7 = scmp.ne.s32.totalorder %s8700_s1, %s7658_s16  ;;  %p7665_p11 = scmp.lt.u32.totalorder %s7658_s16, %s8700_s1 }
  0x23   : > { %p7661_p9 = pnand %p8201_p8, %p7659_p7 }
  0x25   : > { %p7662_p10 = pneg %p7661_p9 }
  0x27   : > { %p7667_p12 = pnand %p7665_p11, %p7662_p10 }
  0x29   : > { %7670 = shalt.err (!%p7667_p12)
}
  0x2a   : > { %s7671_s14 = scalar_lea.vmem %s8178_s27, 65536  ;;  %p7679_p4 = scmp.lt.s32.totalorder %s8178_s27, %s8178_s27 }
  0x2b   : > { %p7672_p13 = scmp.ne.s32.totalorder %s8178_s27, %s7671_s14  ;;  %p7680_p5 = scmp.lt.s32.totalorder %s7671_s14, %s7671_s14 }
  0x2d   : > { %p7674_p0 = pnand %p7672_p13, %p8201_p8  ;;  %p7681_p7 = por %p7680_p5, %p7679_p4 }
  0x2f   : > { %p7675_p2 = pneg %p7674_p0 }
  0x31   : > { %p7682_p9 = pnand %p7681_p7, %p7675_p2 }
  0x33   : > { %7685 = shalt.err (!%p7682_p9)
}
  0x34   : > { %s8673_s15 = smov 256   ;;  %s8674_s16 = smov 16  }
  0x35   : > { %6654 = dma.hbm_to_vmem [thread:$0]  (!%p8185_p6), %s8700_s1, 65536, %s8178_s27, [#allocation8], %s8673_s15, %s8673_s15, %s8674_s16  }
  0x36   : > { %s8702_s2 = sld [smem:[#allocation38_spill]] }
  0x3c   : > { %s7686_s14 = scalar_lea.hbm %s8702_s2, 64 }
  0x3d   : > { %p7687_p5 = scmp.ne.s32.totalorder %s8702_s2, %s7686_s14  ;;  %p7693_p12 = scmp.lt.u32.totalorder %s7686_s14, %s8702_s2 }
  0x3f   : > { %p7689_p10 = pnand %p7687_p5, %p8201_p8 }
  0x41   : > { %p7690_p11 = pneg %p7689_p10 }
  0x43   : > { %p7695_p13 = pnand %p7693_p12, %p7690_p11 }
  0x45   : > { %7698 = shalt.err (!%p7695_p13)
}
  0x46   : > { %s7699_s27 = scalar_lea.vmem %s8189_s30, 64  ;;  %p7707_p7 = scmp.lt.s32.totalorder %s8189_s30, %s8189_s30 }
  0x47   : > { %p7700_p0 = scmp.ne.s32.totalorder %s8189_s30, %s7699_s27  ;;  %p7708_p9 = scmp.lt.s32.totalorder %s7699_s27, %s7699_s27 }
  0x49   : > { %p7702_p2 = pnand %p7700_p0, %p8201_p8  ;;  %p7709_p5 = por %p7708_p9, %p7707_p7 }
  0x4b   : > { %p7703_p4 = pneg %p7702_p2 }
  0x4d   : > { %p7710_p10 = pnand %p7709_p5, %p7703_p4 }
  0x4f   : > { %7713 = shalt.err (!%p7710_p10)
}
  0x50   : > { %6657 = dma.hbm_to_vmem [thread:$0]  (!%p8185_p6), %s8702_s2, 64, %s8189_s30, [#allocation8]  }
  0x51   : > { %s8703_s3 = sld [smem:[#allocation39_spill]] }
  0x57   : > { %s7714_s17 = scalar_lea.hbm %s8703_s3, 4096 }
  0x58   : > { %p7715_p11 = scmp.ne.s32.totalorder %s8703_s3, %s7714_s17  ;;  %p7721_p0 = scmp.lt.u32.totalorder %s7714_s17, %s8703_s3 }
  0x5a   : > { %p7717_p12 = pnand %p7715_p11, %p8201_p8 }
  0x5c   : > { %p7718_p13 = pneg %p7717_p12 }
  0x5e   : > { %p7723_p2 = pnand %p7721_p0, %p7718_p13 }
  0x60   : > { %7726 = shalt.err (!%p7723_p2)
}
  0x61   : > { %s7727_s27 = scalar_lea.vmem %s373_s13, 4096  ;;  %p7735_p5 = scmp.lt.s32.totalorder %s373_s13, %s373_s13 }
  0x62   : > { %p7728_p4 = scmp.ne.s32.totalorder %s373_s13, %s7727_s27  ;;  %p7736_p10 = scmp.lt.s32.totalorder %s7727_s27, %s7727_s27 }
  0x64   : > { %p7730_p7 = pnand %p7728_p4, %p8201_p8  ;;  %p7737_p1 = por %p7736_p10, %p7735_p5 }
  0x66   : > { %p7731_p9 = pneg %p7730_p7 }
  0x68   : > { %p7738_p3 = pnand %p7737_p1, %p7731_p9 }
  0x6a   : > { %7741 = shalt.err (!%p7738_p3)
}
  0x6b   : > { %s8059_s30 = smov 64   ;;  %s8060_s10 = smov 4  }
  0x6c   : > { %6660 = dma.hbm_to_vmem [thread:$0]  (!%p8185_p6), %s8703_s3, 4096, %s373_s13, [#allocation11], %s8059_s30, %s8059_s30, %s8060_s10  }
  0x6d   : > { %s8061_s25 = smov [#allocation15]   ;;  %s8704_s8 = sld [smem:[#allocation40_spill]] }
  0x6e   : > { %s412_s17 = sshll.u32 %s8061_s25, 4  ;;  %s413_s17 = int_to_ptr.vmem [resolvable:$true] %s412_s17 }
  0x73   : > { %s7742_s12 = scalar_lea.hbm %s8704_s8, 4096 }
  0x74   : > { %p7743_p1 = scmp.ne.s32.totalorder %s8704_s8, %s7742_s12  ;;  %p7749_p12 = scmp.lt.u32.totalorder %s7742_s12, %s8704_s8 }
  0x76   : > { %p7745_p3 = pnand %p7743_p1, %p8201_p8 }
  0x78   : > { %p7746_p11 = pneg %p7745_p3 }
  0x7a   : > { %p7751_p13 = pnand %p7749_p12, %p7746_p11 }
  0x7c   : > { %7754 = shalt.err (!%p7751_p13)
}
  0x7d   : > { %s7755_s13 = scalar_lea.vmem %s413_s17, 4096  ;;  %p7763_p7 = scmp.lt.s32.totalorder %s413_s17, %s413_s17 }
  0x7e   : > { %p7756_p0 = scmp.ne.s32.totalorder %s413_s17, %s7755_s13  ;;  %p7764_p9 = scmp.lt.s32.totalorder %s7755_s13, %s7755_s13 }
  0x80   : > { %p7758_p2 = pnand %p7756_p0, %p8201_p8  ;;  %p7765_p5 = por %p7764_p9, %p7763_p7 }
  0x82   : > { %p7759_p4 = pneg %p7758_p2 }
  0x84   : > { %p7766_p10 = pnand %p7765_p5, %p7759_p4 }
  0x86   : > { %7769 = shalt.err (!%p7766_p10)
}
  0x87   : > { %6669 = dma.hbm_to_vmem [thread:$0]  (!%p8185_p6), %s8704_s8, 4096, %s413_s17, [#allocation16], %s8059_s30, %s8059_s30, %s8060_s10  }
  0x88   : > { %s5823_s15 = sadd.s32 4294967294, %s8052_s4   ;;  %s48_s16 = sadd.s32 1, %s8048_s23 }
  0x89   : > { %p50_p1 = scmp.ge.s32.totalorder %s48_s16, 2  ;;  %s57_s25 = sadd.s32 1, %s8040_s21 }
  0x8a   : > { %p64_p3 = scmp.ne.s32.totalorder %s8040_s21, %s8036_s20  ;;  %p65_p11 = scmp.eq.s32.totalorder %s8052_s4, 0 }
  0x8b   : > { %s8749_s16 = smov (%p50_p1, %s48_s16), 0  ;;  %p70_p13 = scmp.ne.s32.totalorder %s8036_s20, %s8032_s19 }
  0x8c   : > { %8705 = sst [smem:[#allocation34_spill]] %s8749_s16  ;;  %p8293_p12 = por %p65_p11, %p64_p3 }
  0x8d   : > { %s52_s30 = ssub.s32 %s8048_s23, %s8749_s16  ;;  %p293_p0 = scmp.eq.s32.totalorder %s8169_s24, 1 }
  0x8e   : > { %p55_p2 = scmp.eq.s32.totalorder %s52_s30, 0  ;;  %p8707_p4 = scmp.eq.s32.totalorder %s8169_s24, 0 }
  0x8f   : > { %p8308_p9 = por %p293_p0, %p64_p3  ;;  %p299_p5 = scmp.eq.s32.totalorder %s5823_s15, 1 }
  0x90   : > { %p8304_p7 = por %p8707_p4, %p70_p13  ;;  %p6694_p1 = scmp.lt.s32.totalorder %s8052_s4, 2 }
  0x91   : > { %s8709_s17 = scalar_select %p8308_p9, 1, 0 }
  0x92   : > { %s8708_s10 = scalar_select %p8304_p7, 1, 0 }
  0x93   : > { %s8313_s29 = scalar_select %p55_p2, %s8040_s21, %s57_s25  }
  0x94   : > { %p8315_p10 = por %p299_p5, %p70_p13  ;;  %s437_s14 = sand.u32 1, %s8052_s4  }
  0x95   : > { %8710 = sst [smem:[#allocation35_spill]] %s8313_s29  ;;  %s439_s27 = sand.u32 1, %s8040_s21  }
  0x96   : > { %s8711_s12 = scalar_select %p8315_p10, 1, 0 }
  0x97   : > { %s5833_s13 = sshll.u32 %s439_s27, 8  ;;  %s6469_s11 = sshll.u32 %s8048_s23, 12 }
  0x98   : > { %s8712_s0 = sld [smem:[#allocation36_spill]]  ;;  %s441_s15 = scalar_lea.vmem [#allocation4], %s5833_s13 }
  0x99   : > { %s451_s25 = sshll.u32 %s441_s15, 4  ;;  %p8332_p3 = pnand %p6694_p1, %p8293_p12  ;;  %s8328_s25 = int_to_ptr.vmem [resolvable:$true] %s451_s25 }
  0x9a   : > { %s8336_s3 = sshll.u32 %s439_s27, 4  ;;  %s8338_s22 = scalar_lea.sflag [#allocation5], %s437_s14 }
  0x9b   : > { %s8713_s2 = scalar_select %p8332_p3, 1, 0 }
  0x9c   : > { %p8683_p13 = pneg %p8332_p3 }
  0x9e   : > { %s8326_s1 = scalar_lea.hbm %s8712_s0, %s6469_s11  ;;  %s7775_s30 = scalar_lea.hbm %s8712_s0, 8192 }
  0x9f   : > { %s7770_s11 = scalar_lea.hbm %s8326_s1, 4096  ;;  %p7776_p12 = scmp.lt.u32.totalorder %s8326_s1, %s8712_s0 }
  0xa0   : > { %p7771_p11 = scmp.ne.s32.totalorder %s8326_s1, %s7770_s11  ;;  %p7777_p4 = scmp.lt.u32.totalorder %s7775_s30, %s7770_s11 }
  0xa1   : > { %p7779_p1 = scmp.lt.u32.totalorder %s7770_s11, %s8326_s1 }
  0xa2   : > { %p7773_p0 = pnand %p8683_p13, %p7771_p11  ;;  %p7778_p5 = por %p7777_p4, %p7776_p12 }
  0xa4   : > { %p7774_p2 = pneg %p7773_p0  ;;  %p7780_p10 = por %p7779_p1, %p7778_p5 }
  0xa6   : > { %p7781_p9 = pnand %p7780_p10, %p7774_p2 }
  0xa8   : > { %7784 = shalt.err (!%p7781_p9)
}
  0xa9   : > { %s7785_s14 = scalar_lea.vmem %s8328_s25, 4096  ;;  %s8062_s27 = smov [#allocation4]  }
  0xaa   : > { %p7786_p11 = scmp.ne.s32.totalorder %s8328_s25, %s7785_s14  ;;  %s7790_s13 = sshll.u32 %s8062_s27, 4  ;;  %s7791_s13 = int_to_ptr.vmem [resolvable:$false] %s7790_s13 }
  0xab   : > { %s7792_s8 = scalar_lea.vmem %s7791_s13, 8192  ;;  %p7793_p6 = scmp.lt.s32.totalorder %s8328_s25, %s7791_s13 }
  0xac   : > { %p7788_p0 = pnand %p7786_p11, %p8683_p13  ;;  %p7794_p12 = scmp.lt.s32.totalorder %s7792_s8, %s7785_s14 }
  0xae   : > { %p7789_p7 = pneg %p7788_p0  ;;  %p7795_p4 = por %p7794_p12, %p7793_p6 }
  0xb0   : > { %p7796_p5 = pnand %p7795_p4, %p7789_p7 }
  0xb2   : > { %7799 = shalt.err (!%p7796_p5)
}
  0xb3   : > { %s8063_s11 = smov 2048   ;;  %s8684_s18 = smov 128  }
  0xb4   : > { %6676 = dma.hbm_to_vmem [thread:$0]  (!%p8332_p3), %s8326_s1, 4096, %s8328_s25, %s8338_s22, %s8063_s11, %s8063_s11, %s8684_s18  }
  0xb5   : > { %s465_s30 = scalar_lea.vmem [#allocation12], %s8336_s3  ;;  %s8065_s27 = smov [#allocation13]  }
  0xb6   : > { %s8368_s15 = sshll.u32 %s465_s30, 4  ;;  %s388_s13 = sshll.u32 %s8065_s27, 4  ;;  %s389_s13 = int_to_ptr.vmem [resolvable:$true] %s388_s13  ;;  %s8434_s15 = int_to_ptr.vmem [resolvable:$true] %s8368_s15 }
  0xb7   : > { %s7800_s0 = scalar_lea.hbm %s8661_s6, 4096 }
  0xb8   : > { %p7801_p6 = scmp.ne.s32.totalorder %s8661_s6, %s7800_s0  ;;  %p7807_p10 = scmp.lt.u32.totalorder %s7800_s0, %s8661_s6 }
  0xba   : > { %p7803_p7 = pnand %p7801_p6, %p8201_p8 }
  0xbc   : > { %p7804_p9 = pneg %p7803_p7 }
  0xbe   : > { %p7809_p2 = pnand %p7807_p10, %p7804_p9 }
  0xc0   : > { %7812 = shalt.err (!%p7809_p2)
}
  0xc1   : > { %s7813_s1 = scalar_lea.vmem %s389_s13, 4096  ;;  %p7821_p12 = scmp.lt.s32.totalorder %s389_s13, %s389_s13 }
  0xc2   : > { %p7814_p1 = scmp.ne.s32.totalorder %s389_s13, %s7813_s1  ;;  %p7822_p4 = scmp.lt.s32.totalorder %s7813_s1, %s7813_s1 }
  0xc4   : > { %p7816_p11 = pnand %p7814_p1, %p8201_p8  ;;  %p7823_p5 = por %p7822_p4, %p7821_p12 }
  0xc6   : > { %p7817_p0 = pneg %p7816_p11 }
  0xc8   : > { %p7824_p13 = pnand %p7823_p5, %p7817_p0 }
  0xca   : > { %7827 = shalt.err (!%p7824_p13)
}
  0xcb   : > { %p8714_p6 = scmp.ne.s32.totalorder %s8699_s28, 0  ;;  %s8715_s3 = smov 16  }
  0xcc   : > { %s8716_s16 = smov 256   ;;  %s8066_s4 = smov [#allocation14]  }
  0xcd   : > { %6663 = dma.hbm_to_vmem [thread:$0]  (!%p8714_p6), %s8661_s6, 4096, %s389_s13, [#allocation8], %s8716_s16, %s8716_s16, %s8715_s3  }
  0xce   : > { %s402_s29 = sshll.u32 %s8066_s4, 4  ;;  %s8067_s25 = smov [#allocation17]   ;;  %s403_s29 = int_to_ptr.vmem [resolvable:$true] %s402_s29 }
  0xcf   : > { %s426_s11 = sshll.u32 %s8067_s25, 4  ;;  %s7828_s14 = scalar_lea.hbm %s8662_s7, 64  ;;  %s427_s11 = int_to_ptr.vmem [resolvable:$true] %s426_s11 }
  0xd0   : > { %p7829_p13 = scmp.ne.s32.totalorder %s8662_s7, %s7828_s14  ;;  %p7835_p10 = scmp.lt.u32.totalorder %s7828_s14, %s8662_s7 }
  0xd2   : > { %p7831_p7 = pnand %p7829_p13, %p8201_p8 }
  0xd4   : > { %p7832_p9 = pneg %p7831_p7 }
  0xd6   : > { %p7837_p2 = pnand %p7835_p10, %p7832_p9 }
  0xd8   : > { %7840 = shalt.err (!%p7837_p2)
}
  0xd9   : > { %s7841_s13 = scalar_lea.vmem %s403_s29, 64  ;;  %p7849_p12 = scmp.lt.s32.totalorder %s403_s29, %s403_s29 }
  0xda   : > { %p7842_p1 = scmp.ne.s32.totalorder %s403_s29, %s7841_s13  ;;  %p7850_p4 = scmp.lt.s32.totalorder %s7841_s13, %s7841_s13 }
  0xdc   : > { %p7844_p11 = pnand %p7842_p1, %p8201_p8  ;;  %p7851_p5 = por %p7850_p4, %p7849_p12 }
  0xde   : > { %p7845_p0 = pneg %p7844_p11 }
  0xe0   : > { %p7852_p3 = pnand %p7851_p5, %p7845_p0 }
  0xe2   : > { %7855 = shalt.err (!%p7852_p3)
}
  0xe3   : > { %6666 = dma.hbm_to_vmem [thread:$0]  (!%p8714_p6), %s8662_s7, 64, %s403_s29, [#allocation11]  }
  0xe4   : > { %s6470_s18 = sshll.u32 %s8048_s23, 8  ;;  %s7856_s25 = scalar_lea.hbm %s8664_s9, 16 }
  0xe5   : > { %p7857_p13 = scmp.ne.s32.totalorder %s8664_s9, %s7856_s25  ;;  %p7863_p9 = scmp.lt.u32.totalorder %s7856_s25, %s8664_s9 }
  0xe7   : > { %p7859_p3 = pnand %p7857_p13, %p8201_p8 }
  0xe9   : > { %p7860_p7 = pneg %p7859_p3 }
  0xeb   : > { %p7865_p10 = pnand %p7863_p9, %p7860_p7 }
  0xed   : > { %7868 = shalt.err (!%p7865_p10)
}
  0xee   : > { %s7869_s29 = scalar_lea.vmem %s427_s11, 16  ;;  %s7876_s1 = scalar_lea.vmem %s427_s11, 32 }
  0xef   : > { %p7870_p2 = scmp.ne.s32.totalorder %s427_s11, %s7869_s29  ;;  %p7877_p0 = scmp.lt.s32.totalorder %s427_s11, %s427_s11 }
  0xf0   : > { %p7878_p12 = scmp.lt.s32.totalorder %s7876_s1, %s7869_s29 }
  0xf1   : > { %p7872_p1 = pnand %p7870_p2, %p8201_p8 }
  0xf2   : > { %p7879_p4 = por %p7878_p12, %p7877_p0 }
  0xf3   : > { %p7873_p11 = pneg %p7872_p1 }
  0xf5   : > { %p7880_p5 = pnand %p7879_p4, %p7873_p11 }
  0xf7   : > { %7883 = shalt.err (!%p7880_p5)
}
  0xf8   : > { %6672 = dma.hbm_to_vmem [thread:$0]  (!%p8714_p6), %s8664_s9, 16, %s427_s11, [#allocation16]  }
  0xf9   : > { %s8431_s26 = scalar_lea.hbm %s8660_s5, %s6470_s18  ;;  %p8717_p13 = scmp.ne.s32.totalorder %s8713_s2, 0 }
  0xfa   : > { %s7884_s0 = scalar_lea.hbm %s8431_s26, 256  ;;  %s7889_s11 = scalar_lea.hbm %s8660_s5, 512 }
  0xfb   : > { %p7885_p8 = scmp.ne.s32.totalorder %s8431_s26, %s7884_s0  ;;  %p8718_p3 = pneg %p8717_p13 }
  0xfc   : > { %p7890_p6 = scmp.lt.u32.totalorder %s8431_s26, %s8660_s5  ;;  %p7891_p10 = scmp.lt.u32.totalorder %s7889_s11, %s7884_s0 }
  0xfd   : > { %p7887_p7 = pnand %p7885_p8, %p8718_p3  ;;  %p7893_p1 = scmp.lt.u32.totalorder %s7884_s0, %s8431_s26 }
  0xfe   : > { %p7892_p2 = por %p7891_p10, %p7890_p6 }
  0xff   : > { %p7888_p9 = pneg %p7887_p7 }
 0x100   : > { %p7894_p11 = por %p7893_p1, %p7892_p2 }
 0x102   : > { %p7895_p0 = pnand %p7894_p11, %p7888_p9 }
 0x104   : > { %7898 = shalt.err (!%p7895_p0)
}
 0x105   : > { %s7899_s18 = scalar_lea.vmem %s8434_s15, 256  ;;  %p8719_p4 = pmov %p8718_p3 }
 0x106   : > { %p7900_p12 = scmp.ne.s32.totalorder %s8434_s15, %s7899_s18  ;;  %s8068_s27 = smov [#allocation12]  }
 0x107   : > { %s7904_s14 = sshll.u32 %s8068_s27, 4  ;;  %s7905_s14 = int_to_ptr.vmem [resolvable:$false] %s7904_s14 }
 0x108   : > { %p7902_p5 = pnand %p7900_p12, %p8719_p4  ;;  %s7906_s8 = scalar_lea.vmem %s7905_s14, 512 }
 0x109   : > { %p7907_p3 = scmp.lt.s32.totalorder %s8434_s15, %s7905_s14  ;;  %p7908_p7 = scmp.lt.s32.totalorder %s7906_s8, %s7899_s18 }
 0x10a   : > { %p7903_p8 = pneg %p7902_p5 }
 0x10b   : > { %p7909_p6 = por %p7908_p7, %p7907_p3 }
 0x10d   : > { %p7910_p10 = pnand %p7909_p6, %p7903_p8 }
 0x10f   : > { %7913 = shalt.err (!%p7910_p10)
}
 0x110   : > { %s8069_s29 = smov 8   ;;  %s8720_s1 = smov 128  }
 0x111   : > { %6679 = dma.hbm_to_vmem [thread:$0]  (!%p8717_p13), %s8431_s26, 256, %s8434_s15, %s8338_s22, %s8720_s1, %s8720_s1, %s8069_s29  }
 0x112   : > { %s8721_s21 = sld [smem:[#allocation33_spill]] }
 0x118   : > { %p8722_p9 = scmp.ne.s32.totalorder %s8721_s21, 0 }
 0x119   : > { %s486_s13 = sand.u32 (!%p8722_p9), 1, %s8169_s24   ;;  %s8466_s3 = sand.u32 (!%p8722_p9), 1, %s8036_s20  }
 0x11a   : > { %484 = sbr.rel (%p8722_p9) target bundleno = 2046 (0x7fe), region = 60  ;;  %s5841_s16 = sshll.u32 (!%p8722_p9), %s8466_s3, 8 }
 0x11b   : > { %s487_s0 = scalar_lea.sflag (!%p8722_p9), [#allocation5], %s486_s13  ;;  %s8469_s28 = scalar_lea.vmem (!%p8722_p9), [#allocation4], %s5841_s16 }
 0x11c   : > { %p8723_p2 = scmp.ne.s32.totalorder (!%p8722_p9), %s8708_s10, 0 }
 0x121   : > { %7995 = dma.done.wait (%p8723_p2), %s487_s0, 4096  }
 0x122   : > { %7997 = vsyncadd (%p8723_p2), %s487_s0, 4294963200  ;;  %p8724_p13 = scmp.eq.s32.totalorder %s8169_s24, 0 }
 0x124   : > { %7999 = dma.done.wait (%p8724_p13), [#allocation8], 65600   ;;  %p8725_p1 = pmov %p8724_p13 }
 0x126   : > { %8001 = vsyncadd (%p8725_p1), [#allocation8], 4294901696  ;;  %p8726_p11 = pmov %p8725_p1 }
 0x127   : > { %p8727_p0 = pmov %p8725_p1 }
 0x128   : > { %8003 = dma.done.wait (%p8726_p11), [#allocation11], 4096  }
 0x129   : > { %8005 = vsyncadd (%p8727_p0), [#allocation11], 4294963200  ;;  %s5845_s2 = sshll.u32 %s8466_s3, 4 }
 0x12a   : > { %s8484_s22 = scalar_lea.vmem [#allocation12], %s5845_s2 }
 0x12b   : > { %8007 = dma.done.wait (%p8723_p2), %s487_s0, 256  }
 0x12c   : > { %8009 = vsyncadd (%p8723_p2), %s487_s0, 4294967040  ;;  %p8728_p12 = pmov %p8727_p0 }
 0x12d   : > { %p8729_p4 = pmov %p8727_p0 }
 0x12e   : > { %8011 = dma.done.wait (%p8728_p12), [#allocation8], 4096  }
 0x12f   : > { %8013 = vsyncadd (%p8729_p4), [#allocation8], 4294963200  ;;  %p8730_p5 = pmov %p8727_p0 }
 0x130   : > { %p8731_p8 = pmov %p8727_p0 }
 0x131   : > { %8015 = dma.done.wait (%p8730_p5), [#allocation11], 64  }
 0x132   : > { %8017 = vsyncadd (%p8731_p8), [#allocation11], 4294967232  ;;  %p8732_p3 = pmov %p8727_p0 }
 0x133   : > { %p8733_p7 = pmov %p8727_p0 }
 0x134   : > { %8019 = dma.done.wait (%p8732_p3), [#allocation16], 4112  }
 0x135   : > { %8021 = vsyncadd (%p8733_p7), [#allocation16], 4294963184  ;;  %v6770_v1 = vld [vmem:[#allocation7 + $0x4] ss:$16 sps:$4 sm:$0xff]   ;;  %v6772_v2 = vld [vmem:[#allocation7 + $0xc] ss:$16 sps:$4 sm:$0xff]  }
 0x136   : > { %3721 = vmatprep.subr.bf16.mxu0 %v6770_v1  ;;  %v6774_v3 = vld [vmem:[#allocation7] ss:$16 sps:$4 sm:$0xff]   ;;  %v6775_v4 = vld [vmem:[#allocation7 + $0x8] ss:$16 sps:$4 sm:$0xff]   ;;  %4065 = vmatprep.subr.bf16.mxu1 %v6772_v2  ;;  %v6776_v5 = vld [vmem:[#allocation7 + $0x24] ss:$16 sps:$4 sm:$0xff]  }
 0x137   : > { %3722 = vmatpush1.bf16.msra.mxu0 %v6774_v3  ;;  %4066 = vmatpush1.bf16.msra.mxu1 %v6775_v4  ;;  %v6778_v6 = vld [vmem:[#allocation7 + $0x2c] ss:$16 sps:$4 sm:$0xff]   ;;  %v6780_v7 = vld [vmem:[#allocation7 + $0x20] ss:$16 sps:$4 sm:$0xff]   ;;  %v6781_v8 = vld [vmem:[#allocation7 + $0x28] ss:$16 sps:$4 sm:$0xff]  }
 0x138   : > { %3723 = vmatprep.subr.bf16.mxu0 %v6776_v5  ;;  %4067 = vmatprep.subr.bf16.mxu1 %v6778_v6  ;;  %v6782_v9 = vld [vmem:[#allocation7 + $0x44] ss:$16 sps:$4 sm:$0xff]   ;;  %v6784_v10 = vld [vmem:[#allocation7 + $0x4c] ss:$16 sps:$4 sm:$0xff]   ;;  %v6786_v11 = vld [vmem:[#allocation7 + $0x40] ss:$16 sps:$4 sm:$0xff]  }
 0x139   : > { %v6787_v12 = vld [vmem:[#allocation7 + $0x48] ss:$16 sps:$4 sm:$0xff]   ;;  %v6788_v13 = vld [vmem:[#allocation7 + $0x64] ss:$16 sps:$4 sm:$0xff]   ;;  %v6790_v14 = vld [vmem:[#allocation7 + $0x6c] ss:$16 sps:$4 sm:$0xff]  }
 0x13a   : > { %v6792_v15 = vld [vmem:[#allocation7 + $0x60] ss:$16 sps:$4 sm:$0xff]   ;;  %v6793_v16 = vld [vmem:[#allocation7 + $0x68] ss:$16 sps:$4 sm:$0xff]   ;;  %v6794_v17 = vld [vmem:[#allocation7 + $0x84] ss:$16 sps:$4 sm:$0xff]  }
 0x13b   : > { %3724 = vmatpush1.bf16.msra.mxu0 %v6780_v7  ;;  %4068 = vmatpush1.bf16.msra.mxu1 %v6781_v8  ;;  %v6796_v18 = vld [vmem:[#allocation7 + $0x8c] ss:$16 sps:$4 sm:$0xff]   ;;  %v6798_v19 = vld [vmem:[#allocation7 + $0x80] ss:$16 sps:$4 sm:$0xff]   ;;  %v6799_v20 = vld [vmem:[#allocation7 + $0x88] ss:$16 sps:$4 sm:$0xff]  }
 0x13c   : > { %3725 = vmatprep.subr.bf16.mxu0 %v6782_v9  ;;  %4069 = vmatprep.subr.bf16.mxu1 %v6784_v10  ;;  %v6800_v21 = vld [vmem:[#allocation7 + $0xa4] ss:$16 sps:$4 sm:$0xff]   ;;  %v6802_v22 = vld [vmem:[#allocation7 + $0xac] ss:$16 sps:$4 sm:$0xff]   ;;  %v6804_v23 = vld [vmem:[#allocation7 + $0xa0] ss:$16 sps:$4 sm:$0xff]  }
 0x13d   : > { %v6805_v24 = vld [vmem:[#allocation7 + $0xa8] ss:$16 sps:$4 sm:$0xff]   ;;  %v6806_v25 = vld [vmem:[#allocation7 + $0xc4] ss:$16 sps:$4 sm:$0xff]   ;;  %v6808_v26 = vld [vmem:[#allocation7 + $0xcc] ss:$16 sps:$4 sm:$0xff]  }
 0x13e   : > { %v6810_v27 = vld [vmem:[#allocation7 + $0xc0] ss:$16 sps:$4 sm:$0xff]   ;;  %v6811_v28 = vld [vmem:[#allocation7 + $0xc8] ss:$16 sps:$4 sm:$0xff]   ;;  %v6812_v29 = vld [vmem:[#allocation7 + $0xe4] ss:$16 sps:$4 sm:$0xff]  }
 0x13f   : > { %3726 = vmatpush1.bf16.msra.mxu0 %v6786_v11  ;;  %4070 = vmatpush1.bf16.msra.mxu1 %v6787_v12  ;;  %v6814_v30 = vld [vmem:[#allocation7 + $0xec] ss:$16 sps:$4 sm:$0xff]   ;;  %v6816_v31 = vld [vmem:[#allocation7 + $0xe0] ss:$16 sps:$4 sm:$0xff]   ;;  %v6817_v32 = vld [vmem:[#allocation7 + $0xe8] ss:$16 sps:$4 sm:$0xff]  }
 0x140   : > { %3727 = vmatprep.subr.bf16.mxu0 %v6788_v13  ;;  %4071 = vmatprep.subr.bf16.mxu1 %v6790_v14  ;;  %v6818_v33 = vld [vmem:[#allocation7 + $0x104] ss:$16 sps:$4 sm:$0xff]   ;;  %v6820_v34 = vld [vmem:[#allocation7 + $0x10c] ss:$16 sps:$4 sm:$0xff]   ;;  %v6822_v35 = vld [vmem:[#allocation7 + $0x100] ss:$16 sps:$4 sm:$0xff]  }
 0x141   : > { %v6823_v36 = vld [vmem:[#allocation7 + $0x108] ss:$16 sps:$4 sm:$0xff]   ;;  %v6824_v37 = vld [vmem:[#allocation7 + $0x124] ss:$16 sps:$4 sm:$0xff]   ;;  %v6826_v38 = vld [vmem:[#allocation7 + $0x12c] ss:$16 sps:$4 sm:$0xff]  }
 0x142   : > { %v6828_v39 = vld [vmem:[#allocation7 + $0x120] ss:$16 sps:$4 sm:$0xff]   ;;  %v6829_v40 = vld [vmem:[#allocation7 + $0x128] ss:$16 sps:$4 sm:$0xff]   ;;  %v6830_v41 = vld [vmem:[#allocation7 + $0x144] ss:$16 sps:$4 sm:$0xff]  }
 0x143   : > { %3728 = vmatpush1.bf16.msra.mxu0 %v6792_v15  ;;  %4072 = vmatpush1.bf16.msra.mxu1 %v6793_v16  ;;  %v6832_v42 = vld [vmem:[#allocation7 + $0x14c] ss:$16 sps:$4 sm:$0xff]   ;;  %v6834_v43 = vld [vmem:[#allocation7 + $0x140] ss:$16 sps:$4 sm:$0xff]   ;;  %v6835_v44 = vld [vmem:[#allocation7 + $0x148] ss:$16 sps:$4 sm:$0xff]  }
 0x144   : > { %3729 = vmatprep.subr.bf16.mxu0 %v6794_v17  ;;  %4073 = vmatprep.subr.bf16.mxu1 %v6796_v18  ;;  %v6836_v45 = vld [vmem:[#allocation7 + $0x164] ss:$16 sps:$4 sm:$0xff]   ;;  %v6838_v46 = vld [vmem:[#allocation7 + $0x16c] ss:$16 sps:$4 sm:$0xff]   ;;  %v6840_v49 = vld [vmem:[#allocation7 + $0x160] ss:$16 sps:$4 sm:$0xff]  }
 0x145   : > { %v594_v47 = vld [vmem:[%s8469_s28 + $0x8] sm:$0xff]  ;;  %v6842_v52 = vld [vmem:[#allocation7 + $0x184] ss:$16 sps:$4 sm:$0xff]   ;;  %v6846_v54 = vld [vmem:[#allocation7 + $0x180] ss:$16 sps:$4 sm:$0xff]   ;;  %s8070_s24 = smov 127  }
 0x146   : > { %v610_v48 = vld [vmem:[%s8469_s28 + $0x88] sm:$0xff]  ;;  %v6848_v56 = vld [vmem:[#allocation7 + $0x1a4] ss:$16 sps:$4 sm:$0xff]   ;;  %v6852_v58 = vld [vmem:[#allocation7 + $0x1a0] ss:$16 sps:$4 sm:$0xff]   ;;  %s8071_s10 = smov 126  }
 0x147   : > { %3730 = vmatpush1.bf16.msra.mxu0 %v6798_v19  ;;  %4074 = vmatpush1.bf16.msra.mxu1 %v6799_v20  ;;  %v6841_v50 = vld [vmem:[#allocation7 + $0x168] ss:$16 sps:$4 sm:$0xff]   ;;  %v626_v51 = vpack.c.bf16 %v610_v48, %v594_v47  ;;  %v6844_v53 = vld [vmem:[#allocation7 + $0x18c] ss:$16 sps:$4 sm:$0xff]   ;;  %v6854_v60 = vld [vmem:[#allocation7 + $0x1c4] ss:$16 sps:$4 sm:$0xff]  }
 0x148   : > { %3731 = vmatprep.subr.bf16.mxu0 %v6800_v21  ;;  %4075 = vmatprep.subr.bf16.mxu1 %v6802_v22  ;;  %v6847_v55 = vld [vmem:[#allocation7 + $0x188] ss:$16 sps:$4 sm:$0xff]   ;;  %v6850_v57 = vld [vmem:[#allocation7 + $0x1ac] ss:$16 sps:$4 sm:$0xff]   ;;  %v6858_v62 = vld [vmem:[#allocation7 + $0x1c0] ss:$16 sps:$4 sm:$0xff]  }
 0x149   : > { %3753 = vmatprep.mubr.bf16.mxu0 %v626_v51  ;;  %4097 = vmatprep.mubr.bf16.mxu1 %v626_v51  ;;  %v6853_v59 = vld [vmem:[#allocation7 + $0x1a8] ss:$16 sps:$4 sm:$0xff]   ;;  %v6856_v61 = vld [vmem:[#allocation7 + $0x1cc] ss:$16 sps:$4 sm:$0xff]   ;;  %v6860_v0 = vld [vmem:[#allocation7 + $0x1e4] ss:$16 sps:$4 sm:$0xff]  }
 0x14a   : > { %v6859_v63 = vld [vmem:[#allocation7 + $0x1c8] ss:$16 sps:$4 sm:$0xff]   ;;  %v6862_v1 = vld [vmem:[#allocation7 + $0x1ec] ss:$16 sps:$4 sm:$0xff]   ;;  %v6864_v2 = vld [vmem:[#allocation7 + $0x1e0] ss:$16 sps:$4 sm:$0xff]  }
 0x14b   : > { %3732 = vmatpush1.bf16.msra.mxu0 %v6804_v23  ;;  %4076 = vmatpush1.bf16.msra.mxu1 %v6805_v24  ;;  %v6865_v3 = vld [vmem:[#allocation7 + $0x1e8] ss:$16 sps:$4 sm:$0xff]   ;;  %v6868_v4 = vld [vmem:[#allocation7 + $0x204] ss:$16 sps:$4 sm:$0xff]   ;;  %v6871_v7 = vld [vmem:[#allocation7 + $0x20c] ss:$16 sps:$4 sm:$0xff]  }
 0x14c   : > { %3733 = vmatprep.subr.bf16.mxu0 %v6806_v25  ;;  %4077 = vmatprep.subr.bf16.mxu1 %v6808_v26  ;;  %v593_v5 = vld [vmem:[%s8469_s28] sm:$0xff]  ;;  %v6869_v9 = vld [vmem:[#allocation7 + $0x208] ss:$16 sps:$4 sm:$0xff]   ;;  %v6877_v12 = vld [vmem:[#allocation7 + $0x22c] ss:$16 sps:$4 sm:$0xff]   ;;  %vm4865_vm4 = vcmask 7168  }
 0x14d   : > { %v609_v6 = vld [vmem:[%s8469_s28 + $0x80] sm:$0xff]  ;;  %v6875_v14 = vld [vmem:[#allocation7 + $0x228] ss:$16 sps:$4 sm:$0xff]   ;;  %v6883_v16 = vld [vmem:[#allocation7 + $0x24c] ss:$16 sps:$4 sm:$0xff]   ;;  %s5850_s15 = sshll.u32 %s8466_s3, 1 }
 0x14e   : > { %v6866_v8 = vld [vmem:[#allocation7 + $0x200] ss:$16 sps:$4 sm:$0xff]   ;;  %v625_v10 = vpack.c.bf16 %v609_v6, %v593_v5  ;;  %v6874_v11 = vld [vmem:[#allocation7 + $0x224] ss:$16 sps:$4 sm:$0xff]   ;;  %v6881_v18 = vld [vmem:[#allocation7 + $0x248] ss:$16 sps:$4 sm:$0xff]  }
 0x14f   : > { %3734 = vmatpush1.bf16.msra.mxu0 %v6810_v27  ;;  %4078 = vmatpush1.bf16.msra.mxu1 %v6811_v28  ;;  %v6872_v13 = vld [vmem:[#allocation7 + $0x220] ss:$16 sps:$4 sm:$0xff]   ;;  %v6880_v15 = vld [vmem:[#allocation7 + $0x244] ss:$16 sps:$4 sm:$0xff]   ;;  %v6889_v20 = vld [vmem:[#allocation7 + $0x26c] ss:$16 sps:$4 sm:$0xff]  }
 0x150   : > { %3735 = vmatprep.subr.bf16.mxu0 %v6812_v29  ;;  %4079 = vmatprep.subr.bf16.mxu1 %v6814_v30  ;;  %v6878_v17 = vld [vmem:[#allocation7 + $0x240] ss:$16 sps:$4 sm:$0xff]   ;;  %v6886_v19 = vld [vmem:[#allocation7 + $0x264] ss:$16 sps:$4 sm:$0xff]   ;;  %v6887_v22 = vld [vmem:[#allocation7 + $0x268] ss:$16 sps:$4 sm:$0xff]  }
 0x151   : > { %v6884_v21 = vld [vmem:[#allocation7 + $0x260] ss:$16 sps:$4 sm:$0xff]   ;;  %v6892_v23 = vld [vmem:[#allocation7 + $0x284] ss:$16 sps:$4 sm:$0xff]   ;;  %v6895_v24 = vld [vmem:[#allocation7 + $0x28c] ss:$16 sps:$4 sm:$0xff]  }
 0x152   : > { %v6890_v25 = vld [vmem:[#allocation7 + $0x280] ss:$16 sps:$4 sm:$0xff]   ;;  %v6893_v26 = vld [vmem:[#allocation7 + $0x288] ss:$16 sps:$4 sm:$0xff]   ;;  %v6898_v27 = vld [vmem:[#allocation7 + $0x2a4] ss:$16 sps:$4 sm:$0xff]  }
 0x153   : > { %3736 = vmatpush1.bf16.msra.mxu0 %v6816_v31  ;;  %4080 = vmatpush1.bf16.msra.mxu1 %v6817_v32  ;;  %v6901_v28 = vld [vmem:[#allocation7 + $0x2ac] ss:$16 sps:$4 sm:$0xff]   ;;  %v6896_v29 = vld [vmem:[#allocation7 + $0x2a0] ss:$16 sps:$4 sm:$0xff]   ;;  %v6899_v30 = vld [vmem:[#allocation7 + $0x2a8] ss:$16 sps:$4 sm:$0xff]  }
 0x154   : > { %3737 = vmatprep.subr.bf16.mxu0 %v6818_v33  ;;  %4081 = vmatprep.subr.bf16.mxu1 %v6820_v34  ;;  %v6904_v31 = vld [vmem:[#allocation7 + $0x2c4] ss:$16 sps:$4 sm:$0xff]   ;;  %v6907_v32 = vld [vmem:[#allocation7 + $0x2cc] ss:$16 sps:$4 sm:$0xff]   ;;  %v6920_v48 = vld [vmem:[#allocation7 + $0x320] ss:$16 sps:$4 sm:$0xff]  }
 0x155   : > { %v596_v33 = vld [vmem:[%s8469_s28 + $0x18] sm:$0xff]  ;;  %v6958_v6 = vld [vmem:[#allocation7 + $0x3e4] ss:$16 sps:$4 sm:$0xff]   ;;  %vm4932_vm5 = vcmask 1041409   ;;  %s8561_s26 = scalar_lea.vmem [#allocation18], %s5850_s15  ;;  %s8734_s4 = sld [smem:[#allocation31_spill]] }
 0x156   : > { %v612_v34 = vld [vmem:[%s8469_s28 + $0x98] sm:$0xff]  ;;  %s8735_s18 = sld [smem:[#allocation41_spill]]  ;;  %s5608_s14 = sshll.u32 %s8561_s26, 4  ;;  %s5609_s14 = int_to_ptr.vmem [resolvable:$true] %s5608_s14 }
 0x157   : > { %3738 = vmatpush1.bf16.msra.mxu0 %v6822_v35  ;;  %4082 = vmatpush1.bf16.msra.mxu1 %v6823_v36  ;;  %v6902_v35 = vld [vmem:[#allocation7 + $0x2c0] ss:$16 sps:$4 sm:$0xff]   ;;  %v6905_v36 = vld [vmem:[#allocation7 + $0x2c8] ss:$16 sps:$4 sm:$0xff]   ;;  %v6925_v47 = vld [vmem:[#allocation7 + $0x32c] ss:$16 sps:$4 sm:$0xff]  }
 0x158   : > { %3739 = vmatprep.subr.bf16.mxu0 %v6824_v37  ;;  %4083 = vmatprep.subr.bf16.mxu1 %v6826_v38  ;;  %v628_v37 = vpack.c.bf16 %v612_v34, %v596_v33  ;;  %v6910_v38 = vld [vmem:[#allocation7 + $0x2e4] ss:$16 sps:$4 sm:$0xff]   ;;  %v6931_v51 = vld [vmem:[#allocation7 + $0x34c] ss:$16 sps:$4 sm:$0xff]   ;;  %v6953_v5 = vld [vmem:[#allocation7 + $0x3c8] ss:$16 sps:$4 sm:$0xff]  }
 0x159   : > { %v6991_v33 = vld [vmem:[#allocation7 + $0x48c] ss:$16 sps:$4 sm:$0xff]   ;;  %v6986_v34 = vld [vmem:[#allocation7 + $0x480] ss:$16 sps:$4 sm:$0xff]   ;;  %s5590_s8 = scalar_lea.sflag [#allocation6], %s8466_s3  ;;  %s7914_s29 = scalar_lea.vmem %s5609_s14, 32 }
 0x15a   : > { %p7915_p6 = scmp.ne.s32.totalorder %s5609_s14, %s7914_s29  ;;  %p8736_p10 = scmp.ne.s32.totalorder %s8709_s17, 0 }
 0x15b   : > { %3740 = vmatpush1.bf16.msra.mxu0 %v6828_v39  ;;  %4084 = vmatpush1.bf16.msra.mxu1 %v6829_v40  ;;  %v6913_v39 = vld [vmem:[#allocation7 + $0x2ec] ss:$16 sps:$4 sm:$0xff]   ;;  %v6908_v40 = vld [vmem:[#allocation7 + $0x2e0] ss:$16 sps:$4 sm:$0xff]   ;;  %s6464_s11 = sshll.u32 %s8734_s4, 5  ;;  %s8073_s1 = smov [#allocation18]  }
 0x15c   : > { %3741 = vmatprep.subr.bf16.mxu0 %v6830_v41  ;;  %4085 = vmatprep.subr.bf16.mxu1 %v6832_v42  ;;  %v6911_v41 = vld [vmem:[#allocation7 + $0x2e8] ss:$16 sps:$4 sm:$0xff]   ;;  %v6916_v42 = vld [vmem:[#allocation7 + $0x304] ss:$16 sps:$4 sm:$0xff]   ;;  %s8578_s27 = scalar_lea.hbm %s8735_s18, %s6464_s11  ;;  %p7916_p9 = pnand %p7915_p6, %p8736_p10 }
 0x15d   : > { %s7918_s21 = sshll.u32 %s8073_s1, 4  ;;  %s7919_s21 = int_to_ptr.vmem [resolvable:$false] %s7918_s21 }
 0x15e   : > { %p7917_p2 = pneg %p7916_p9  ;;  %s7920_s13 = scalar_lea.vmem %s7919_s21, 64 }
 0x15f   : > { %3742 = vmatpush1.bf16.msra.mxu0 %v6834_v43  ;;  %4086 = vmatpush1.bf16.msra.mxu1 %v6835_v44  ;;  %v6919_v43 = vld [vmem:[#allocation7 + $0x30c] ss:$16 sps:$4 sm:$0xff]   ;;  %v6914_v44 = vld [vmem:[#allocation7 + $0x300] ss:$16 sps:$4 sm:$0xff]   ;;  %p7921_p13 = scmp.lt.s32.totalorder %s5609_s14, %s7919_s21  ;;  %p7922_p1 = scmp.lt.s32.totalorder %s7920_s13, %s7914_s29 }
 0x160   : > { %3743 = vmatprep.subr.bf16.mxu0 %v6836_v45  ;;  %4087 = vmatprep.subr.bf16.mxu1 %v6838_v46  ;;  %v6917_v45 = vld [vmem:[#allocation7 + $0x308] ss:$16 sps:$4 sm:$0xff]   ;;  %v6922_v46 = vld [vmem:[#allocation7 + $0x324] ss:$16 sps:$4 sm:$0xff]  }
 0x161   : > { %p7923_p11 = por %p7922_p1, %p7921_p13 }
 0x163   : > { %3744 = vmatpush1.bf16.msra.mxu0 %v6840_v49  ;;  %4088 = vmatpush1.bf16.msra.mxu1 %v6841_v50  ;;  %v6923_v49 = vld [vmem:[#allocation7 + $0x328] ss:$16 sps:$4 sm:$0xff]   ;;  %v6928_v50 = vld [vmem:[#allocation7 + $0x344] ss:$16 sps:$4 sm:$0xff]   ;;  %p7924_p0 = pnand %p7923_p11, %p7917_p2 }
 0x164   : > { %3745 = vmatprep.subr.bf16.mxu0 %v6842_v52  ;;  %4089 = vmatprep.subr.bf16.mxu1 %v6844_v53  ;;  %v6926_v52 = vld [vmem:[#allocation7 + $0x340] ss:$16 sps:$4 sm:$0xff]   ;;  %v6929_v53 = vld [vmem:[#allocation7 + $0x348] ss:$16 sps:$4 sm:$0xff]  }
 0x167   : > { %3746 = vmatpush1.bf16.msra.mxu0 %v6846_v54  ;;  %4090 = vmatpush1.bf16.msra.mxu1 %v6847_v55  ;;  %v6934_v54 = vld [vmem:[#allocation7 + $0x364] ss:$16 sps:$4 sm:$0xff]   ;;  %v6937_v55 = vld [vmem:[#allocation7 + $0x36c] ss:$16 sps:$4 sm:$0xff]  }
 0x168   : > { %3747 = vmatprep.subr.bf16.mxu0 %v6848_v56  ;;  %4091 = vmatprep.subr.bf16.mxu1 %v6850_v57  ;;  %v6932_v56 = vld [vmem:[#allocation7 + $0x360] ss:$16 sps:$4 sm:$0xff]   ;;  %v6935_v57 = vld [vmem:[#allocation7 + $0x368] ss:$16 sps:$4 sm:$0xff]  }
 0x16b   : > { %3748 = vmatpush1.bf16.msra.mxu0 %v6852_v58  ;;  %4092 = vmatpush1.bf16.msra.mxu1 %v6853_v59  ;;  %v6940_v58 = vld [vmem:[#allocation7 + $0x384] ss:$16 sps:$4 sm:$0xff]   ;;  %v6943_v59 = vld [vmem:[#allocation7 + $0x38c] ss:$16 sps:$4 sm:$0xff]  }
 0x16c   : > { %3749 = vmatprep.subr.bf16.mxu0 %v6854_v60  ;;  %4093 = vmatprep.subr.bf16.mxu1 %v6856_v61  ;;  %v6938_v60 = vld [vmem:[#allocation7 + $0x380] ss:$16 sps:$4 sm:$0xff]   ;;  %v6941_v61 = vld [vmem:[#allocation7 + $0x388] ss:$16 sps:$4 sm:$0xff]  }
 0x16f   : > { %3750 = vmatpush1.bf16.msra.mxu0 %v6858_v62  ;;  %4094 = vmatpush1.bf16.msra.mxu1 %v6859_v63  ;;  %v6946_v62 = vld [vmem:[#allocation7 + $0x3a4] ss:$16 sps:$4 sm:$0xff]   ;;  %v6949_v63 = vld [vmem:[#allocation7 + $0x3ac] ss:$16 sps:$4 sm:$0xff]  }
 0x170   : > { %3751 = vmatprep.subr.bf16.mxu0 %v6860_v0  ;;  %4095 = vmatprep.subr.bf16.mxu1 %v6862_v1  ;;  %v6944_v0 = vld [vmem:[#allocation7 + $0x3a0] ss:$16 sps:$4 sm:$0xff]   ;;  %v6947_v1 = vld [vmem:[#allocation7 + $0x3a8] ss:$16 sps:$4 sm:$0xff]  }
 0x173   : > { %3752 = vmatpush1.bf16.msra.mxu0 %v6864_v2  ;;  %4096 = vmatpush1.bf16.msra.mxu1 %v6865_v3  ;;  %v6952_v2 = vld [vmem:[#allocation7 + $0x3c4] ss:$16 sps:$4 sm:$0xff]   ;;  %v6955_v3 = vld [vmem:[#allocation7 + $0x3cc] ss:$16 sps:$4 sm:$0xff]  }
 0x174   : > { %3764 = vmatprep.subr.bf16.mxu0 %v6868_v4  ;;  %4108 = vmatprep.subr.bf16.mxu1 %v6871_v7  ;;  %v6950_v4 = vld [vmem:[#allocation7 + $0x3c0] ss:$16 sps:$4 sm:$0xff]   ;;  %v6961_v7 = vld [vmem:[#allocation7 + $0x3ec] ss:$16 sps:$4 sm:$0xff]  }
 0x176   : > { %3754 = vmatmul.mubr.bf16.vlgmr.msra.gmra.mrb[0].mxu0 %v625_v10  ;;  %4098 = vmatmul.mubr.bf16.vlgmr.msra.gmra.mrb[0].mxu1 %v625_v10  ;;  %v6964_v10 = vld [vmem:[#allocation7 + $0x404] ss:$16 sps:$4 sm:$0xff]  }
 0x177   : > { %3765 = vmatpush1.bf16.msra.mxu0 %v6866_v8  ;;  %4109 = vmatpush1.bf16.msra.mxu1 %v6869_v9  ;;  %v6956_v8 = vld [vmem:[#allocation7 + $0x3e0] ss:$16 sps:$4 sm:$0xff]   ;;  %v6959_v9 = vld [vmem:[#allocation7 + $0x3e8] ss:$16 sps:$4 sm:$0xff]  }
 0x178   : > { %3766 = vmatprep.subr.bf16.mxu0 %v6874_v11  ;;  %4110 = vmatprep.subr.bf16.mxu1 %v6877_v12  ;;  %v595_v11 = vld [vmem:[%s8469_s28 + $0x10] sm:$0xff] }
 0x179   : > { %3796 = vmatprep.mubr.bf16.mxu0 %v628_v37  ;;  %4140 = vmatprep.mubr.bf16.mxu1 %v628_v37  ;;  %v611_v12 = vld [vmem:[%s8469_s28 + $0x90] sm:$0xff]  ;;  %v6997_v37 = vld [vmem:[#allocation7 + $0x4ac] ss:$16 sps:$4 sm:$0xff]  }
 0x17b   : > { %3767 = vmatpush1.bf16.msra.mxu0 %v6872_v13  ;;  %4111 = vmatpush1.bf16.msra.mxu1 %v6875_v14  ;;  %v6967_v13 = vld [vmem:[#allocation7 + $0x40c] ss:$16 sps:$4 sm:$0xff]   ;;  %v6962_v14 = vld [vmem:[#allocation7 + $0x400] ss:$16 sps:$4 sm:$0xff]  }
 0x17c   : > { %3768 = vmatprep.subr.bf16.mxu0 %v6880_v15  ;;  %4112 = vmatprep.subr.bf16.mxu1 %v6883_v16  ;;  %v6965_v15 = vld [vmem:[#allocation7 + $0x408] ss:$16 sps:$4 sm:$0xff]   ;;  %v627_v16 = vpack.c.bf16 %v611_v12, %v595_v11  ;;  %v7054_v12 = vld [vmem:[#allocation7 + $0x5e4] ss:$16 sps:$4 sm:$0xff]  }
 0x17d   : > { %v7049_v11 = vld [vmem:[#allocation7 + $0x5c8] ss:$16 sps:$4 sm:$0xff]  }
 0x17f   : > { %3769 = vmatpush1.bf16.msra.mxu0 %v6878_v17  ;;  %4113 = vmatpush1.bf16.msra.mxu1 %v6881_v18  ;;  %v6970_v17 = vld [vmem:[#allocation7 + $0x424] ss:$16 sps:$4 sm:$0xff]   ;;  %v6973_v18 = vld [vmem:[#allocation7 + $0x42c] ss:$16 sps:$4 sm:$0xff]  }
 0x180   : > { %3770 = vmatprep.subr.bf16.mxu0 %v6886_v19  ;;  %4114 = vmatprep.subr.bf16.mxu1 %v6889_v20  ;;  %v598_v19 = vld [vmem:[%s8469_s28 + $0x28] sm:$0xff] }
 0x181   : > { %v614_v20 = vld [vmem:[%s8469_s28 + $0xa8] sm:$0xff] }
 0x183   : > { %3771 = vmatpush1.bf16.msra.mxu0 %v6884_v21  ;;  %4115 = vmatpush1.bf16.msra.mxu1 %v6887_v22  ;;  %v6968_v21 = vld [vmem:[#allocation7 + $0x420] ss:$16 sps:$4 sm:$0xff]   ;;  %v6971_v22 = vld [vmem:[#allocation7 + $0x428] ss:$16 sps:$4 sm:$0xff]  }
 0x184   : > { %3772 = vmatprep.subr.bf16.mxu0 %v6892_v23  ;;  %4116 = vmatprep.subr.bf16.mxu1 %v6895_v24  ;;  %v630_v23 = vpack.c.bf16 %v614_v20, %v598_v19  ;;  %v6976_v24 = vld [vmem:[#allocation7 + $0x444] ss:$16 sps:$4 sm:$0xff]   ;;  %v7063_v19 = vld [vmem:[#allocation7 + $0x60c] ss:$16 sps:$4 sm:$0xff]   ;;  %v7058_v20 = vld [vmem:[#allocation7 + $0x600] ss:$16 sps:$4 sm:$0xff]  }
 0x187   : > { %3773 = vmatpush1.bf16.msra.mxu0 %v6890_v25  ;;  %4117 = vmatpush1.bf16.msra.mxu1 %v6893_v26  ;;  %v6979_v25 = vld [vmem:[#allocation7 + $0x44c] ss:$16 sps:$4 sm:$0xff]   ;;  %v6974_v26 = vld [vmem:[#allocation7 + $0x440] ss:$16 sps:$4 sm:$0xff]  }
 0x188   : > { %3774 = vmatprep.subr.bf16.mxu0 %v6898_v27  ;;  %4118 = vmatprep.subr.bf16.mxu1 %v6901_v28  ;;  %v6977_v27 = vld [vmem:[#allocation7 + $0x448] ss:$16 sps:$4 sm:$0xff]   ;;  %v6982_v28 = vld [vmem:[#allocation7 + $0x464] ss:$16 sps:$4 sm:$0xff]  }
 0x18b   : > { %3775 = vmatpush1.bf16.msra.mxu0 %v6896_v29  ;;  %4119 = vmatpush1.bf16.msra.mxu1 %v6899_v30  ;;  %v6985_v29 = vld [vmem:[#allocation7 + $0x46c] ss:$16 sps:$4 sm:$0xff]   ;;  %v6980_v30 = vld [vmem:[#allocation7 + $0x460] ss:$16 sps:$4 sm:$0xff]  }
 0x18c   : > { %3776 = vmatprep.subr.bf16.mxu0 %v6904_v31  ;;  %4120 = vmatprep.subr.bf16.mxu1 %v6907_v32  ;;  %v6983_v31 = vld [vmem:[#allocation7 + $0x468] ss:$16 sps:$4 sm:$0xff]   ;;  %v6988_v32 = vld [vmem:[#allocation7 + $0x484] ss:$16 sps:$4 sm:$0xff]  }
 0x18f   : > { %3777 = vmatpush1.bf16.msra.mxu0 %v6902_v35  ;;  %4121 = vmatpush1.bf16.msra.mxu1 %v6905_v36  ;;  %v6989_v35 = vld [vmem:[#allocation7 + $0x488] ss:$16 sps:$4 sm:$0xff]   ;;  %v6994_v36 = vld [vmem:[#allocation7 + $0x4a4] ss:$16 sps:$4 sm:$0xff]  }
 0x190   : > { %3778 = vmatprep.subr.bf16.mxu0 %v6910_v38  ;;  %4122 = vmatprep.subr.bf16.mxu1 %v6913_v39  ;;  %v6992_v38 = vld [vmem:[#allocation7 + $0x4a0] ss:$16 sps:$4 sm:$0xff]   ;;  %v6995_v39 = vld [vmem:[#allocation7 + $0x4a8] ss:$16 sps:$4 sm:$0xff]  }
 0x193   : > { %3779 = vmatpush1.bf16.msra.mxu0 %v6908_v40  ;;  %4123 = vmatpush1.bf16.msra.mxu1 %v6911_v41  ;;  %v7000_v40 = vld [vmem:[#allocation7 + $0x4c4] ss:$16 sps:$4 sm:$0xff]   ;;  %v7003_v41 = vld [vmem:[#allocation7 + $0x4cc] ss:$16 sps:$4 sm:$0xff]  }
 0x194   : > { %3780 = vmatprep.subr.bf16.mxu0 %v6916_v42  ;;  %4124 = vmatprep.subr.bf16.mxu1 %v6919_v43  ;;  %v6998_v42 = vld [vmem:[#allocation7 + $0x4c0] ss:$16 sps:$4 sm:$0xff]   ;;  %v7001_v43 = vld [vmem:[#allocation7 + $0x4c8] ss:$16 sps:$4 sm:$0xff]  }
 0x197   : > { %3781 = vmatpush1.bf16.msra.mxu0 %v6914_v44  ;;  %4125 = vmatpush1.bf16.msra.mxu1 %v6917_v45  ;;  %v7006_v44 = vld [vmem:[#allocation7 + $0x4e4] ss:$16 sps:$4 sm:$0xff]   ;;  %v7009_v45 = vld [vmem:[#allocation7 + $0x4ec] ss:$16 sps:$4 sm:$0xff]  }
 0x198   : > { %3782 = vmatprep.subr.bf16.mxu0 %v6922_v46  ;;  %4126 = vmatprep.subr.bf16.mxu1 %v6925_v47  ;;  %v7004_v46 = vld [vmem:[#allocation7 + $0x4e0] ss:$16 sps:$4 sm:$0xff]   ;;  %v7007_v47 = vld [vmem:[#allocation7 + $0x4e8] ss:$16 sps:$4 sm:$0xff]  }
 0x19b   : > { %3783 = vmatpush1.bf16.msra.mxu0 %v6920_v48  ;;  %4127 = vmatpush1.bf16.msra.mxu1 %v6923_v49  ;;  %v7012_v48 = vld [vmem:[#allocation7 + $0x504] ss:$16 sps:$4 sm:$0xff]   ;;  %v7015_v49 = vld [vmem:[#allocation7 + $0x50c] ss:$16 sps:$4 sm:$0xff]  }
 0x19c   : > { %3784 = vmatprep.subr.bf16.mxu0 %v6928_v50  ;;  %4128 = vmatprep.subr.bf16.mxu1 %v6931_v51  ;;  %v7010_v50 = vld [vmem:[#allocation7 + $0x500] ss:$16 sps:$4 sm:$0xff]   ;;  %v7013_v51 = vld [vmem:[#allocation7 + $0x508] ss:$16 sps:$4 sm:$0xff]  }
 0x19f   : > { %3785 = vmatpush1.bf16.msra.mxu0 %v6926_v52  ;;  %4129 = vmatpush1.bf16.msra.mxu1 %v6929_v53  ;;  %v7018_v52 = vld [vmem:[#allocation7 + $0x524] ss:$16 sps:$4 sm:$0xff]   ;;  %v7021_v53 = vld [vmem:[#allocation7 + $0x52c] ss:$16 sps:$4 sm:$0xff]  }
 0x1a0   : > { %3786 = vmatprep.subr.bf16.mxu0 %v6934_v54  ;;  %4130 = vmatprep.subr.bf16.mxu1 %v6937_v55  ;;  %v7016_v54 = vld [vmem:[#allocation7 + $0x520] ss:$16 sps:$4 sm:$0xff]   ;;  %v7019_v55 = vld [vmem:[#allocation7 + $0x528] ss:$16 sps:$4 sm:$0xff]  }
 0x1a3   : > { %3787 = vmatpush1.bf16.msra.mxu0 %v6932_v56  ;;  %4131 = vmatpush1.bf16.msra.mxu1 %v6935_v57  ;;  %v7024_v56 = vld [vmem:[#allocation7 + $0x544] ss:$16 sps:$4 sm:$0xff]   ;;  %v7027_v57 = vld [vmem:[#allocation7 + $0x54c] ss:$16 sps:$4 sm:$0xff]  }
 0x1a4   : > { %3788 = vmatprep.subr.bf16.mxu0 %v6940_v58  ;;  %4132 = vmatprep.subr.bf16.mxu1 %v6943_v59  ;;  %v7022_v58 = vld [vmem:[#allocation7 + $0x540] ss:$16 sps:$4 sm:$0xff]   ;;  %v7025_v59 = vld [vmem:[#allocation7 + $0x548] ss:$16 sps:$4 sm:$0xff]  }
 0x1a7   : > { %3789 = vmatpush1.bf16.msra.mxu0 %v6938_v60  ;;  %4133 = vmatpush1.bf16.msra.mxu1 %v6941_v61  ;;  %v7030_v60 = vld [vmem:[#allocation7 + $0x564] ss:$16 sps:$4 sm:$0xff]   ;;  %v7033_v61 = vld [vmem:[#allocation7 + $0x56c] ss:$16 sps:$4 sm:$0xff]  }
 0x1a8   : > { %3790 = vmatprep.subr.bf16.mxu0 %v6946_v62  ;;  %4134 = vmatprep.subr.bf16.mxu1 %v6949_v63  ;;  %v7028_v62 = vld [vmem:[#allocation7 + $0x560] ss:$16 sps:$4 sm:$0xff]   ;;  %v7031_v63 = vld [vmem:[#allocation7 + $0x568] ss:$16 sps:$4 sm:$0xff]  }
 0x1ab   : > { %3791 = vmatpush1.bf16.msra.mxu0 %v6944_v0  ;;  %4135 = vmatpush1.bf16.msra.mxu1 %v6947_v1  ;;  %v7036_v0 = vld [vmem:[#allocation7 + $0x584] ss:$16 sps:$4 sm:$0xff]   ;;  %v7039_v1 = vld [vmem:[#allocation7 + $0x58c] ss:$16 sps:$4 sm:$0xff]  }
 0x1ac   : > { %3792 = vmatprep.subr.bf16.mxu0 %v6952_v2  ;;  %4136 = vmatprep.subr.bf16.mxu1 %v6955_v3  ;;  %v7034_v2 = vld [vmem:[#allocation7 + $0x580] ss:$16 sps:$4 sm:$0xff]   ;;  %v7037_v3 = vld [vmem:[#allocation7 + $0x588] ss:$16 sps:$4 sm:$0xff]  }
 0x1af   : > { %3793 = vmatpush1.bf16.msra.mxu0 %v6950_v4  ;;  %4137 = vmatpush1.bf16.msra.mxu1 %v6953_v5  ;;  %v7042_v4 = vld [vmem:[#allocation7 + $0x5a4] ss:$16 sps:$4 sm:$0xff]   ;;  %v7045_v5 = vld [vmem:[#allocation7 + $0x5ac] ss:$16 sps:$4 sm:$0xff]  }
 0x1b0   : > { %3794 = vmatprep.subr.bf16.mxu0 %v6958_v6  ;;  %4138 = vmatprep.subr.bf16.mxu1 %v6961_v7  ;;  %v7040_v6 = vld [vmem:[#allocation7 + $0x5a0] ss:$16 sps:$4 sm:$0xff]   ;;  %v7043_v7 = vld [vmem:[#allocation7 + $0x5a8] ss:$16 sps:$4 sm:$0xff]  }
 0x1b3   : > { %3795 = vmatpush1.bf16.msra.mxu0 %v6956_v8  ;;  %4139 = vmatpush1.bf16.msra.mxu1 %v6959_v9  ;;  %v7048_v8 = vld [vmem:[#allocation7 + $0x5c4] ss:$16 sps:$4 sm:$0xff]   ;;  %v7051_v9 = vld [vmem:[#allocation7 + $0x5cc] ss:$16 sps:$4 sm:$0xff]  }
 0x1b4   : > { %3807 = vmatprep.subr.bf16.mxu0 %v6964_v10  ;;  %4151 = vmatprep.subr.bf16.mxu1 %v6967_v13  ;;  %v7046_v10 = vld [vmem:[#allocation7 + $0x5c0] ss:$16 sps:$4 sm:$0xff]   ;;  %v7057_v13 = vld [vmem:[#allocation7 + $0x5ec] ss:$16 sps:$4 sm:$0xff]  }
 0x1b6   : > { %3797 = vmatmul.mubr.bf16.vlgmr.msra.gmra.mrb[0].mxu0 %v627_v16  ;;  %4141 = vmatmul.mubr.bf16.vlgmr.msra.gmra.mrb[0].mxu1 %v627_v16  ;;  %v7060_v16 = vld [vmem:[#allocation7 + $0x604] ss:$16 sps:$4 sm:$0xff]  }
 0x1b7   : > { %3808 = vmatpush1.bf16.msra.mxu0 %v6962_v14  ;;  %4152 = vmatpush1.bf16.msra.mxu1 %v6965_v15  ;;  %v7052_v14 = vld [vmem:[#allocation7 + $0x5e0] ss:$16 sps:$4 sm:$0xff]   ;;  %v7055_v15 = vld [vmem:[#allocation7 + $0x5e8] ss:$16 sps:$4 sm:$0xff]  }
 0x1b8   : > { %3809 = vmatprep.subr.bf16.mxu0 %v6970_v17  ;;  %4153 = vmatprep.subr.bf16.mxu1 %v6973_v18  ;;  %v597_v17 = vld [vmem:[%s8469_s28 + $0x20] sm:$0xff] }
 0x1b9   : > { %3839 = vmatprep.mubr.bf16.mxu0 %v630_v23  ;;  %4183 = vmatprep.mubr.bf16.mxu1 %v630_v23  ;;  %v613_v18 = vld [vmem:[%s8469_s28 + $0xa0] sm:$0xff]  ;;  %v600_v23 = vld [vmem:[%s8469_s28 + $0x38] sm:$0xff] }
 0x1bb   : > { %3810 = vmatpush1.bf16.msra.mxu0 %v6968_v21  ;;  %4154 = vmatpush1.bf16.msra.mxu1 %v6971_v22  ;;  %v7061_v21 = vld [vmem:[#allocation7 + $0x608] ss:$16 sps:$4 sm:$0xff]   ;;  %v629_v22 = vpack.c.bf16 %v613_v18, %v597_v17  ;;  %v7150_v18 = vld [vmem:[#allocation7 + $0x7e4] ss:$16 sps:$4 sm:$0xff]  }
 0x1bc   : > { %3811 = vmatprep.subr.bf16.mxu0 %v6976_v24  ;;  %4155 = vmatprep.subr.bf16.mxu1 %v6979_v25  ;;  %v616_v24 = vld [vmem:[%s8469_s28 + $0xb8] sm:$0xff]  ;;  %v7066_v25 = vld [vmem:[#allocation7 + $0x624] ss:$16 sps:$4 sm:$0xff]  }
 0x1bd   : > { %v7145_v17 = vld [vmem:[#allocation7 + $0x7c8] ss:$16 sps:$4 sm:$0xff]  }
 0x1bf   : > { %3812 = vmatpush1.bf16.msra.mxu0 %v6974_v26  ;;  %4156 = vmatpush1.bf16.msra.mxu1 %v6977_v27  ;;  %v7069_v26 = vld [vmem:[#allocation7 + $0x62c] ss:$16 sps:$4 sm:$0xff]   ;;  %v632_v27 = vpack.c.bf16 %v616_v24, %v600_v23  ;;  %v599_v23 = vld [vmem:[%s8469_s28 + $0x30] sm:$0xff] }
 0x1c0   : > { %3813 = vmatprep.subr.bf16.mxu0 %v6982_v28  ;;  %4157 = vmatprep.subr.bf16.mxu1 %v6985_v29  ;;  %v7064_v28 = vld [vmem:[#allocation7 + $0x620] ss:$16 sps:$4 sm:$0xff]   ;;  %v7067_v29 = vld [vmem:[#allocation7 + $0x628] ss:$16 sps:$4 sm:$0xff]  }
 0x1c1   : > { %v615_v24 = vld [vmem:[%s8469_s28 + $0xb0] sm:$0xff] }
 0x1c3   : > { %3814 = vmatpush1.bf16.msra.mxu0 %v6980_v30  ;;  %4158 = vmatpush1.bf16.msra.mxu1 %v6983_v31  ;;  %v7072_v30 = vld [vmem:[#allocation7 + $0x644] ss:$16 sps:$4 sm:$0xff]   ;;  %v7075_v31 = vld [vmem:[#allocation7 + $0x64c] ss:$16 sps:$4 sm:$0xff]  }
 0x1c4   : > { %3815 = vmatprep.subr.bf16.mxu0 %v6988_v32  ;;  %4159 = vmatprep.subr.bf16.mxu1 %v6991_v33  ;;  %v7070_v32 = vld [vmem:[#allocation7 + $0x640] ss:$16 sps:$4 sm:$0xff]   ;;  %v7073_v33 = vld [vmem:[#allocation7 + $0x648] ss:$16 sps:$4 sm:$0xff]  }
 0x1c7   : > { %3816 = vmatpush1.bf16.msra.mxu0 %v6986_v34  ;;  %4160 = vmatpush1.bf16.msra.mxu1 %v6989_v35  ;;  %v7078_v34 = vld [vmem:[#allocation7 + $0x664] ss:$16 sps:$4 sm:$0xff]   ;;  %v7081_v35 = vld [vmem:[#allocation7 + $0x66c] ss:$16 sps:$4 sm:$0xff]  }
 0x1c8   : > { %3817 = vmatprep.subr.bf16.mxu0 %v6994_v36  ;;  %4161 = vmatprep.subr.bf16.mxu1 %v6997_v37  ;;  %v7076_v36 = vld [vmem:[#allocation7 + $0x660] ss:$16 sps:$4 sm:$0xff]   ;;  %v7079_v37 = vld [vmem:[#allocation7 + $0x668] ss:$16 sps:$4 sm:$0xff]  }
 0x1cb   : > { %3818 = vmatpush1.bf16.msra.mxu0 %v6992_v38  ;;  %4162 = vmatpush1.bf16.msra.mxu1 %v6995_v39  ;;  %v7084_v38 = vld [vmem:[#allocation7 + $0x684] ss:$16 sps:$4 sm:$0xff]   ;;  %v7087_v39 = vld [vmem:[#allocation7 + $0x68c] ss:$16 sps:$4 sm:$0xff]  }
 0x1cc   : > { %3819 = vmatprep.subr.bf16.mxu0 %v7000_v40  ;;  %4163 = vmatprep.subr.bf16.mxu1 %v7003_v41  ;;  %v7082_v40 = vld [vmem:[#allocation7 + $0x680] ss:$16 sps:$4 sm:$0xff]   ;;  %v7085_v41 = vld [vmem:[#allocation7 + $0x688] ss:$16 sps:$4 sm:$0xff]  }
 0x1cf   : > { %3820 = vmatpush1.bf16.msra.mxu0 %v6998_v42  ;;  %4164 = vmatpush1.bf16.msra.mxu1 %v7001_v43  ;;  %v7090_v42 = vld [vmem:[#allocation7 + $0x6a4] ss:$16 sps:$4 sm:$0xff]   ;;  %v7093_v43 = vld [vmem:[#allocation7 + $0x6ac] ss:$16 sps:$4 sm:$0xff]  }
 0x1d0   : > { %3821 = vmatprep.subr.bf16.mxu0 %v7006_v44  ;;  %4165 = vmatprep.subr.bf16.mxu1 %v7009_v45  ;;  %v7088_v44 = vld [vmem:[#allocation7 + $0x6a0] ss:$16 sps:$4 sm:$0xff]   ;;  %v7091_v45 = vld [vmem:[#allocation7 + $0x6a8] ss:$16 sps:$4 sm:$0xff]  }
 0x1d3   : > { %3822 = vmatpush1.bf16.msra.mxu0 %v7004_v46  ;;  %4166 = vmatpush1.bf16.msra.mxu1 %v7007_v47  ;;  %v7096_v46 = vld [vmem:[#allocation7 + $0x6c4] ss:$16 sps:$4 sm:$0xff]   ;;  %v7099_v47 = vld [vmem:[#allocation7 + $0x6cc] ss:$16 sps:$4 sm:$0xff]  }
 0x1d4   : > { %3823 = vmatprep.subr.bf16.mxu0 %v7012_v48  ;;  %4167 = vmatprep.subr.bf16.mxu1 %v7015_v49  ;;  %v7094_v48 = vld [vmem:[#allocation7 + $0x6c0] ss:$16 sps:$4 sm:$0xff]   ;;  %v7097_v49 = vld [vmem:[#allocation7 + $0x6c8] ss:$16 sps:$4 sm:$0xff]  }
 0x1d7   : > { %3824 = vmatpush1.bf16.msra.mxu0 %v7010_v50  ;;  %4168 = vmatpush1.bf16.msra.mxu1 %v7013_v51  ;;  %v7102_v50 = vld [vmem:[#allocation7 + $0x6e4] ss:$16 sps:$4 sm:$0xff]   ;;  %v7105_v51 = vld [vmem:[#allocation7 + $0x6ec] ss:$16 sps:$4 sm:$0xff]  }
 0x1d8   : > { %3825 = vmatprep.subr.bf16.mxu0 %v7018_v52  ;;  %4169 = vmatprep.subr.bf16.mxu1 %v7021_v53  ;;  %v7100_v52 = vld [vmem:[#allocation7 + $0x6e0] ss:$16 sps:$4 sm:$0xff]   ;;  %v7103_v53 = vld [vmem:[#allocation7 + $0x6e8] ss:$16 sps:$4 sm:$0xff]  }
 0x1db   : > { %3826 = vmatpush1.bf16.msra.mxu0 %v7016_v54  ;;  %4170 = vmatpush1.bf16.msra.mxu1 %v7019_v55  ;;  %v7108_v54 = vld [vmem:[#allocation7 + $0x704] ss:$16 sps:$4 sm:$0xff]   ;;  %v7111_v55 = vld [vmem:[#allocation7 + $0x70c] ss:$16 sps:$4 sm:$0xff]  }
 0x1dc   : > { %3827 = vmatprep.subr.bf16.mxu0 %v7024_v56  ;;  %4171 = vmatprep.subr.bf16.mxu1 %v7027_v57  ;;  %v7106_v56 = vld [vmem:[#allocation7 + $0x700] ss:$16 sps:$4 sm:$0xff]   ;;  %v7109_v57 = vld [vmem:[#allocation7 + $0x708] ss:$16 sps:$4 sm:$0xff]  }
 0x1df   : > { %3828 = vmatpush1.bf16.msra.mxu0 %v7022_v58  ;;  %4172 = vmatpush1.bf16.msra.mxu1 %v7025_v59  ;;  %v7114_v58 = vld [vmem:[#allocation7 + $0x724] ss:$16 sps:$4 sm:$0xff]   ;;  %v7117_v59 = vld [vmem:[#allocation7 + $0x72c] ss:$16 sps:$4 sm:$0xff]  }
 0x1e0   : > { %3829 = vmatprep.subr.bf16.mxu0 %v7030_v60  ;;  %4173 = vmatprep.subr.bf16.mxu1 %v7033_v61  ;;  %v7112_v60 = vld [vmem:[#allocation7 + $0x720] ss:$16 sps:$4 sm:$0xff]   ;;  %v7115_v61 = vld [vmem:[#allocation7 + $0x728] ss:$16 sps:$4 sm:$0xff]  }
 0x1e3   : > { %3830 = vmatpush1.bf16.msra.mxu0 %v7028_v62  ;;  %4174 = vmatpush1.bf16.msra.mxu1 %v7031_v63  ;;  %v7120_v62 = vld [vmem:[#allocation7 + $0x744] ss:$16 sps:$4 sm:$0xff]   ;;  %v7123_v63 = vld [vmem:[#allocation7 + $0x74c] ss:$16 sps:$4 sm:$0xff]  }
 0x1e4   : > { %3831 = vmatprep.subr.bf16.mxu0 %v7036_v0  ;;  %4175 = vmatprep.subr.bf16.mxu1 %v7039_v1  ;;  %v7118_v0 = vld [vmem:[#allocation7 + $0x740] ss:$16 sps:$4 sm:$0xff]   ;;  %v7121_v1 = vld [vmem:[#allocation7 + $0x748] ss:$16 sps:$4 sm:$0xff]  }
 0x1e7   : > { %3832 = vmatpush1.bf16.msra.mxu0 %v7034_v2  ;;  %4176 = vmatpush1.bf16.msra.mxu1 %v7037_v3  ;;  %v7126_v2 = vld [vmem:[#allocation7 + $0x764] ss:$16 sps:$4 sm:$0xff]   ;;  %v7129_v3 = vld [vmem:[#allocation7 + $0x76c] ss:$16 sps:$4 sm:$0xff]  }
 0x1e8   : > { %3833 = vmatprep.subr.bf16.mxu0 %v7042_v4  ;;  %4177 = vmatprep.subr.bf16.mxu1 %v7045_v5  ;;  %v7124_v4 = vld [vmem:[#allocation7 + $0x760] ss:$16 sps:$4 sm:$0xff]   ;;  %v7127_v5 = vld [vmem:[#allocation7 + $0x768] ss:$16 sps:$4 sm:$0xff]  }
 0x1eb   : > { %3834 = vmatpush1.bf16.msra.mxu0 %v7040_v6  ;;  %4178 = vmatpush1.bf16.msra.mxu1 %v7043_v7  ;;  %v7132_v6 = vld [vmem:[#allocation7 + $0x784] ss:$16 sps:$4 sm:$0xff]   ;;  %v7135_v7 = vld [vmem:[#allocation7 + $0x78c] ss:$16 sps:$4 sm:$0xff]  }
 0x1ec   : > { %3835 = vmatprep.subr.bf16.mxu0 %v7048_v8  ;;  %4179 = vmatprep.subr.bf16.mxu1 %v7051_v9  ;;  %v7130_v8 = vld [vmem:[#allocation7 + $0x780] ss:$16 sps:$4 sm:$0xff]   ;;  %v7133_v9 = vld [vmem:[#allocation7 + $0x788] ss:$16 sps:$4 sm:$0xff]  }
 0x1ef   : > { %3836 = vmatpush1.bf16.msra.mxu0 %v7046_v10  ;;  %4180 = vmatpush1.bf16.msra.mxu1 %v7049_v11  ;;  %v7138_v10 = vld [vmem:[#allocation7 + $0x7a4] ss:$16 sps:$4 sm:$0xff]   ;;  %v7141_v11 = vld [vmem:[#allocation7 + $0x7ac] ss:$16 sps:$4 sm:$0xff]  }
 0x1f0   : > { %3837 = vmatprep.subr.bf16.mxu0 %v7054_v12  ;;  %4181 = vmatprep.subr.bf16.mxu1 %v7057_v13  ;;  %v7136_v12 = vld [vmem:[#allocation7 + $0x7a0] ss:$16 sps:$4 sm:$0xff]   ;;  %v7139_v13 = vld [vmem:[#allocation7 + $0x7a8] ss:$16 sps:$4 sm:$0xff]  }
 0x1f3   : > { %3838 = vmatpush1.bf16.msra.mxu0 %v7052_v14  ;;  %4182 = vmatpush1.bf16.msra.mxu1 %v7055_v15  ;;  %v7144_v14 = vld [vmem:[#allocation7 + $0x7c4] ss:$16 sps:$4 sm:$0xff]   ;;  %v7147_v15 = vld [vmem:[#allocation7 + $0x7cc] ss:$16 sps:$4 sm:$0xff]  }
 0x1f4   : > { %3850 = vmatprep.subr.bf16.mxu0 %v7060_v16  ;;  %4194 = vmatprep.subr.bf16.mxu1 %v7063_v19  ;;  %v7142_v16 = vld [vmem:[#allocation7 + $0x7c0] ss:$16 sps:$4 sm:$0xff]   ;;  %v7153_v19 = vld [vmem:[#allocation7 + $0x7ec] ss:$16 sps:$4 sm:$0xff]  }
 0x1f6   : > { %3840 = vmatmul.mubr.bf16.vlgmr.msra.gmra.mrb[0].mxu0 %v629_v22  ;;  %4184 = vmatmul.mubr.bf16.vlgmr.msra.gmra.mrb[0].mxu1 %v629_v22  ;;  %v7156_v22 = vld [vmem:[#allocation7 + $0x804] ss:$16 sps:$4 sm:$0xff]  }
 0x1f7   : > { %3851 = vmatpush1.bf16.msra.mxu0 %v7058_v20  ;;  %4195 = vmatpush1.bf16.msra.mxu1 %v7061_v21  ;;  %v7148_v20 = vld [vmem:[#allocation7 + $0x7e0] ss:$16 sps:$4 sm:$0xff]   ;;  %v7151_v21 = vld [vmem:[#allocation7 + $0x7e8] ss:$16 sps:$4 sm:$0xff]  }
 0x1f8   : > { %3852 = vmatprep.subr.bf16.mxu0 %v7066_v25  ;;  %4196 = vmatprep.subr.bf16.mxu1 %v7069_v26  ;;  %v7159_v25 = vld [vmem:[#allocation7 + $0x80c] ss:$16 sps:$4 sm:$0xff]   ;;  %v7154_v26 = vld [vmem:[#allocation7 + $0x800] ss:$16 sps:$4 sm:$0xff]  }
 0x1f9   : > { %3882 = vmatprep.mubr.bf16.mxu0 %v632_v27  ;;  %4226 = vmatprep.mubr.bf16.mxu1 %v632_v27  ;;  %v7157_v27 = vld [vmem:[#allocation7 + $0x808] ss:$16 sps:$4 sm:$0xff]  }
 0x1fb   : > { %3853 = vmatpush1.bf16.msra.mxu0 %v7064_v28  ;;  %4197 = vmatpush1.bf16.msra.mxu1 %v7067_v29  ;;  %v631_v28 = vpack.c.bf16 %v615_v24, %v599_v23  ;;  %v602_v29 = vld [vmem:[%s8469_s28 + $0x48] sm:$0xff]  ;;  %v7246_v24 = vld [vmem:[#allocation7 + $0x9e4] ss:$16 sps:$4 sm:$0xff]  }
 0x1fc   : > { %3854 = vmatprep.subr.bf16.mxu0 %v7072_v30  ;;  %4198 = vmatprep.subr.bf16.mxu1 %v7075_v31  ;;  %v618_v30 = vld [vmem:[%s8469_s28 + $0xc8] sm:$0xff]  ;;  %v7162_v31 = vld [vmem:[#allocation7 + $0x824] ss:$16 sps:$4 sm:$0xff]  }
 0x1fd   : > { %v7241_v23 = vld [vmem:[#allocation7 + $0x9c8] ss:$16 sps:$4 sm:$0xff]  }
 0x1ff   : > { %3855 = vmatpush1.bf16.msra.mxu0 %v7070_v32  ;;  %4199 = vmatpush1.bf16.msra.mxu1 %v7073_v33  ;;  %v7165_v32 = vld [vmem:[#allocation7 + $0x82c] ss:$16 sps:$4 sm:$0xff]   ;;  %v634_v33 = vpack.c.bf16 %v618_v30, %v602_v29  ;;  %v601_v30 = vld [vmem:[%s8469_s28 + $0x40] sm:$0xff] }
 0x200   : > { %3856 = vmatprep.subr.bf16.mxu0 %v7078_v34  ;;  %4200 = vmatprep.subr.bf16.mxu1 %v7081_v35  ;;  %v7160_v34 = vld [vmem:[#allocation7 + $0x820] ss:$16 sps:$4 sm:$0xff]   ;;  %v7163_v35 = vld [vmem:[#allocation7 + $0x828] ss:$16 sps:$4 sm:$0xff]   ;;  %v7255_v29 = vld [vmem:[#allocation7 + $0xa0c] ss:$16 sps:$4 sm:$0xff]  }
 0x203   : > { %3857 = vmatpush1.bf16.msra.mxu0 %v7076_v36  ;;  %4201 = vmatpush1.bf16.msra.mxu1 %v7079_v37  ;;  %v7168_v36 = vld [vmem:[#allocation7 + $0x844] ss:$16 sps:$4 sm:$0xff]   ;;  %v7171_v37 = vld [vmem:[#allocation7 + $0x84c] ss:$16 sps:$4 sm:$0xff]  }
 0x204   : > { %3858 = vmatprep.subr.bf16.mxu0 %v7084_v38  ;;  %4202 = vmatprep.subr.bf16.mxu1 %v7087_v39  ;;  %v7166_v38 = vld [vmem:[#allocation7 + $0x840] ss:$16 sps:$4 sm:$0xff]   ;;  %v7169_v39 = vld [vmem:[#allocation7 + $0x848] ss:$16 sps:$4 sm:$0xff]  }
 0x207   : > { %3859 = vmatpush1.bf16.msra.mxu0 %v7082_v40  ;;  %4203 = vmatpush1.bf16.msra.mxu1 %v7085_v41  ;;  %v7174_v40 = vld [vmem:[#allocation7 + $0x864] ss:$16 sps:$4 sm:$0xff]   ;;  %v7177_v41 = vld [vmem:[#allocation7 + $0x86c] ss:$16 sps:$4 sm:$0xff]  }
 0x208   : > { %3860 = vmatprep.subr.bf16.mxu0 %v7090_v42  ;;  %4204 = vmatprep.subr.bf16.mxu1 %v7093_v43  ;;  %v7172_v42 = vld [vmem:[#allocation7 + $0x860] ss:$16 sps:$4 sm:$0xff]   ;;  %v7175_v43 = vld [vmem:[#allocation7 + $0x868] ss:$16 sps:$4 sm:$0xff]  }
 0x20b   : > { %3861 = vmatpush1.bf16.msra.mxu0 %v7088_v44  ;;  %4205 = vmatpush1.bf16.msra.mxu1 %v7091_v45  ;;  %v7180_v44 = vld [vmem:[#allocation7 + $0x884] ss:$16 sps:$4 sm:$0xff]   ;;  %v7183_v45 = vld [vmem:[#allocation7 + $0x88c] ss:$16 sps:$4 sm:$0xff]  }
 0x20c   : > { %3862 = vmatprep.subr.bf16.mxu0 %v7096_v46  ;;  %4206 = vmatprep.subr.bf16.mxu1 %v7099_v47  ;;  %v7178_v46 = vld [vmem:[#allocation7 + $0x880] ss:$16 sps:$4 sm:$0xff]   ;;  %v7181_v47 = vld [vmem:[#allocation7 + $0x888] ss:$16 sps:$4 sm:$0xff]  }
 0x20f   : > { %3863 = vmatpush1.bf16.msra.mxu0 %v7094_v48  ;;  %4207 = vmatpush1.bf16.msra.mxu1 %v7097_v49  ;;  %v7186_v48 = vld [vmem:[#allocation7 + $0x8a4] ss:$16 sps:$4 sm:$0xff]   ;;  %v7189_v49 = vld [vmem:[#allocation7 + $0x8ac] ss:$16 sps:$4 sm:$0xff]  }
 0x210   : > { %3864 = vmatprep.subr.bf16.mxu0 %v7102_v50  ;;  %4208 = vmatprep.subr.bf16.mxu1 %v7105_v51  ;;  %v7184_v50 = vld [vmem:[#allocation7 + $0x8a0] ss:$16 sps:$4 sm:$0xff]   ;;  %v7187_v51 = vld [vmem:[#allocation7 + $0x8a8] ss:$16 sps:$4 sm:$0xff]  }
 0x213   : > { %3865 = vmatpush1.bf16.msra.mxu0 %v7100_v52  ;;  %4209 = vmatpush1.bf16.msra.mxu1 %v7103_v53  ;;  %v7192_v52 = vld [vmem:[#allocation7 + $0x8c4] ss:$16 sps:$4 sm:$0xff]   ;;  %v7195_v53 = vld [vmem:[#allocation7 + $0x8cc] ss:$16 sps:$4 sm:$0xff]  }
 0x214   : > { %3866 = vmatprep.subr.bf16.mxu0 %v7108_v54  ;;  %4210 = vmatprep.subr.bf16.mxu1 %v7111_v55  ;;  %v7190_v54 = vld [vmem:[#allocation7 + $0x8c0] ss:$16 sps:$4 sm:$0xff]   ;;  %v7193_v55 = vld [vmem:[#allocation7 + $0x8c8] ss:$16 sps:$4 sm:$0xff]  }
 0x217   : > { %3867 = vmatpush1.bf16.msra.mxu0 %v7106_v56  ;;  %4211 = vmatpush1.bf16.msra.mxu1 %v7109_v57  ;;  %v7198_v56 = vld [vmem:[#allocation7 + $0x8e4] ss:$16 sps:$4 sm:$0xff]   ;;  %v7201_v57 = vld [vmem:[#allocation7 + $0x8ec] ss:$16 sps:$4 sm:$0xff]  }
 0x218   : > { %3868 = vmatprep.subr.bf16.mxu0 %v7114_v58  ;;  %4212 = vmatprep.subr.bf16.mxu1 %v7117_v59  ;;  %v7196_v58 = vld [vmem:[#allocation7 + $0x8e0] ss:$16 sps:$4 sm:$0xff]   ;;  %v7199_v59 = vld [vmem:[#allocation7 + $0x8e8] ss:$16 sps:$4 sm:$0xff]  }
 0x21b   : > { %3869 = vmatpush1.bf16.msra.mxu0 %v7112_v60  ;;  %4213 = vmatpush1.bf16.msra.mxu1 %v7115_v61  ;;  %v7204_v60 = vld [vmem:[#allocation7 + $0x904] ss:$16 sps:$4 sm:$0xff]   ;;  %v7207_v61 = vld [vmem:[#allocation7 + $0x90c] ss:$16 sps:$4 sm:$0xff]  }
 0x21c   : > { %3870 = vmatprep.subr.bf16.mxu0 %v7120_v62  ;;  %4214 = vmatprep.subr.bf16.mxu1 %v7123_v63  ;;  %v7202_v62 = vld [vmem:[#allocation7 + $0x900] ss:$16 sps:$4 sm:$0xff]   ;;  %v7205_v63 = vld [vmem:[#allocation7 + $0x908] ss:$16 sps:$4 sm:$0xff]  }
 0x21f   : > { %3871 = vmatpush1.bf16.msra.mxu0 %v7118_v0  ;;  %4215 = vmatpush1.bf16.msra.mxu1 %v7121_v1  ;;  %v7210_v0 = vld [vmem:[#allocation7 + $0x924] ss:$16 sps:$4 sm:$0xff]   ;;  %v7213_v1 = vld [vmem:[#allocation7 + $0x92c] ss:$16 sps:$4 sm:$0xff]  }
 0x220   : > { %3872 = vmatprep.subr.bf16.mxu0 %v7126_v2  ;;  %4216 = vmatprep.subr.bf16.mxu1 %v7129_v3  ;;  %v7208_v2 = vld [vmem:[#allocation7 + $0x920] ss:$16 sps:$4 sm:$0xff]   ;;  %v7211_v3 = vld [vmem:[#allocation7 + $0x928] ss:$16 sps:$4 sm:$0xff]  }
 0x223   : > { %3873 = vmatpush1.bf16.msra.mxu0 %v7124_v4  ;;  %4217 = vmatpush1.bf16.msra.mxu1 %v7127_v5  ;;  %v7216_v4 = vld [vmem:[#allocation7 + $0x944] ss:$16 sps:$4 sm:$0xff]   ;;  %v7219_v5 = vld [vmem:[#allocation7 + $0x94c] ss:$16 sps:$4 sm:$0xff]  }
 0x224   : > { %3874 = vmatprep.subr.bf16.mxu0 %v7132_v6  ;;  %4218 = vmatprep.subr.bf16.mxu1 %v7135_v7  ;;  %v7214_v6 = vld [vmem:[#allocation7 + $0x940] ss:$16 sps:$4 sm:$0xff]   ;;  %v7217_v7 = vld [vmem:[#allocation7 + $0x948] ss:$16 sps:$4 sm:$0xff]  }
 0x227   : > { %3875 = vmatpush1.bf16.msra.mxu0 %v7130_v8  ;;  %4219 = vmatpush1.bf16.msra.mxu1 %v7133_v9  ;;  %v7222_v8 = vld [vmem:[#allocation7 + $0x964] ss:$16 sps:$4 sm:$0xff]   ;;  %v7225_v9 = vld [vmem:[#allocation7 + $0x96c] ss:$16 sps:$4 sm:$0xff]  }
 0x228   : > { %3876 = vmatprep.subr.bf16.mxu0 %v7138_v10  ;;  %4220 = vmatprep.subr.bf16.mxu1 %v7141_v11  ;;  %v7220_v10 = vld [vmem:[#allocation7 + $0x960] ss:$16 sps:$4 sm:$0xff]   ;;  %v7223_v11 = vld [vmem:[#allocation7 + $0x968] ss:$16 sps:$4 sm:$0xff]  }
 0x22b   : > { %3877 = vmatpush1.bf16.msra.mxu0 %v7136_v12  ;;  %4221 = vmatpush1.bf16.msra.mxu1 %v7139_v13  ;;  %v7228_v12 = vld [vmem:[#allocation7 + $0x984] ss:$16 sps:$4 sm:$0xff]   ;;  %v7231_v13 = vld [vmem:[#allocation7 + $0x98c] ss:$16 sps:$4 sm:$0xff]  }
 0x22c   : > { %3878 = vmatprep.subr.bf16.mxu0 %v7144_v14  ;;  %4222 = vmatprep.subr.bf16.mxu1 %v7147_v15  ;;  %v7226_v14 = vld [vmem:[#allocation7 + $0x980] ss:$16 sps:$4 sm:$0xff]   ;;  %v7229_v15 = vld [vmem:[#allocation7 + $0x988] ss:$16 sps:$4 sm:$0xff]  }
 0x22f   : > { %3879 = vmatpush1.bf16.msra.mxu0 %v7142_v16  ;;  %4223 = vmatpush1.bf16.msra.mxu1 %v7145_v17  ;;  %v7234_v16 = vld [vmem:[#allocation7 + $0x9a4] ss:$16 sps:$4 sm:$0xff]   ;;  %v7237_v17 = vld [vmem:[#allocation7 + $0x9ac] ss:$16 sps:$4 sm:$0xff]  }
 0x230   : > { %3880 = vmatprep.subr.bf16.mxu0 %v7150_v18  ;;  %4224 = vmatprep.subr.bf16.mxu1 %v7153_v19  ;;  %v7232_v18 = vld [vmem:[#allocation7 + $0x9a0] ss:$16 sps:$4 sm:$0xff]   ;;  %v7235_v19 = vld [vmem:[#allocation7 + $0x9a8] ss:$16 sps:$4 sm:$0xff]  }
 0x233   : > { %3881 = vmatpush1.bf16.msra.mxu0 %v7148_v20  ;;  %4225 = vmatpush1.bf16.msra.mxu1 %v7151_v21  ;;  %v7240_v20 = vld [vmem:[#allocation7 + $0x9c4] ss:$16 sps:$4 sm:$0xff]   ;;  %v7243_v21 = vld [vmem:[#allocation7 + $0x9cc] ss:$16 sps:$4 sm:$0xff]  }
 0x234   : > { %3893 = vmatprep.subr.bf16.mxu0 %v7156_v22  ;;  %4237 = vmatprep.subr.bf16.mxu1 %v7159_v25  ;;  %v7238_v22 = vld [vmem:[#allocation7 + $0x9c0] ss:$16 sps:$4 sm:$0xff]   ;;  %v7249_v25 = vld [vmem:[#allocation7 + $0x9ec] ss:$16 sps:$4 sm:$0xff]  }
 0x236   : > { %3883 = vmatmul.mubr.bf16.vlgmr.msra.gmra.mrb[0].mxu0 %v631_v28  ;;  %4227 = vmatmul.mubr.bf16.vlgmr.msra.gmra.mrb[0].mxu1 %v631_v28  ;;  %v7252_v28 = vld [vmem:[#allocation7 + $0xa04] ss:$16 sps:$4 sm:$0xff]  }
 0x237   : > { %3894 = vmatpush1.bf16.msra.mxu0 %v7154_v26  ;;  %4238 = vmatpush1.bf16.msra.mxu1 %v7157_v27  ;;  %v7244_v26 = vld [vmem:[#allocation7 + $0x9e0] ss:$16 sps:$4 sm:$0xff]   ;;  %v7247_v27 = vld [vmem:[#allocation7 + $0x9e8] ss:$16 sps:$4 sm:$0xff]  }
 0x238   : > { %3895 = vmatprep.subr.bf16.mxu0 %v7162_v31  ;;  %4239 = vmatprep.subr.bf16.mxu1 %v7165_v32  ;;  %v617_v31 = vld [vmem:[%s8469_s28 + $0xc0] sm:$0xff]  ;;  %v604_v32 = vld [vmem:[%s8469_s28 + $0x58] sm:$0xff] }
 0x239   : > { %3925 = vmatprep.mubr.bf16.mxu0 %v634_v33  ;;  %4269 = vmatprep.mubr.bf16.mxu1 %v634_v33  ;;  %v620_v33 = vld [vmem:[%s8469_s28 + $0xd8] sm:$0xff] }
 0x23b   : > { %3896 = vmatpush1.bf16.msra.mxu0 %v7160_v34  ;;  %4240 = vmatpush1.bf16.msra.mxu1 %v7163_v35  ;;  %v633_v34 = vpack.c.bf16 %v617_v31, %v601_v30  ;;  %v7250_v35 = vld [vmem:[#allocation7 + $0xa00] ss:$16 sps:$4 sm:$0xff]   ;;  %v7342_v30 = vld [vmem:[#allocation7 + $0xbe4] ss:$16 sps:$4 sm:$0xff]   ;;  %v7345_v31 = vld [vmem:[#allocation7 + $0xbec] ss:$16 sps:$4 sm:$0xff]  }
 0x23c   : > { %3897 = vmatprep.subr.bf16.mxu0 %v7168_v36  ;;  %4241 = vmatprep.subr.bf16.mxu1 %v7171_v37  ;;  %v7253_v36 = vld [vmem:[#allocation7 + $0xa08] ss:$16 sps:$4 sm:$0xff]   ;;  %v7258_v37 = vld [vmem:[#allocation7 + $0xa24] ss:$16 sps:$4 sm:$0xff]  }
 0x23f   : > { %3898 = vmatpush1.bf16.msra.mxu0 %v7166_v38  ;;  %4242 = vmatpush1.bf16.msra.mxu1 %v7169_v39  ;;  %v7261_v38 = vld [vmem:[#allocation7 + $0xa2c] ss:$16 sps:$4 sm:$0xff]   ;;  %v636_v39 = vpack.c.bf16 %v620_v33, %v604_v32  ;;  %v7340_v32 = vld [vmem:[#allocation7 + $0xbe0] ss:$16 sps:$4 sm:$0xff]   ;;  %v7343_v33 = vld [vmem:[#allocation7 + $0xbe8] ss:$16 sps:$4 sm:$0xff]  }
 0x240   : > { %3899 = vmatprep.subr.bf16.mxu0 %v7174_v40  ;;  %4243 = vmatprep.subr.bf16.mxu1 %v7177_v41  ;;  %v7256_v40 = vld [vmem:[#allocation7 + $0xa20] ss:$16 sps:$4 sm:$0xff]   ;;  %v7259_v41 = vld [vmem:[#allocation7 + $0xa28] ss:$16 sps:$4 sm:$0xff]  }
 0x243   : > { %3900 = vmatpush1.bf16.msra.mxu0 %v7172_v42  ;;  %4244 = vmatpush1.bf16.msra.mxu1 %v7175_v43  ;;  %v7264_v42 = vld [vmem:[#allocation7 + $0xa44] ss:$16 sps:$4 sm:$0xff]   ;;  %v7267_v43 = vld [vmem:[#allocation7 + $0xa4c] ss:$16 sps:$4 sm:$0xff]  }
 0x244   : > { %3901 = vmatprep.subr.bf16.mxu0 %v7180_v44  ;;  %4245 = vmatprep.subr.bf16.mxu1 %v7183_v45  ;;  %v7262_v44 = vld [vmem:[#allocation7 + $0xa40] ss:$16 sps:$4 sm:$0xff]   ;;  %v7265_v45 = vld [vmem:[#allocation7 + $0xa48] ss:$16 sps:$4 sm:$0xff]  }
 0x247   : > { %3902 = vmatpush1.bf16.msra.mxu0 %v7178_v46  ;;  %4246 = vmatpush1.bf16.msra.mxu1 %v7181_v47  ;;  %v7270_v46 = vld [vmem:[#allocation7 + $0xa64] ss:$16 sps:$4 sm:$0xff]   ;;  %v7273_v47 = vld [vmem:[#allocation7 + $0xa6c] ss:$16 sps:$4 sm:$0xff]  }
 0x248   : > { %3903 = vmatprep.subr.bf16.mxu0 %v7186_v48  ;;  %4247 = vmatprep.subr.bf16.mxu1 %v7189_v49  ;;  %v7268_v48 = vld [vmem:[#allocation7 + $0xa60] ss:$16 sps:$4 sm:$0xff]   ;;  %v7271_v49 = vld [vmem:[#allocation7 + $0xa68] ss:$16 sps:$4 sm:$0xff]  }
 0x24b   : > { %3904 = vmatpush1.bf16.msra.mxu0 %v7184_v50  ;;  %4248 = vmatpush1.bf16.msra.mxu1 %v7187_v51  ;;  %v7276_v50 = vld [vmem:[#allocation7 + $0xa84] ss:$16 sps:$4 sm:$0xff]   ;;  %v7279_v51 = vld [vmem:[#allocation7 + $0xa8c] ss:$16 sps:$4 sm:$0xff]  }
 0x24c   : > { %3905 = vmatprep.subr.bf16.mxu0 %v7192_v52  ;;  %4249 = vmatprep.subr.bf16.mxu1 %v7195_v53  ;;  %v7274_v52 = vld [vmem:[#allocation7 + $0xa80] ss:$16 sps:$4 sm:$0xff]   ;;  %v7277_v53 = vld [vmem:[#allocation7 + $0xa88] ss:$16 sps:$4 sm:$0xff]  }
 0x24f   : > { %3906 = vmatpush1.bf16.msra.mxu0 %v7190_v54  ;;  %4250 = vmatpush1.bf16.msra.mxu1 %v7193_v55  ;;  %v7282_v54 = vld [vmem:[#allocation7 + $0xaa4] ss:$16 sps:$4 sm:$0xff]   ;;  %v7285_v55 = vld [vmem:[#allocation7 + $0xaac] ss:$16 sps:$4 sm:$0xff]  }
 0x250   : > { %3907 = vmatprep.subr.bf16.mxu0 %v7198_v56  ;;  %4251 = vmatprep.subr.bf16.mxu1 %v7201_v57  ;;  %v7280_v56 = vld [vmem:[#allocation7 + $0xaa0] ss:$16 sps:$4 sm:$0xff]   ;;  %v7283_v57 = vld [vmem:[#allocation7 + $0xaa8] ss:$16 sps:$4 sm:$0xff]  }
 0x253   : > { %3908 = vmatpush1.bf16.msra.mxu0 %v7196_v58  ;;  %4252 = vmatpush1.bf16.msra.mxu1 %v7199_v59  ;;  %v7288_v58 = vld [vmem:[#allocation7 + $0xac4] ss:$16 sps:$4 sm:$0xff]   ;;  %v7291_v59 = vld [vmem:[#allocation7 + $0xacc] ss:$16 sps:$4 sm:$0xff]  }
 0x254   : > { %3909 = vmatprep.subr.bf16.mxu0 %v7204_v60  ;;  %4253 = vmatprep.subr.bf16.mxu1 %v7207_v61  ;;  %v7286_v60 = vld [vmem:[#allocation7 + $0xac0] ss:$16 sps:$4 sm:$0xff]   ;;  %v7289_v61 = vld [vmem:[#allocation7 + $0xac8] ss:$16 sps:$4 sm:$0xff]  }
 0x257   : > { %3910 = vmatpush1.bf16.msra.mxu0 %v7202_v62  ;;  %4254 = vmatpush1.bf16.msra.mxu1 %v7205_v63  ;;  %v7294_v62 = vld [vmem:[#allocation7 + $0xae4] ss:$16 sps:$4 sm:$0xff]   ;;  %v7297_v63 = vld [vmem:[#allocation7 + $0xaec] ss:$16 sps:$4 sm:$0xff]  }
 0x258   : > { %3911 = vmatprep.subr.bf16.mxu0 %v7210_v0  ;;  %4255 = vmatprep.subr.bf16.mxu1 %v7213_v1  ;;  %v7292_v0 = vld [vmem:[#allocation7 + $0xae0] ss:$16 sps:$4 sm:$0xff]   ;;  %v7295_v1 = vld [vmem:[#allocation7 + $0xae8] ss:$16 sps:$4 sm:$0xff]  }
 0x25b   : > { %3912 = vmatpush1.bf16.msra.mxu0 %v7208_v2  ;;  %4256 = vmatpush1.bf16.msra.mxu1 %v7211_v3  ;;  %v7300_v2 = vld [vmem:[#allocation7 + $0xb04] ss:$16 sps:$4 sm:$0xff]   ;;  %v7303_v3 = vld [vmem:[#allocation7 + $0xb0c] ss:$16 sps:$4 sm:$0xff]  }
 0x25c   : > { %3913 = vmatprep.subr.bf16.mxu0 %v7216_v4  ;;  %4257 = vmatprep.subr.bf16.mxu1 %v7219_v5  ;;  %v7298_v4 = vld [vmem:[#allocation7 + $0xb00] ss:$16 sps:$4 sm:$0xff]   ;;  %v7301_v5 = vld [vmem:[#allocation7 + $0xb08] ss:$16 sps:$4 sm:$0xff]  }
 0x25f   : > { %3914 = vmatpush1.bf16.msra.mxu0 %v7214_v6  ;;  %4258 = vmatpush1.bf16.msra.mxu1 %v7217_v7  ;;  %v7306_v6 = vld [vmem:[#allocation7 + $0xb24] ss:$16 sps:$4 sm:$0xff]   ;;  %v7309_v7 = vld [vmem:[#allocation7 + $0xb2c] ss:$16 sps:$4 sm:$0xff]  }
 0x260   : > { %3915 = vmatprep.subr.bf16.mxu0 %v7222_v8  ;;  %4259 = vmatprep.subr.bf16.mxu1 %v7225_v9  ;;  %v7304_v8 = vld [vmem:[#allocation7 + $0xb20] ss:$16 sps:$4 sm:$0xff]   ;;  %v7307_v9 = vld [vmem:[#allocation7 + $0xb28] ss:$16 sps:$4 sm:$0xff]  }
 0x263   : > { %3916 = vmatpush1.bf16.msra.mxu0 %v7220_v10  ;;  %4260 = vmatpush1.bf16.msra.mxu1 %v7223_v11  ;;  %v7312_v10 = vld [vmem:[#allocation7 + $0xb44] ss:$16 sps:$4 sm:$0xff]   ;;  %v7315_v11 = vld [vmem:[#allocation7 + $0xb4c] ss:$16 sps:$4 sm:$0xff]  }
 0x264   : > { %3917 = vmatprep.subr.bf16.mxu0 %v7228_v12  ;;  %4261 = vmatprep.subr.bf16.mxu1 %v7231_v13  ;;  %v7310_v12 = vld [vmem:[#allocation7 + $0xb40] ss:$16 sps:$4 sm:$0xff]   ;;  %v7313_v13 = vld [vmem:[#allocation7 + $0xb48] ss:$16 sps:$4 sm:$0xff]  }
 0x267   : > { %3918 = vmatpush1.bf16.msra.mxu0 %v7226_v14  ;;  %4262 = vmatpush1.bf16.msra.mxu1 %v7229_v15  ;;  %v7318_v14 = vld [vmem:[#allocation7 + $0xb64] ss:$16 sps:$4 sm:$0xff]   ;;  %v7321_v15 = vld [vmem:[#allocation7 + $0xb6c] ss:$16 sps:$4 sm:$0xff]  }
 0x268   : > { %3919 = vmatprep.subr.bf16.mxu0 %v7234_v16  ;;  %4263 = vmatprep.subr.bf16.mxu1 %v7237_v17  ;;  %v7316_v16 = vld [vmem:[#allocation7 + $0xb60] ss:$16 sps:$4 sm:$0xff]   ;;  %v7319_v17 = vld [vmem:[#allocation7 + $0xb68] ss:$16 sps:$4 sm:$0xff]  }
 0x26b   : > { %3920 = vmatpush1.bf16.msra.mxu0 %v7232_v18  ;;  %4264 = vmatpush1.bf16.msra.mxu1 %v7235_v19  ;;  %v7324_v18 = vld [vmem:[#allocation7 + $0xb84] ss:$16 sps:$4 sm:$0xff]   ;;  %v7327_v19 = vld [vmem:[#allocation7 + $0xb8c] ss:$16 sps:$4 sm:$0xff]  }
 0x26c   : > { %3921 = vmatprep.subr.bf16.mxu0 %v7240_v20  ;;  %4265 = vmatprep.subr.bf16.mxu1 %v7243_v21  ;;  %v7322_v20 = vld [vmem:[#allocation7 + $0xb80] ss:$16 sps:$4 sm:$0xff]   ;;  %v7325_v21 = vld [vmem:[#allocation7 + $0xb88] ss:$16 sps:$4 sm:$0xff]  }
 0x26f   : > { %3922 = vmatpush1.bf16.msra.mxu0 %v7238_v22  ;;  %4266 = vmatpush1.bf16.msra.mxu1 %v7241_v23  ;;  %v7330_v22 = vld [vmem:[#allocation7 + $0xba4] ss:$16 sps:$4 sm:$0xff]   ;;  %v7333_v23 = vld [vmem:[#allocation7 + $0xbac] ss:$16 sps:$4 sm:$0xff]  }
 0x270   : > { %3923 = vmatprep.subr.bf16.mxu0 %v7246_v24  ;;  %4267 = vmatprep.subr.bf16.mxu1 %v7249_v25  ;;  %v7328_v24 = vld [vmem:[#allocation7 + $0xba0] ss:$16 sps:$4 sm:$0xff]   ;;  %v7331_v25 = vld [vmem:[#allocation7 + $0xba8] ss:$16 sps:$4 sm:$0xff]  }
 0x273   : > { %3924 = vmatpush1.bf16.msra.mxu0 %v7244_v26  ;;  %4268 = vmatpush1.bf16.msra.mxu1 %v7247_v27  ;;  %v7336_v26 = vld [vmem:[#allocation7 + $0xbc4] ss:$16 sps:$4 sm:$0xff]   ;;  %v7339_v27 = vld [vmem:[#allocation7 + $0xbcc] ss:$16 sps:$4 sm:$0xff]  }
 0x274   : > { %3936 = vmatprep.subr.bf16.mxu0 %v7252_v28  ;;  %4280 = vmatprep.subr.bf16.mxu1 %v7255_v29  ;;  %v7334_v28 = vld [vmem:[#allocation7 + $0xbc0] ss:$16 sps:$4 sm:$0xff]   ;;  %v7337_v29 = vld [vmem:[#allocation7 + $0xbc8] ss:$16 sps:$4 sm:$0xff]  }
 0x276   : > { %3926 = vmatmul.mubr.bf16.vlgmr.msra.gmra.mrb[0].mxu0 %v633_v34  ;;  %4270 = vmatmul.mubr.bf16.vlgmr.msra.gmra.mrb[0].mxu1 %v633_v34  ;;  %v603_v34 = vld [vmem:[%s8469_s28 + $0x50] sm:$0xff] }
 0x277   : > { %3937 = vmatpush1.bf16.msra.mxu0 %v7250_v35  ;;  %4281 = vmatpush1.bf16.msra.mxu1 %v7253_v36  ;;  %v619_v35 = vld [vmem:[%s8469_s28 + $0xd0] sm:$0xff] }
 0x278   : > { %3938 = vmatprep.subr.bf16.mxu0 %v7258_v37  ;;  %4282 = vmatprep.subr.bf16.mxu1 %v7261_v38  ;;  %v7348_v36 = vld [vmem:[#allocation7 + $0xc04] ss:$16 sps:$4 sm:$0xff]   ;;  %v7351_v37 = vld [vmem:[#allocation7 + $0xc0c] ss:$16 sps:$4 sm:$0xff]   ;;  %v7346_v38 = vld [vmem:[#allocation7 + $0xc00] ss:$16 sps:$4 sm:$0xff]  }
 0x279   : > { %3968 = vmatprep.mubr.bf16.mxu0 %v636_v39  ;;  %4312 = vmatprep.mubr.bf16.mxu1 %v636_v39  ;;  %v7349_v39 = vld [vmem:[#allocation7 + $0xc08] ss:$16 sps:$4 sm:$0xff]  }
 0x27b   : > { %3939 = vmatpush1.bf16.msra.mxu0 %v7256_v40  ;;  %4283 = vmatpush1.bf16.msra.mxu1 %v7259_v41  ;;  %v635_v40 = vpack.c.bf16 %v619_v35, %v603_v34  ;;  %v606_v41 = vld [vmem:[%s8469_s28 + $0x68] sm:$0xff]  ;;  %v7430_v34 = vld [vmem:[#allocation7 + $0xdc0] ss:$16 sps:$4 sm:$0xff]  }
 0x27c   : > { %3940 = vmatprep.subr.bf16.mxu0 %v7264_v42  ;;  %4284 = vmatprep.subr.bf16.mxu1 %v7267_v43  ;;  %v622_v42 = vld [vmem:[%s8469_s28 + $0xe8] sm:$0xff]  ;;  %v7354_v43 = vld [vmem:[#allocation7 + $0xc24] ss:$16 sps:$4 sm:$0xff]  }
 0x27d   : > { %v7433_v35 = vld [vmem:[#allocation7 + $0xdc8] ss:$16 sps:$4 sm:$0xff]  }
 0x27f   : > { %3941 = vmatpush1.bf16.msra.mxu0 %v7262_v44  ;;  %4285 = vmatpush1.bf16.msra.mxu1 %v7265_v45  ;;  %v7357_v44 = vld [vmem:[#allocation7 + $0xc2c] ss:$16 sps:$4 sm:$0xff]   ;;  %v638_v45 = vpack.c.bf16 %v622_v42, %v606_v41  ;;  %v621_v41 = vld [vmem:[%s8469_s28 + $0xe0] sm:$0xff] }
 0x280   : > { %3942 = vmatprep.subr.bf16.mxu0 %v7270_v46  ;;  %4286 = vmatprep.subr.bf16.mxu1 %v7273_v47  ;;  %v7352_v46 = vld [vmem:[#allocation7 + $0xc20] ss:$16 sps:$4 sm:$0xff]   ;;  %v7355_v47 = vld [vmem:[#allocation7 + $0xc28] ss:$16 sps:$4 sm:$0xff]   ;;  %v7444_v42 = vld [vmem:[#allocation7 + $0xe04] ss:$16 sps:$4 sm:$0xff]  }
 0x283   : > { %3943 = vmatpush1.bf16.msra.mxu0 %v7268_v48  ;;  %4287 = vmatpush1.bf16.msra.mxu1 %v7271_v49  ;;  %v7360_v48 = vld [vmem:[#allocation7 + $0xc44] ss:$16 sps:$4 sm:$0xff]   ;;  %v7363_v49 = vld [vmem:[#allocation7 + $0xc4c] ss:$16 sps:$4 sm:$0xff]  }
 0x284   : > { %3944 = vmatprep.subr.bf16.mxu0 %v7276_v50  ;;  %4288 = vmatprep.subr.bf16.mxu1 %v7279_v51  ;;  %v7358_v50 = vld [vmem:[#allocation7 + $0xc40] ss:$16 sps:$4 sm:$0xff]   ;;  %v7361_v51 = vld [vmem:[#allocation7 + $0xc48] ss:$16 sps:$4 sm:$0xff]  }
 0x287   : > { %3945 = vmatpush1.bf16.msra.mxu0 %v7274_v52  ;;  %4289 = vmatpush1.bf16.msra.mxu1 %v7277_v53  ;;  %v7366_v52 = vld [vmem:[#allocation7 + $0xc64] ss:$16 sps:$4 sm:$0xff]   ;;  %v7369_v53 = vld [vmem:[#allocation7 + $0xc6c] ss:$16 sps:$4 sm:$0xff]  }
 0x288   : > { %3946 = vmatprep.subr.bf16.mxu0 %v7282_v54  ;;  %4290 = vmatprep.subr.bf16.mxu1 %v7285_v55  ;;  %v7364_v54 = vld [vmem:[#allocation7 + $0xc60] ss:$16 sps:$4 sm:$0xff]   ;;  %v7367_v55 = vld [vmem:[#allocation7 + $0xc68] ss:$16 sps:$4 sm:$0xff]  }
 0x28b   : > { %3947 = vmatpush1.bf16.msra.mxu0 %v7280_v56  ;;  %4291 = vmatpush1.bf16.msra.mxu1 %v7283_v57  ;;  %v7372_v56 = vld [vmem:[#allocation7 + $0xc84] ss:$16 sps:$4 sm:$0xff]   ;;  %v7375_v57 = vld [vmem:[#allocation7 + $0xc8c] ss:$16 sps:$4 sm:$0xff]  }
 0x28c   : > { %3948 = vmatprep.subr.bf16.mxu0 %v7288_v58  ;;  %4292 = vmatprep.subr.bf16.mxu1 %v7291_v59  ;;  %v7370_v58 = vld [vmem:[#allocation7 + $0xc80] ss:$16 sps:$4 sm:$0xff]   ;;  %v7373_v59 = vld [vmem:[#allocation7 + $0xc88] ss:$16 sps:$4 sm:$0xff]  }
 0x28f   : > { %3949 = vmatpush1.bf16.msra.mxu0 %v7286_v60  ;;  %4293 = vmatpush1.bf16.msra.mxu1 %v7289_v61  ;;  %v7378_v60 = vld [vmem:[#allocation7 + $0xca4] ss:$16 sps:$4 sm:$0xff]   ;;  %v7381_v61 = vld [vmem:[#allocation7 + $0xcac] ss:$16 sps:$4 sm:$0xff]  }
 0x290   : > { %3950 = vmatprep.subr.bf16.mxu0 %v7294_v62  ;;  %4294 = vmatprep.subr.bf16.mxu1 %v7297_v63  ;;  %v7376_v62 = vld [vmem:[#allocation7 + $0xca0] ss:$16 sps:$4 sm:$0xff]   ;;  %v7379_v63 = vld [vmem:[#allocation7 + $0xca8] ss:$16 sps:$4 sm:$0xff]  }
 0x293   : > { %3951 = vmatpush1.bf16.msra.mxu0 %v7292_v0  ;;  %4295 = vmatpush1.bf16.msra.mxu1 %v7295_v1  ;;  %v7384_v0 = vld [vmem:[#allocation7 + $0xcc4] ss:$16 sps:$4 sm:$0xff]   ;;  %v7387_v1 = vld [vmem:[#allocation7 + $0xccc] ss:$16 sps:$4 sm:$0xff]  }
 0x294   : > { %3952 = vmatprep.subr.bf16.mxu0 %v7300_v2  ;;  %4296 = vmatprep.subr.bf16.mxu1 %v7303_v3  ;;  %v7382_v2 = vld [vmem:[#allocation7 + $0xcc0] ss:$16 sps:$4 sm:$0xff]   ;;  %v7385_v3 = vld [vmem:[#allocation7 + $0xcc8] ss:$16 sps:$4 sm:$0xff]  }
 0x297   : > { %3953 = vmatpush1.bf16.msra.mxu0 %v7298_v4  ;;  %4297 = vmatpush1.bf16.msra.mxu1 %v7301_v5  ;;  %v7390_v4 = vld [vmem:[#allocation7 + $0xce4] ss:$16 sps:$4 sm:$0xff]   ;;  %v7393_v5 = vld [vmem:[#allocation7 + $0xcec] ss:$16 sps:$4 sm:$0xff]  }
 0x298   : > { %3954 = vmatprep.subr.bf16.mxu0 %v7306_v6  ;;  %4298 = vmatprep.subr.bf16.mxu1 %v7309_v7  ;;  %v7388_v6 = vld [vmem:[#allocation7 + $0xce0] ss:$16 sps:$4 sm:$0xff]   ;;  %v7391_v7 = vld [vmem:[#allocation7 + $0xce8] ss:$16 sps:$4 sm:$0xff]  }
 0x29b   : > { %3955 = vmatpush1.bf16.msra.mxu0 %v7304_v8  ;;  %4299 = vmatpush1.bf16.msra.mxu1 %v7307_v9  ;;  %v7396_v8 = vld [vmem:[#allocation7 + $0xd04] ss:$16 sps:$4 sm:$0xff]   ;;  %v7399_v9 = vld [vmem:[#allocation7 + $0xd0c] ss:$16 sps:$4 sm:$0xff]  }
 0x29c   : > { %3956 = vmatprep.subr.bf16.mxu0 %v7312_v10  ;;  %4300 = vmatprep.subr.bf16.mxu1 %v7315_v11  ;;  %v7394_v10 = vld [vmem:[#allocation7 + $0xd00] ss:$16 sps:$4 sm:$0xff]   ;;  %v7397_v11 = vld [vmem:[#allocation7 + $0xd08] ss:$16 sps:$4 sm:$0xff]  }
 0x29f   : > { %3957 = vmatpush1.bf16.msra.mxu0 %v7310_v12  ;;  %4301 = vmatpush1.bf16.msra.mxu1 %v7313_v13  ;;  %v7402_v12 = vld [vmem:[#allocation7 + $0xd24] ss:$16 sps:$4 sm:$0xff]   ;;  %v7405_v13 = vld [vmem:[#allocation7 + $0xd2c] ss:$16 sps:$4 sm:$0xff]  }
 0x2a0   : > { %3958 = vmatprep.subr.bf16.mxu0 %v7318_v14  ;;  %4302 = vmatprep.subr.bf16.mxu1 %v7321_v15  ;;  %v7400_v14 = vld [vmem:[#allocation7 + $0xd20] ss:$16 sps:$4 sm:$0xff]   ;;  %v7403_v15 = vld [vmem:[#allocation7 + $0xd28] ss:$16 sps:$4 sm:$0xff]  }
 0x2a3   : > { %3959 = vmatpush1.bf16.msra.mxu0 %v7316_v16  ;;  %4303 = vmatpush1.bf16.msra.mxu1 %v7319_v17  ;;  %v7408_v16 = vld [vmem:[#allocation7 + $0xd44] ss:$16 sps:$4 sm:$0xff]   ;;  %v7411_v17 = vld [vmem:[#allocation7 + $0xd4c] ss:$16 sps:$4 sm:$0xff]  }
 0x2a4   : > { %3960 = vmatprep.subr.bf16.mxu0 %v7324_v18  ;;  %4304 = vmatprep.subr.bf16.mxu1 %v7327_v19  ;;  %v7406_v18 = vld [vmem:[#allocation7 + $0xd40] ss:$16 sps:$4 sm:$0xff]   ;;  %v7409_v19 = vld [vmem:[#allocation7 + $0xd48] ss:$16 sps:$4 sm:$0xff]  }
 0x2a7   : > { %3961 = vmatpush1.bf16.msra.mxu0 %v7322_v20  ;;  %4305 = vmatpush1.bf16.msra.mxu1 %v7325_v21  ;;  %v7414_v20 = vld [vmem:[#allocation7 + $0xd64] ss:$16 sps:$4 sm:$0xff]   ;;  %v7417_v21 = vld [vmem:[#allocation7 + $0xd6c] ss:$16 sps:$4 sm:$0xff]  }
 0x2a8   : > { %3962 = vmatprep.subr.bf16.mxu0 %v7330_v22  ;;  %4306 = vmatprep.subr.bf16.mxu1 %v7333_v23  ;;  %v7412_v22 = vld [vmem:[#allocation7 + $0xd60] ss:$16 sps:$4 sm:$0xff]   ;;  %v7415_v23 = vld [vmem:[#allocation7 + $0xd68] ss:$16 sps:$4 sm:$0xff]  }
 0x2ab   : > { %3963 = vmatpush1.bf16.msra.mxu0 %v7328_v24  ;;  %4307 = vmatpush1.bf16.msra.mxu1 %v7331_v25  ;;  %v7420_v24 = vld [vmem:[#allocation7 + $0xd84] ss:$16 sps:$4 sm:$0xff]   ;;  %v7423_v25 = vld [vmem:[#allocation7 + $0xd8c] ss:$16 sps:$4 sm:$0xff]  }
 0x2ac   : > { %3964 = vmatprep.subr.bf16.mxu0 %v7336_v26  ;;  %4308 = vmatprep.subr.bf16.mxu1 %v7339_v27  ;;  %v7418_v26 = vld [vmem:[#allocation7 + $0xd80] ss:$16 sps:$4 sm:$0xff]   ;;  %v7421_v27 = vld [vmem:[#allocation7 + $0xd88] ss:$16 sps:$4 sm:$0xff]  }
 0x2af   : > { %3965 = vmatpush1.bf16.msra.mxu0 %v7334_v28  ;;  %4309 = vmatpush1.bf16.msra.mxu1 %v7337_v29  ;;  %v7426_v28 = vld [vmem:[#allocation7 + $0xda4] ss:$16 sps:$4 sm:$0xff]   ;;  %v7429_v29 = vld [vmem:[#allocation7 + $0xdac] ss:$16 sps:$4 sm:$0xff]  }
 0x2b0   : > { %3966 = vmatprep.subr.bf16.mxu0 %v7342_v30  ;;  %4310 = vmatprep.subr.bf16.mxu1 %v7345_v31  ;;  %v7424_v30 = vld [vmem:[#allocation7 + $0xda0] ss:$16 sps:$4 sm:$0xff]   ;;  %v7427_v31 = vld [vmem:[#allocation7 + $0xda8] ss:$16 sps:$4 sm:$0xff]  }
 0x2b3   : > { %3967 = vmatpush1.bf16.msra.mxu0 %v7340_v32  ;;  %4311 = vmatpush1.bf16.msra.mxu1 %v7343_v33  ;;  %v7432_v32 = vld [vmem:[#allocation7 + $0xdc4] ss:$16 sps:$4 sm:$0xff]   ;;  %v7435_v33 = vld [vmem:[#allocation7 + $0xdcc] ss:$16 sps:$4 sm:$0xff]  }
 0x2b4   : > { %3979 = vmatprep.subr.bf16.mxu0 %v7348_v36  ;;  %4323 = vmatprep.subr.bf16.mxu1 %v7351_v37  ;;  %v7438_v36 = vld [vmem:[#allocation7 + $0xde4] ss:$16 sps:$4 sm:$0xff]   ;;  %v7441_v37 = vld [vmem:[#allocation7 + $0xdec] ss:$16 sps:$4 sm:$0xff]  }
 0x2b6   : > { %3969 = vmatmul.mubr.bf16.vlgmr.msra.gmra.mrb[0].mxu0 %v635_v40  ;;  %4313 = vmatmul.mubr.bf16.vlgmr.msra.gmra.mrb[0].mxu1 %v635_v40  ;;  %v605_v40 = vld [vmem:[%s8469_s28 + $0x60] sm:$0xff] }
 0x2b7   : > { %3980 = vmatpush1.bf16.msra.mxu0 %v7346_v38  ;;  %4324 = vmatpush1.bf16.msra.mxu1 %v7349_v39  ;;  %v7436_v38 = vld [vmem:[#allocation7 + $0xde0] ss:$16 sps:$4 sm:$0xff]   ;;  %v7439_v39 = vld [vmem:[#allocation7 + $0xde8] ss:$16 sps:$4 sm:$0xff]  }
 0x2b8   : > { %3981 = vmatprep.subr.bf16.mxu0 %v7354_v43  ;;  %4325 = vmatprep.subr.bf16.mxu1 %v7357_v44  ;;  %v7447_v43 = vld [vmem:[#allocation7 + $0xe0c] ss:$16 sps:$4 sm:$0xff]   ;;  %v637_v44 = vpack.c.bf16 %v621_v41, %v605_v40  ;;  %v7526_v40 = vld [vmem:[#allocation7 + $0xfc0] ss:$16 sps:$4 sm:$0xff]   ;;  %v7529_v41 = vld [vmem:[#allocation7 + $0xfc8] ss:$16 sps:$4 sm:$0xff]  }
 0x2b9   : > { %4011 = vmatprep.mubr.bf16.mxu0 %v638_v45  ;;  %4355 = vmatprep.mubr.bf16.mxu1 %v638_v45  ;;  %v608_v45 = vld [vmem:[%s8469_s28 + $0x78] sm:$0xff] }
 0x2bb   : > { %3982 = vmatpush1.bf16.msra.mxu0 %v7352_v46  ;;  %4326 = vmatpush1.bf16.msra.mxu1 %v7355_v47  ;;  %v624_v46 = vld [vmem:[%s8469_s28 + $0xf8] sm:$0xff]  ;;  %v7442_v47 = vld [vmem:[#allocation7 + $0xe00] ss:$16 sps:$4 sm:$0xff]  }
 0x2bc   : > { %3983 = vmatprep.subr.bf16.mxu0 %v7360_v48  ;;  %4327 = vmatprep.subr.bf16.mxu1 %v7363_v49  ;;  %v7445_v48 = vld [vmem:[#allocation7 + $0xe08] ss:$16 sps:$4 sm:$0xff]   ;;  %v7450_v49 = vld [vmem:[#allocation7 + $0xe24] ss:$16 sps:$4 sm:$0xff]  }
 0x2bf   : > { %3984 = vmatpush1.bf16.msra.mxu0 %v7358_v50  ;;  %4328 = vmatpush1.bf16.msra.mxu1 %v7361_v51  ;;  %v7453_v50 = vld [vmem:[#allocation7 + $0xe2c] ss:$16 sps:$4 sm:$0xff]   ;;  %v640_v51 = vpack.c.bf16 %v624_v46, %v608_v45  ;;  %v7535_v45 = vld [vmem:[#allocation7 + $0xfe8] ss:$16 sps:$4 sm:$0xff]   ;;  %v607_v46 = vld [vmem:[%s8469_s28 + $0x70] sm:$0xff] }
 0x2c0   : > { %3985 = vmatprep.subr.bf16.mxu0 %v7366_v52  ;;  %4329 = vmatprep.subr.bf16.mxu1 %v7369_v53  ;;  %v7448_v52 = vld [vmem:[#allocation7 + $0xe20] ss:$16 sps:$4 sm:$0xff]   ;;  %v7451_v53 = vld [vmem:[#allocation7 + $0xe28] ss:$16 sps:$4 sm:$0xff]  }
 0x2c3   : > { %3986 = vmatpush1.bf16.msra.mxu0 %v7364_v54  ;;  %4330 = vmatpush1.bf16.msra.mxu1 %v7367_v55  ;;  %v7456_v54 = vld [vmem:[#allocation7 + $0xe44] ss:$16 sps:$4 sm:$0xff]   ;;  %v7459_v55 = vld [vmem:[#allocation7 + $0xe4c] ss:$16 sps:$4 sm:$0xff]  }
 0x2c4   : > { %3987 = vmatprep.subr.bf16.mxu0 %v7372_v56  ;;  %4331 = vmatprep.subr.bf16.mxu1 %v7375_v57  ;;  %v7454_v56 = vld [vmem:[#allocation7 + $0xe40] ss:$16 sps:$4 sm:$0xff]   ;;  %v7457_v57 = vld [vmem:[#allocation7 + $0xe48] ss:$16 sps:$4 sm:$0xff]  }
 0x2c7   : > { %3988 = vmatpush1.bf16.msra.mxu0 %v7370_v58  ;;  %4332 = vmatpush1.bf16.msra.mxu1 %v7373_v59  ;;  %v7462_v58 = vld [vmem:[#allocation7 + $0xe64] ss:$16 sps:$4 sm:$0xff]   ;;  %v7465_v59 = vld [vmem:[#allocation7 + $0xe6c] ss:$16 sps:$4 sm:$0xff]  }
 0x2c8   : > { %3989 = vmatprep.subr.bf16.mxu0 %v7378_v60  ;;  %4333 = vmatprep.subr.bf16.mxu1 %v7381_v61  ;;  %v7460_v60 = vld [vmem:[#allocation7 + $0xe60] ss:$16 sps:$4 sm:$0xff]   ;;  %v7463_v61 = vld [vmem:[#allocation7 + $0xe68] ss:$16 sps:$4 sm:$0xff]  }
 0x2cb   : > { %3990 = vmatpush1.bf16.msra.mxu0 %v7376_v62  ;;  %4334 = vmatpush1.bf16.msra.mxu1 %v7379_v63  ;;  %v7468_v62 = vld [vmem:[#allocation7 + $0xe84] ss:$16 sps:$4 sm:$0xff]   ;;  %v7471_v63 = vld [vmem:[#allocation7 + $0xe8c] ss:$16 sps:$4 sm:$0xff]  }
 0x2cc   : > { %3991 = vmatprep.subr.bf16.mxu0 %v7384_v0  ;;  %4335 = vmatprep.subr.bf16.mxu1 %v7387_v1  ;;  %v7466_v0 = vld [vmem:[#allocation7 + $0xe80] ss:$16 sps:$4 sm:$0xff]   ;;  %v7469_v1 = vld [vmem:[#allocation7 + $0xe88] ss:$16 sps:$4 sm:$0xff]  }
 0x2cf   : > { %3992 = vmatpush1.bf16.msra.mxu0 %v7382_v2  ;;  %4336 = vmatpush1.bf16.msra.mxu1 %v7385_v3  ;;  %v7474_v2 = vld [vmem:[#allocation7 + $0xea4] ss:$16 sps:$4 sm:$0xff]   ;;  %v7477_v3 = vld [vmem:[#allocation7 + $0xeac] ss:$16 sps:$4 sm:$0xff]  }
 0x2d0   : > { %3993 = vmatprep.subr.bf16.mxu0 %v7390_v4  ;;  %4337 = vmatprep.subr.bf16.mxu1 %v7393_v5  ;;  %v7472_v4 = vld [vmem:[#allocation7 + $0xea0] ss:$16 sps:$4 sm:$0xff]   ;;  %v7475_v5 = vld [vmem:[#allocation7 + $0xea8] ss:$16 sps:$4 sm:$0xff]  }
 0x2d3   : > { %3994 = vmatpush1.bf16.msra.mxu0 %v7388_v6  ;;  %4338 = vmatpush1.bf16.msra.mxu1 %v7391_v7  ;;  %v7480_v6 = vld [vmem:[#allocation7 + $0xec4] ss:$16 sps:$4 sm:$0xff]   ;;  %v7483_v7 = vld [vmem:[#allocation7 + $0xecc] ss:$16 sps:$4 sm:$0xff]  }
 0x2d4   : > { %3995 = vmatprep.subr.bf16.mxu0 %v7396_v8  ;;  %4339 = vmatprep.subr.bf16.mxu1 %v7399_v9  ;;  %v7478_v8 = vld [vmem:[#allocation7 + $0xec0] ss:$16 sps:$4 sm:$0xff]   ;;  %v7481_v9 = vld [vmem:[#allocation7 + $0xec8] ss:$16 sps:$4 sm:$0xff]  }
 0x2d7   : > { %3996 = vmatpush1.bf16.msra.mxu0 %v7394_v10  ;;  %4340 = vmatpush1.bf16.msra.mxu1 %v7397_v11  ;;  %v7486_v10 = vld [vmem:[#allocation7 + $0xee4] ss:$16 sps:$4 sm:$0xff]   ;;  %v7489_v11 = vld [vmem:[#allocation7 + $0xeec] ss:$16 sps:$4 sm:$0xff]  }
 0x2d8   : > { %3997 = vmatprep.subr.bf16.mxu0 %v7402_v12  ;;  %4341 = vmatprep.subr.bf16.mxu1 %v7405_v13  ;;  %v7484_v12 = vld [vmem:[#allocation7 + $0xee0] ss:$16 sps:$4 sm:$0xff]   ;;  %v7487_v13 = vld [vmem:[#allocation7 + $0xee8] ss:$16 sps:$4 sm:$0xff]  }
 0x2db   : > { %3998 = vmatpush1.bf16.msra.mxu0 %v7400_v14  ;;  %4342 = vmatpush1.bf16.msra.mxu1 %v7403_v15  ;;  %v7492_v14 = vld [vmem:[#allocation7 + $0xf04] ss:$16 sps:$4 sm:$0xff]   ;;  %v7495_v15 = vld [vmem:[#allocation7 + $0xf0c] ss:$16 sps:$4 sm:$0xff]  }
 0x2dc   : > { %3999 = vmatprep.subr.bf16.mxu0 %v7408_v16  ;;  %4343 = vmatprep.subr.bf16.mxu1 %v7411_v17  ;;  %v7490_v16 = vld [vmem:[#allocation7 + $0xf00] ss:$16 sps:$4 sm:$0xff]   ;;  %v7493_v17 = vld [vmem:[#allocation7 + $0xf08] ss:$16 sps:$4 sm:$0xff]  }
 0x2df   : > { %4000 = vmatpush1.bf16.msra.mxu0 %v7406_v18  ;;  %4344 = vmatpush1.bf16.msra.mxu1 %v7409_v19  ;;  %v7498_v18 = vld [vmem:[#allocation7 + $0xf24] ss:$16 sps:$4 sm:$0xff]   ;;  %v7501_v19 = vld [vmem:[#allocation7 + $0xf2c] ss:$16 sps:$4 sm:$0xff]  }
 0x2e0   : > { %4001 = vmatprep.subr.bf16.mxu0 %v7414_v20  ;;  %4345 = vmatprep.subr.bf16.mxu1 %v7417_v21  ;;  %v7496_v20 = vld [vmem:[#allocation7 + $0xf20] ss:$16 sps:$4 sm:$0xff]   ;;  %v7499_v21 = vld [vmem:[#allocation7 + $0xf28] ss:$16 sps:$4 sm:$0xff]  }
 0x2e3   : > { %4002 = vmatpush1.bf16.msra.mxu0 %v7412_v22  ;;  %4346 = vmatpush1.bf16.msra.mxu1 %v7415_v23  ;;  %v7504_v22 = vld [vmem:[#allocation7 + $0xf44] ss:$16 sps:$4 sm:$0xff]   ;;  %v7507_v23 = vld [vmem:[#allocation7 + $0xf4c] ss:$16 sps:$4 sm:$0xff]  }
 0x2e4   : > { %4003 = vmatprep.subr.bf16.mxu0 %v7420_v24  ;;  %4347 = vmatprep.subr.bf16.mxu1 %v7423_v25  ;;  %v7502_v24 = vld [vmem:[#allocation7 + $0xf40] ss:$16 sps:$4 sm:$0xff]   ;;  %v7505_v25 = vld [vmem:[#allocation7 + $0xf48] ss:$16 sps:$4 sm:$0xff]  }
 0x2e7   : > { %4004 = vmatpush1.bf16.msra.mxu0 %v7418_v26  ;;  %4348 = vmatpush1.bf16.msra.mxu1 %v7421_v27  ;;  %v7510_v26 = vld [vmem:[#allocation7 + $0xf64] ss:$16 sps:$4 sm:$0xff]   ;;  %v7513_v27 = vld [vmem:[#allocation7 + $0xf6c] ss:$16 sps:$4 sm:$0xff]  }
 0x2e8   : > { %4005 = vmatprep.subr.bf16.mxu0 %v7426_v28  ;;  %4349 = vmatprep.subr.bf16.mxu1 %v7429_v29  ;;  %v7508_v28 = vld [vmem:[#allocation7 + $0xf60] ss:$16 sps:$4 sm:$0xff]   ;;  %v7511_v29 = vld [vmem:[#allocation7 + $0xf68] ss:$16 sps:$4 sm:$0xff]  }
 0x2eb   : > { %4006 = vmatpush1.bf16.msra.mxu0 %v7424_v30  ;;  %4350 = vmatpush1.bf16.msra.mxu1 %v7427_v31  ;;  %v7516_v30 = vld [vmem:[#allocation7 + $0xf84] ss:$16 sps:$4 sm:$0xff]   ;;  %v7519_v31 = vld [vmem:[#allocation7 + $0xf8c] ss:$16 sps:$4 sm:$0xff]  }
 0x2ec   : > { %4007 = vmatprep.subr.bf16.mxu0 %v7432_v32  ;;  %4351 = vmatprep.subr.bf16.mxu1 %v7435_v33  ;;  %v7514_v32 = vld [vmem:[#allocation7 + $0xf80] ss:$16 sps:$4 sm:$0xff]   ;;  %v7517_v33 = vld [vmem:[#allocation7 + $0xf88] ss:$16 sps:$4 sm:$0xff]  }
 0x2ef   : > { %4008 = vmatpush1.bf16.msra.mxu0 %v7430_v34  ;;  %4352 = vmatpush1.bf16.msra.mxu1 %v7433_v35  ;;  %v7522_v34 = vld [vmem:[#allocation7 + $0xfa4] ss:$16 sps:$4 sm:$0xff]   ;;  %v7525_v35 = vld [vmem:[#allocation7 + $0xfac] ss:$16 sps:$4 sm:$0xff]  }
 0x2f0   : > { %4009 = vmatprep.subr.bf16.mxu0 %v7438_v36  ;;  %4353 = vmatprep.subr.bf16.mxu1 %v7441_v37  ;;  %v7520_v36 = vld [vmem:[#allocation7 + $0xfa0] ss:$16 sps:$4 sm:$0xff]   ;;  %v7523_v37 = vld [vmem:[#allocation7 + $0xfa8] ss:$16 sps:$4 sm:$0xff]  }
 0x2f3   : > { %4010 = vmatpush1.bf16.msra.mxu0 %v7436_v38  ;;  %4354 = vmatpush1.bf16.msra.mxu1 %v7439_v39  ;;  %v7528_v38 = vld [vmem:[#allocation7 + $0xfc4] ss:$16 sps:$4 sm:$0xff]   ;;  %v7531_v39 = vld [vmem:[#allocation7 + $0xfcc] ss:$16 sps:$4 sm:$0xff]  }
 0x2f4   : > { %4022 = vmatprep.subr.bf16.mxu0 %v7444_v42  ;;  %4366 = vmatprep.subr.bf16.mxu1 %v7447_v43  ;;  %v7534_v42 = vld [vmem:[#allocation7 + $0xfe4] ss:$16 sps:$4 sm:$0xff]   ;;  %v7537_v43 = vld [vmem:[#allocation7 + $0xfec] ss:$16 sps:$4 sm:$0xff]  }
 0x2f6   : > { %4012 = vmatmul.mubr.bf16.vlgmr.msra.gmra.mrb[0].mxu0 %v637_v44  ;;  %4356 = vmatmul.mubr.bf16.vlgmr.msra.gmra.mrb[0].mxu1 %v637_v44  ;;  %v7532_v44 = vld [vmem:[#allocation7 + $0xfe0] ss:$16 sps:$4 sm:$0xff]  }
 0x2f7   : > { %4023 = vmatpush1.bf16.msra.mxu0 %v7442_v47  ;;  %4367 = vmatpush1.bf16.msra.mxu1 %v7445_v48  ;;  %v623_v47 = vld [vmem:[%s8469_s28 + $0xf0] sm:$0xff]  ;;  %v7538_v48 = vld [vmem:[#allocation10 + $0x40] sm:$0xff]  }
 0x2f8   : > { %4024 = vmatprep.subr.bf16.mxu0 %v7450_v49  ;;  %4368 = vmatprep.subr.bf16.mxu1 %v7453_v50  ;;  %v7539_v49 = vld [vmem:[#allocation10 + $0xc0] sm:$0xff]   ;;  %v639_v50 = vpack.c.bf16 %v623_v47, %v607_v46 }
 0x2f9   : > { %4054 = vmatprep.mubr.bf16.mxu0 %v640_v51  ;;  %4398 = vmatprep.mubr.bf16.mxu1 %v640_v51  ;;  %v7540_v51 = vld [vmem:[#allocation10] sm:$0xff]  }
 0x2fb   : > { %4025 = vmatpush1.bf16.msra.mxu0 %v7448_v52  ;;  %4369 = vmatpush1.bf16.msra.mxu1 %v7451_v53  ;;  %v7541_v52 = vld [vmem:[#allocation10 + $0x80] sm:$0xff]   ;;  %v7542_v53 = vld [vmem:[#allocation10 + $0x48] sm:$0xff]  }
 0x2fc   : > { %4026 = vmatprep.subr.bf16.mxu0 %v7456_v54  ;;  %4370 = vmatprep.subr.bf16.mxu1 %v7459_v55  ;;  %v7543_v54 = vld [vmem:[#allocation10 + $0xc8] sm:$0xff]  }
 0x2fd   : > { %v7544_v55 = vld [vmem:[#allocation10 + $0x8] sm:$0xff]  }
 0x2ff   : > { %4027 = vmatpush1.bf16.msra.mxu0 %v7454_v56  ;;  %4371 = vmatpush1.bf16.msra.mxu1 %v7457_v57  ;;  %v7545_v56 = vld [vmem:[#allocation10 + $0x88] sm:$0xff]   ;;  %v7546_v57 = vld [vmem:[#allocation10 + $0x50] sm:$0xff]  }
 0x300   : > { %4028 = vmatprep.subr.bf16.mxu0 %v7462_v58  ;;  %4372 = vmatprep.subr.bf16.mxu1 %v7465_v59  ;;  %v7547_v58 = vld [vmem:[#allocation10 + $0xd0] sm:$0xff]  }
 0x301   : > { %v7548_v59 = vld [vmem:[#allocation10 + $0x10] sm:$0xff]  }
 0x303   : > { %4029 = vmatpush1.bf16.msra.mxu0 %v7460_v60  ;;  %4373 = vmatpush1.bf16.msra.mxu1 %v7463_v61  ;;  %v7549_v60 = vld [vmem:[#allocation10 + $0x90] sm:$0xff]   ;;  %v7550_v61 = vld [vmem:[#allocation10 + $0x58] sm:$0xff]  }
 0x304   : > { %4030 = vmatprep.subr.bf16.mxu0 %v7468_v62  ;;  %4374 = vmatprep.subr.bf16.mxu1 %v7471_v63  ;;  %v7551_v62 = vld [vmem:[#allocation10 + $0xd8] sm:$0xff]  }
 0x305   : > { %v7552_v63 = vld [vmem:[#allocation10 + $0x18] sm:$0xff]  }
 0x307   : > { %4031 = vmatpush1.bf16.msra.mxu0 %v7466_v0  ;;  %4375 = vmatpush1.bf16.msra.mxu1 %v7469_v1  ;;  %v7553_v0 = vld [vmem:[#allocation10 + $0x98] sm:$0xff]   ;;  %v7554_v1 = vld [vmem:[#allocation10 + $0x60] sm:$0xff]  }
 0x308   : > { %4032 = vmatprep.subr.bf16.mxu0 %v7474_v2  ;;  %4376 = vmatprep.subr.bf16.mxu1 %v7477_v3  ;;  %v7555_v2 = vld [vmem:[#allocation10 + $0xe0] sm:$0xff]  }
 0x309   : > { %v7556_v3 = vld [vmem:[#allocation10 + $0x20] sm:$0xff]  }
 0x30b   : > { %4033 = vmatpush1.bf16.msra.mxu0 %v7472_v4  ;;  %4377 = vmatpush1.bf16.msra.mxu1 %v7475_v5  ;;  %v7557_v4 = vld [vmem:[#allocation10 + $0xa0] sm:$0xff]   ;;  %v7558_v5 = vld [vmem:[#allocation10 + $0x68] sm:$0xff]  }
 0x30c   : > { %4034 = vmatprep.subr.bf16.mxu0 %v7480_v6  ;;  %4378 = vmatprep.subr.bf16.mxu1 %v7483_v7  ;;  %v7559_v6 = vld [vmem:[#allocation10 + $0xe8] sm:$0xff]  }
 0x30d   : > { %v7560_v7 = vld [vmem:[#allocation10 + $0x28] sm:$0xff]  }
 0x30f   : > { %4035 = vmatpush1.bf16.msra.mxu0 %v7478_v8  ;;  %4379 = vmatpush1.bf16.msra.mxu1 %v7481_v9  ;;  %v7561_v8 = vld [vmem:[#allocation10 + $0xa8] sm:$0xff]   ;;  %v7562_v9 = vld [vmem:[#allocation10 + $0x70] sm:$0xff]  }
 0x310   : > { %4036 = vmatprep.subr.bf16.mxu0 %v7486_v10  ;;  %4380 = vmatprep.subr.bf16.mxu1 %v7489_v11  ;;  %v7563_v10 = vld [vmem:[#allocation10 + $0xf0] sm:$0xff]  }
 0x311   : > { %v7564_v11 = vld [vmem:[#allocation10 + $0x30] sm:$0xff]  }
 0x313   : > { %4037 = vmatpush1.bf16.msra.mxu0 %v7484_v12  ;;  %4381 = vmatpush1.bf16.msra.mxu1 %v7487_v13  ;;  %v7565_v12 = vld [vmem:[#allocation10 + $0xb0] sm:$0xff]   ;;  %v7566_v13 = vld [vmem:[#allocation10 + $0x78] sm:$0xff]  }
 0x314   : > { %4038 = vmatprep.subr.bf16.mxu0 %v7492_v14  ;;  %4382 = vmatprep.subr.bf16.mxu1 %v7495_v15  ;;  %v7567_v14 = vld [vmem:[#allocation10 + $0xf8] sm:$0xff]  }
 0x315   : > { %v7568_v15 = vld [vmem:[#allocation10 + $0x38] sm:$0xff]  }
 0x317   : > { %4039 = vmatpush1.bf16.msra.mxu0 %v7490_v16  ;;  %4383 = vmatpush1.bf16.msra.mxu1 %v7493_v17  ;;  %v7569_v16 = vld [vmem:[#allocation10 + $0xb8] sm:$0xff]   ;;  %v4438_v17 = vlaneseq }
 0x318   : > { %4040 = vmatprep.subr.bf16.mxu0 %v7498_v18  ;;  %4384 = vmatprep.subr.bf16.mxu1 %v7501_v19 }
 0x319   : > { %v8534_v18 = vshrl.u32 %v4438_v17, 7  ;;  %v7570_v17 = vld [vmem:[#allocation13] ss:$16 sps:$4 sm:$0xff]  }
 0x31b   : > { %4041 = vmatpush1.bf16.msra.mxu0 %v7496_v20  ;;  %4385 = vmatpush1.bf16.msra.mxu1 %v7499_v21  ;;  %v4440_v19 = vsub.s32 0, %v8534_v18  ;;  %v4448_v20 = vsub.s32 2, %v8534_v18  ;;  %v4436_v21 = vld [vmem:[#allocation9] sm:$0xf]  ;;  %vm4825_vm0 = vcmp.lt.s32.totalorder %v8534_v18, 7  ;;  %vm4841_vm1 = vcmp.eq.s32.totalorder %v8534_v18, 7 }
 0x31c   : > { %4042 = vmatprep.subr.bf16.mxu0 %v7504_v22  ;;  %4386 = vmatprep.subr.bf16.mxu1 %v7507_v23  ;;  %v4444_v22 = vsub.s32 1, %v8534_v18  ;;  %v4452_v23 = vsub.s32 3, %v8534_v18  ;;  %vm4820_vm2 = vcmp.lt.s32.totalorder %v8534_v18, 1  ;;  %vm4828_vm3 = vcmp.eq.s32.totalorder %v8534_v18, 0 }
 0x31f   : > { %4043 = vmatpush1.bf16.msra.mxu0 %v7502_v24  ;;  %4387 = vmatpush1.bf16.msra.mxu1 %v7505_v25  ;;  %v4441_v24 = vrot.slane %v4436_v21, %v4440_v19  ;;  %v4449_v25 = vrot.slane %v4436_v21, %v4448_v20 }
 0x320   : > { %4044 = vmatprep.subr.bf16.mxu0 %v7510_v26  ;;  %4388 = vmatprep.subr.bf16.mxu1 %v7513_v27  ;;  %v4445_v26 = vrot.slane %v4436_v21, %v4444_v22  ;;  %v4453_v27 = vrot.slane %v4436_v21, %v4452_v23  ;;  %v7572_v21 = vld [vmem:[#allocation13 + $0x4] ss:$16 sps:$4 sm:$0xff]  }
 0x323   : > { %4045 = vmatpush1.bf16.msra.mxu0 %v7508_v28  ;;  %4389 = vmatpush1.bf16.msra.mxu1 %v7511_v29 }
 0x324   : > { %4046 = vmatprep.subr.bf16.mxu0 %v7516_v30  ;;  %4390 = vmatprep.subr.bf16.mxu1 %v7519_v31 }
 0x327   : > { %4047 = vmatpush1.bf16.msra.mxu0 %v7514_v32  ;;  %4391 = vmatpush1.bf16.msra.mxu1 %v7517_v33 }
 0x328   : > { %4048 = vmatprep.subr.bf16.mxu0 %v7522_v34  ;;  %4392 = vmatprep.subr.bf16.mxu1 %v7525_v35 }
 0x32b   : > { %4049 = vmatpush1.bf16.msra.mxu0 %v7520_v36  ;;  %4393 = vmatpush1.bf16.msra.mxu1 %v7523_v37 }
 0x32c   : > { %4050 = vmatprep.subr.bf16.mxu0 %v7528_v38  ;;  %4394 = vmatprep.subr.bf16.mxu1 %v7531_v39 }
 0x32f   : > { %4051 = vmatpush1.bf16.msra.mxu0 %v7526_v40  ;;  %4395 = vmatpush1.bf16.msra.mxu1 %v7529_v41 }
 0x330   : > { %4052 = vmatprep.subr.bf16.mxu0 %v7534_v42  ;;  %4396 = vmatprep.subr.bf16.mxu1 %v7537_v43 }
 0x333   : > { %4053 = vmatpush1.bf16.msra.mxu0 %v7532_v44  ;;  %4397 = vmatpush1.bf16.msra.mxu1 %v7535_v45 }
 0x334   : > { %6471 = vmatprep.subr.bf16.mxu0 %v7538_v48  ;;  %6493 = vmatprep.subr.bf16.mxu1 %v7539_v49 }
 0x336   : > { %4055 = vmatmul.mubr.bf16.vlgmr.msra.gmra.mrb[0].mxu0 %v639_v50  ;;  %4399 = vmatmul.mubr.bf16.vlgmr.msra.gmra.mrb[0].mxu1 %v639_v50 }
 0x337   : > { %6472 = vmatpush3.bf16.msra.mxu0 %v7540_v51  ;;  %6494 = vmatpush3.bf16.msra.mxu1 %v7541_v52 }
 0x338   : > { %6473 = vmatprep.subr.bf16.mxu0 %v7542_v53  ;;  %6495 = vmatprep.subr.bf16.mxu1 %v7543_v54 }
 0x33b   : > { %6474 = vmatpush3.bf16.msra.mxu0 %v7544_v55  ;;  %6496 = vmatpush3.bf16.msra.mxu1 %v7545_v56 }
 0x33c   : > { %6475 = vmatprep.subr.bf16.mxu0 %v7546_v57  ;;  %6497 = vmatprep.subr.bf16.mxu1 %v7547_v58 }
 0x33f   : > { %6476 = vmatpush3.bf16.msra.mxu0 %v7548_v59  ;;  %6498 = vmatpush3.bf16.msra.mxu1 %v7549_v60 }
 0x340   : > { %6477 = vmatprep.subr.bf16.mxu0 %v7550_v61  ;;  %6499 = vmatprep.subr.bf16.mxu1 %v7551_v62 }
 0x343   : > { %6478 = vmatpush3.bf16.msra.mxu0 %v7552_v63  ;;  %6500 = vmatpush3.bf16.msra.mxu1 %v7553_v0 }
 0x344   : > { %6479 = vmatprep.subr.bf16.mxu0 %v7554_v1  ;;  %6501 = vmatprep.subr.bf16.mxu1 %v7555_v2 }
 0x347   : > { %6480 = vmatpush3.bf16.msra.mxu0 %v7556_v3  ;;  %6502 = vmatpush3.bf16.msra.mxu1 %v7557_v4 }
 0x348   : > { %6481 = vmatprep.subr.bf16.mxu0 %v7558_v5  ;;  %6503 = vmatprep.subr.bf16.mxu1 %v7559_v6 }
 0x34b   : > { %6482 = vmatpush3.bf16.msra.mxu0 %v7560_v7  ;;  %6504 = vmatpush3.bf16.msra.mxu1 %v7561_v8 }
 0x34c   : > { %6483 = vmatprep.subr.bf16.mxu0 %v7562_v9  ;;  %6505 = vmatprep.subr.bf16.mxu1 %v7563_v10 }
 0x34f   : > { %6484 = vmatpush3.bf16.msra.mxu0 %v7564_v11  ;;  %6506 = vmatpush3.bf16.msra.mxu1 %v7565_v12 }
 0x350   : > { %6485 = vmatprep.subr.bf16.mxu0 %v7566_v13  ;;  %6507 = vmatprep.subr.bf16.mxu1 %v7567_v14 }
 0x353   : > { %6486 = vmatpush3.bf16.msra.mxu0 %v7568_v15  ;;  %6508 = vmatpush3.bf16.msra.mxu1 %v7569_v16  ;;  %v8072_v16 = vmov 0  }
 0x354   : > { %6768 = vset.pattern.permute.xlu0 %v8072_v16  ;;  %6769 = vset.pattern.permute.xlu1 %v8072_v16 }
 0x355   : > { %5159 = vmatprep.subr.bf16.mxu0 %v7572_v21  ;;  %v7587_v21 = vld [vmem:[#allocation13 + $0x4c] ss:$16 sps:$4 sm:$0xff]  }
 0x409   : > { %v4056_v28 = vpop.f32.mrb[0].mxu0  ;;  %v4400_v29 = vpop.f32.mrb[0].mxu1 }
 0x40a   : > { %v4458_v30 = vadd.f32 %v4441_v24, %v4056_v28  ;;  %v4460_v31 = vadd.f32 %v4449_v25, %v4400_v29  ;;  %v4058_v32 = vpop.f32.mrb[1].mxu0  ;;  %v4402_v33 = vpop.f32.mrb[1].mxu1  ;;  %v7576_v28 = vld [vmem:[#allocation13 + $0x20] ss:$16 sps:$4 sm:$0xff]   ;;  %v7579_v29 = vld [vmem:[#allocation13 + $0x28] ss:$16 sps:$4 sm:$0xff]  }
 0x40b   : > { %v4459_v34 = vadd.f32 %v4445_v26, %v4058_v32  ;;  %v4461_v35 = vadd.f32 %v4453_v27, %v4402_v33  ;;  %v4060_v36 = vpop.f32.mrb[2].mxu0  ;;  %v4404_v37 = vpop.f32.mrb[2].mxu1 }
 0x40c   : > { %v4462_v38 = vadd.f32 %v4441_v24, %v4060_v36  ;;  %v4464_v39 = vadd.f32 %v4449_v25, %v4404_v37  ;;  %v4062_v40 = vpop.f32.mrb[3].mxu0  ;;  %v4406_v41 = vpop.f32.mrb[3].mxu1  ;;  %v4466_v44 = vmax.f32 %v4458_v30, 0.0  ;;  %v4468_v45 = vmax.f32 %v4460_v31, 0.0  ;;  %v7573_v24 = vld [vmem:[#allocation13 + $0x8] ss:$16 sps:$4 sm:$0xff]  }
 0x40d   : > { %v4463_v42 = vadd.f32 %v4445_v26, %v4062_v40  ;;  %v4465_v43 = vadd.f32 %v4453_v27, %v4406_v41  ;;  %v4467_v48 = vmax.f32 %v4459_v34, 0.0  ;;  %v4469_v49 = vmax.f32 %v4461_v35, 0.0  ;;  %v7575_v25 = vld [vmem:[#allocation13 + $0xc] ss:$16 sps:$4 sm:$0xff]   ;;  %v7578_v26 = vld [vmem:[#allocation13 + $0x24] ss:$16 sps:$4 sm:$0xff]  }
 0x40e   : > { %v4470_v46 = vmax.f32 %v4462_v38, 0.0  ;;  %v4472_v47 = vmax.f32 %v4464_v39, 0.0  ;;  %v7581_v27 = vld [vmem:[#allocation13 + $0x2c] ss:$16 sps:$4 sm:$0xff]   ;;  %5200 = vmatprep.subr.bf16.mxu1 %v7575_v25  ;;  %v6396_v34 = vld [vmem:[#allocation3] ss:$0 sm:$0xff] }
 0x40f   : > { %v4471_v50 = vmax.f32 %v4463_v42, 0.0  ;;  %v4473_v51 = vmax.f32 %v4465_v43, 0.0  ;;  %v7585_v25 = vld [vmem:[#allocation13 + $0x48] ss:$16 sps:$4 sm:$0xff]  }
 0x410   : > { %v4474_v52 = vpack.c.bf16 %v4470_v46, %v4466_v44  ;;  %v4476_v53 = vpack.c.bf16 %v4472_v47, %v4468_v45 }
 0x411   : > { %v4475_v54 = vpack.c.bf16 %v4471_v50, %v4467_v48  ;;  %v4477_v55 = vpack.c.bf16 %v4473_v51, %v4469_v49 }
 0x413   : > { %4766 = vmatprep.mubr.bf16.mxu0 %v4475_v54  ;;  %4807 = vmatprep.mubr.bf16.mxu1 %v4477_v55 }
 0x414   : > { %4767 = vmatmul.mubr.bf16.vlgmr.msra.gmra.mrb[4].mxu0 %v4474_v52  ;;  %4808 = vmatmul.mubr.bf16.vlgmr.msra.gmra.mrb[4].mxu1 %v4476_v53 }
 0x415   : > { %5191 = vmatprep.mubr.bf16.mxu0 %v8072_v16  ;;  %5232 = vmatprep.mubr.bf16.mxu1 %v8072_v16 }
 0x416   : > { %5160 = vmatpush1.bf16.msra.mxu0 %v7570_v17  ;;  %5201 = vmatpush1.bf16.msra.mxu1 %v7573_v24  ;;  %v7584_v17 = vld [vmem:[#allocation13 + $0x44] ss:$16 sps:$4 sm:$0xff]   ;;  %v7582_v24 = vld [vmem:[#allocation13 + $0x40] ss:$16 sps:$4 sm:$0xff]  }
 0x417   : > { %5161 = vmatprep.subr.bf16.mxu0 %v7578_v26  ;;  %5202 = vmatprep.subr.bf16.mxu1 %v7581_v27 }
 0x41a   : > { %5162 = vmatpush1.bf16.msra.mxu0 %v7576_v28  ;;  %5203 = vmatpush1.bf16.msra.mxu1 %v7579_v29  ;;  %v7590_v28 = vld [vmem:[#allocation13 + $0x64] ss:$16 sps:$4 sm:$0xff]   ;;  %v7593_v29 = vld [vmem:[#allocation13 + $0x6c] ss:$16 sps:$4 sm:$0xff]  }
 0x41b   : > { %5163 = vmatprep.subr.bf16.mxu0 %v7584_v17  ;;  %5204 = vmatprep.subr.bf16.mxu1 %v7587_v21  ;;  %v7626_v17 = vld [vmem:[#allocation15 + $0x50] sm:$0xff]  }
 0x41c   : > { %v7627_v21 = vld [vmem:[#allocation15 + $0xd0] sm:$0xff]  }
 0x41e   : > { %5164 = vmatpush1.bf16.msra.mxu0 %v7582_v24  ;;  %5205 = vmatpush1.bf16.msra.mxu1 %v7585_v25  ;;  %v7628_v24 = vld [vmem:[#allocation15 + $0x10] sm:$0xff]  }
 0x41f   : > { %5165 = vmatprep.subr.bf16.mxu0 %v7590_v28  ;;  %5206 = vmatprep.subr.bf16.mxu1 %v7593_v29  ;;  %v7629_v25 = vld [vmem:[#allocation15 + $0x90] sm:$0xff]   ;;  %v7632_v28 = vld [vmem:[#allocation15 + $0x18] sm:$0xff]  }
 0x420   : > { %v7633_v29 = vld [vmem:[#allocation15 + $0x98] sm:$0xff]  }
 0x4e7   : > { %v6487_v56 = vpop.f32.mrb[4].mxu0  ;;  %v6509_v57 = vpop.f32.mrb[4].mxu1 }
 0x4e8   : > { %v6488_v58 = vpop.f32.mrb[5].mxu0  ;;  %v6510_v59 = vpop.f32.mrb[5].mxu1 }
 0x4e9   : > { %v6489_v60 = vadd.f32 %v6488_v58, %v6487_v56  ;;  %v6511_v61 = vadd.f32 %v6510_v59, %v6509_v57  ;;  %v6490_v62 = vpop.f32.mrb[6].mxu0  ;;  %v6512_v63 = vpop.f32.mrb[6].mxu1 }
 0x4ea   : > { %v6491_v0 = vpop.f32.mrb[7].mxu0  ;;  %v6513_v1 = vpop.f32.mrb[7].mxu1 }
 0x4eb   : > { %v4810_v2 = vadd.f32 %v6511_v61, %v6489_v60  ;;  %v6492_v3 = vadd.f32 %v6491_v0, %v6490_v62  ;;  %v6514_v4 = vadd.f32 %v6513_v1, %v6512_v63 }
 0x4ed   : > { %v4813_v5 = vadd.f32 %v6514_v4, %v6492_v3  ;;  %4833 = vrot.lane.b32.xlu0 %v4810_v2, %s8070_s24  ;;  %v4823_v6 = vrot.slane %v4810_v2, 1  ;;  %v4816_v9 = vrot.slane %v4810_v2, 7 }
 0x4ef   : > { %v4824_v7 = vrot.slane %v4813_v5, 1  ;;  %v4817_v8 = vrot.slane %v4813_v5, 7 }
 0x4f1   : > { %4835 = vrot.lane.b32.xlu0 %v4813_v5, %s8070_s24  ;;  %v4826_v10 = vsel %vm4825_vm0, %v4823_v6, %v4824_v7  ;;  %v4827_v11 = vsel %vm4825_vm0, %v4824_v7, %v4823_v6  ;;  %v4822_v12 = vsel %vm4820_vm2, %v4817_v8, %v4816_v9  ;;  %v4821_v13 = vsel %vm4820_vm2, %v4816_v9, %v4817_v8 }
 0x4f2   : > { %v4842_v14 = vsel %vm4841_vm1, 0.0, %v4826_v10  ;;  %v4843_v15 = vsel %vm4841_vm1, 0.0, %v4827_v11  ;;  %v4829_v31 = vsel %vm4828_vm3, 0.0, %v4822_v12  ;;  %v4830_v37 = vsel %vm4828_vm3, 0.0, %v4821_v13 }
 0x4f3   : > { %4846 = vrot.lane.b32.xlu1 %v4842_v14, %s8071_s10 }
 0x4f7   : > { %4848 = vrot.lane.b32.xlu1 %v4843_v15, %s8071_s10 }
 0x55f   : > { %v4834_v30 = vpop.permute.xlu0 %4833 }
 0x560   : > { %v4839_v32 = vadd.f32 %v4834_v30, %v4829_v31  ;;  %v7588_v30 = vld [vmem:[#allocation13 + $0x60] ss:$16 sps:$4 sm:$0xff]   ;;  %v7591_v31 = vld [vmem:[#allocation13 + $0x68] ss:$16 sps:$4 sm:$0xff]  }
 0x561   : > { %5166 = vmatpush1.bf16.msra.mxu0 %v7588_v30  ;;  %5207 = vmatpush1.bf16.msra.mxu1 %v7591_v31  ;;  %v7634_v30 = vld [vmem:[#allocation15 + $0x60] sm:$0xff]  }
 0x562   : > { %v7635_v31 = vld [vmem:[#allocation15 + $0xe0] sm:$0xff]  }
 0x563   : > { %v4836_v33 = vpop.permute.xlu0 %4835 }
 0x564   : > { %v4840_v38 = vadd.f32 %v4836_v33, %v4830_v37  ;;  %v7599_v33 = vld [vmem:[#allocation13 + $0x8c] ss:$16 sps:$4 sm:$0xff]  }
 0x565   : > { %v4847_v35 = vpop.permute.xlu1 %4846  ;;  %5208 = vmatprep.subr.bf16.mxu1 %v7599_v33  ;;  %v7605_v37 = vld [vmem:[#allocation13 + $0xac] ss:$16 sps:$4 sm:$0xff]   ;;  %v7637_v33 = vld [vmem:[#allocation15 + $0xa0] sm:$0xff]  }
 0x566   : > { %v4852_v36 = vadd.f32 %v4847_v35, %v4839_v32  ;;  %v7596_v32 = vld [vmem:[#allocation13 + $0x84] ss:$16 sps:$4 sm:$0xff]   ;;  %v7597_v35 = vld [vmem:[#allocation13 + $0x88] ss:$16 sps:$4 sm:$0xff]  }
 0x567   : > { %5167 = vmatprep.subr.bf16.mxu0 %v7596_v32  ;;  %5209 = vmatpush1.bf16.msra.mxu1 %v7597_v35  ;;  %v7636_v32 = vld [vmem:[#allocation15 + $0x20] sm:$0xff]   ;;  %v7639_v35 = vld [vmem:[#allocation15 + $0xe8] sm:$0xff]  }
 0x568   : > { %v4861_v39 = vadd.f32 %v6396_v34, %v4852_v36  ;;  %v7602_v36 = vld [vmem:[#allocation13 + $0xa4] ss:$16 sps:$4 sm:$0xff]   ;;  %5210 = vmatprep.subr.bf16.mxu1 %v7605_v37  ;;  %v7641_v37 = vld [vmem:[#allocation15 + $0xa8] sm:$0xff]  }
 0x569   : > { %v4849_v40 = vpop.permute.xlu1 %4848 }
 0x56a   : > { %v4863_v41 = vmax.f32 %v4861_v39, 0.0  ;;  %v4853_v42 = vadd.f32 %v4849_v40, %v4840_v38  ;;  %v7600_v38 = vld [vmem:[#allocation13 + $0xa0] ss:$16 sps:$4 sm:$0xff]   ;;  %v7603_v39 = vld [vmem:[#allocation13 + $0xa8] ss:$16 sps:$4 sm:$0xff]  }
 0x56b   : > { %5211 = vmatpush1.bf16.msra.mxu1 %v7603_v39  ;;  %v7608_v40 = vld [vmem:[#allocation13 + $0xc4] ss:$16 sps:$4 sm:$0xff]  }
 0x56c   : > { %v4866_v43 = vsel %vm4865_vm4, %v4863_v41, -inf  ;;  %v4862_v44 = vadd.f32 %v6396_v34, %v4853_v42  ;;  %v7594_v34 = vld [vmem:[#allocation13 + $0x80] ss:$16 sps:$4 sm:$0xff]   ;;  %v7643_v39 = vld [vmem:[#allocation15 + $0xf0] sm:$0xff]  }
 0x56d   : > { %v4867_v45 = vrot.slane %v4866_v43, 4  ;;  %5168 = vmatpush1.bf16.msra.mxu0 %v7594_v34  ;;  %v7606_v42 = vld [vmem:[#allocation13 + $0xc0] ss:$16 sps:$4 sm:$0xff]  }
 0x56e   : > { %v4864_v46 = vmax.f32 %v4862_v44, 0.0  ;;  %5169 = vmatprep.subr.bf16.mxu0 %v7602_v36  ;;  %v7614_v44 = vld [vmem:[#allocation13 + $0xe4] ss:$16 sps:$4 sm:$0xff]   ;;  %v7638_v34 = vld [vmem:[#allocation15 + $0x68] sm:$0xff]  }
 0x56f   : > { %v4868_v47 = vmax.f32 %v4866_v43, %v4867_v45  ;;  %v7609_v43 = vld [vmem:[#allocation13 + $0xc8] ss:$16 sps:$4 sm:$0xff]   ;;  %v7617_v45 = vld [vmem:[#allocation13 + $0xec] ss:$16 sps:$4 sm:$0xff]  }
 0x570   : > { %v4873_v48 = vsel %vm4865_vm4, %v4864_v46, -inf  ;;  %v7640_v36 = vld [vmem:[#allocation15 + $0x28] sm:$0xff]  }
 0x571   : > { %v4869_v49 = vrot.slane %v4868_v47, 2  ;;  %v4874_v50 = vrot.slane %v4873_v48, 4  ;;  %5170 = vmatpush1.bf16.msra.mxu0 %v7600_v38  ;;  %v7642_v38 = vld [vmem:[#allocation15 + $0x70] sm:$0xff]  }
 0x572   : > { %5171 = vmatprep.subr.bf16.mxu0 %v7608_v40  ;;  %v7644_v40 = vld [vmem:[#allocation15 + $0x30] sm:$0xff]  }
 0x573   : > { %v4870_v51 = vmax.f32 %v4868_v47, %v4869_v49  ;;  %v4875_v52 = vmax.f32 %v4873_v48, %v4874_v50  ;;  %v7615_v47 = vld [vmem:[#allocation13 + $0xe8] ss:$16 sps:$4 sm:$0xff]   ;;  %v4904_v50 = vld [vmem:[%s8484_s22] sm:$0xff] }
 0x574   : > { %v7618_v48 = vld [vmem:[#allocation15 + $0x40] sm:$0xff]  }
 0x575   : > { %v4871_v53 = vrot.slane %v4870_v51, 1  ;;  %v4876_v54 = vrot.slane %v4875_v52, 2  ;;  %5172 = vmatpush1.bf16.msra.mxu0 %v7606_v42  ;;  %v7619_v49 = vld [vmem:[#allocation15 + $0xc0] sm:$0xff]   ;;  %v7646_v42 = vld [vmem:[#allocation15 + $0x78] sm:$0xff]  }
 0x576   : > { %5173 = vmatprep.subr.bf16.mxu0 %v7614_v44  ;;  %v7648_v44 = vld [vmem:[#allocation15 + $0x38] sm:$0xff]  }
 0x577   : > { %v4872_v55 = vmax.f32 %v4870_v51, %v4871_v53  ;;  %v4877_v56 = vmax.f32 %v4875_v52, %v4876_v54  ;;  %v4905_v53 = vld [vmem:[%s8484_s22 + $0x8] sm:$0xff] }
 0x579   : > { %v4880_v57 = vsub.f32 %v4863_v41, %v4872_v55  ;;  %v4878_v58 = vrot.slane %v4877_v56, 1  ;;  %v7611_v41 = vld [vmem:[#allocation13 + $0xcc] ss:$16 sps:$4 sm:$0xff]  }
 0x57a   : > { %5212 = vmatprep.subr.bf16.mxu1 %v7611_v41  ;;  %v7645_v41 = vld [vmem:[#allocation15 + $0xb0] sm:$0xff]  }
 0x57b   : > { %v4882_v59 = vmul.f32 1.442695, %v4880_v57  ;;  %v4879_v60 = vmax.f32 %v4877_v56, %v4878_v58  ;;  %5213 = vmatpush1.bf16.msra.mxu1 %v7609_v43  ;;  %v7647_v43 = vld [vmem:[#allocation15 + $0xf8] sm:$0xff]  }
 0x57c   : > { %5214 = vmatprep.subr.bf16.mxu1 %v7617_v45  ;;  %v7649_v45 = vld [vmem:[#allocation15 + $0xb8] sm:$0xff]  }
 0x57d   : > { %7650 = vpow2.f32 %v4882_v59  ;;  %v4881_v61 = vsub.f32 %v4864_v46, %v4879_v60  ;;  %v7612_v46 = vld [vmem:[#allocation13 + $0xe0] ss:$16 sps:$4 sm:$0xff]  }
 0x57e   : > { %5174 = vmatpush1.bf16.msra.mxu0 %v7612_v46  ;;  %v4970_v46 = vld [vmem:[#allocation14] sm:$0xf] }
 0x57f   : > { %v4884_v62 = vmul.f32 1.442695, %v4881_v61  ;;  %5215 = vmatpush1.bf16.msra.mxu1 %v7615_v47  ;;  %6515 = vmatprep.subr.bf16.mxu0 %v7618_v48  ;;  %v4975_v47 = vrot.slane %v4970_v46, %v4440_v19  ;;  %v4983_v48 = vrot.slane %v4970_v46, %v4448_v20 }
 0x580   : > { %6537 = vmatprep.subr.bf16.mxu1 %v7619_v49  ;;  %v4979_v49 = vrot.slane %v4970_v46, %v4444_v22 }
 0x581   : > { %7652 = vpow2.f32 %v4884_v62 }
 0x587   : > { %v7651_v63 = vpop.eup %7650 }
 0x588   : > { %v4886_v0 = vsel %vm4865_vm4, %v7651_v63, 0.0 }
 0x589   : > { %v4887_v1 = vrot.slane %v4886_v0, 4 }
 0x58b   : > { %v7653_v2 = vpop.eup %7652  ;;  %v4888_v3 = vadd.f32 %v4887_v1, %v4886_v0 }
 0x58c   : > { %v4893_v4 = vsel %vm4865_vm4, %v7653_v2, 0.0 }
 0x58d   : > { %v4889_v5 = vrot.slane %v4888_v3, 2  ;;  %v4894_v6 = vrot.slane %v4893_v4, 4 }
 0x58f   : > { %v4890_v7 = vadd.f32 %v4889_v5, %v4888_v3  ;;  %v4895_v8 = vadd.f32 %v4894_v6, %v4893_v4 }
 0x591   : > { %v4891_v9 = vrot.slane %v4890_v7, 1  ;;  %v4896_v10 = vrot.slane %v4895_v8, 2 }
 0x593   : > { %v4892_v11 = vadd.f32 %v4891_v9, %v4890_v7  ;;  %v4897_v12 = vadd.f32 %v4896_v10, %v4895_v8  ;;  %v7620_v10 = vld [vmem:[#allocation15] sm:$0xff]  }
 0x595   : > { %7654 = vrcp.f32 %v4892_v11  ;;  %v4898_v13 = vrot.slane %v4897_v12, 1  ;;  %v7621_v11 = vld [vmem:[#allocation15 + $0x80] sm:$0xff]  }
 0x597   : > { %v4899_v14 = vadd.f32 %v4898_v13, %v4897_v12  ;;  %v7622_v13 = vld [vmem:[#allocation15 + $0x48] sm:$0xff]  }
 0x599   : > { %7656 = vrcp.f32 %v4899_v14  ;;  %v7623_v14 = vld [vmem:[#allocation15 + $0xc8] sm:$0xff]  }
 0x59f   : > { %v7655_v15 = vpop.eup %7654 }
 0x5a0   : > { %v4901_v16 = vmul.f32 %v7655_v15, %v7651_v63  ;;  %v7624_v15 = vld [vmem:[#allocation15 + $0x8] sm:$0xff]  }
 0x5a2   : > { %4908 = vperm.xlu0 %6768, %v4901_v16   ;;  %v7625_v16 = vld [vmem:[#allocation15 + $0x88] sm:$0xff]  }
 0x5a3   : > { %v7657_v26 = vpop.eup %7656 }
 0x5a4   : > { %v4903_v27 = vmul.f32 %v7657_v26, %v7653_v2  ;;  %v7630_v26 = vld [vmem:[#allocation15 + $0x58] sm:$0xff]  }
 0x5a6   : > { %4913 = vperm.xlu1 %6769, %v4903_v27   ;;  %v7631_v27 = vld [vmem:[#allocation15 + $0xd8] sm:$0xff]  }
 0x621   : > { %v4909_v51 = vpop.permute.xlu0 %4908 }
 0x622   : > { %v4916_v52 = vmul.f32 %v4909_v51, %v4904_v50  ;;  %v4987_v50 = vrot.slane %v4970_v46, %v4452_v23 }
 0x624   : > { %v4918_v54 = vrot.slane %v4916_v52, 4 }
 0x625   : > { %v4914_v55 = vpop.permute.xlu1 %4913 }
 0x626   : > { %v4919_v56 = vadd.f32 %v4918_v54, %v4916_v52  ;;  %v4917_v57 = vmul.f32 %v4914_v55, %v4905_v53 }
 0x628   : > { %v4920_v58 = vrot.slane %v4919_v56, 2  ;;  %v4924_v59 = vrot.slane %v4917_v57, 4 }
 0x62a   : > { %v4921_v60 = vadd.f32 %v4920_v58, %v4919_v56  ;;  %v4925_v61 = vadd.f32 %v4924_v59, %v4917_v57 }
 0x62c   : > { %v4922_v62 = vrot.slane %v4921_v60, 1  ;;  %v4926_v63 = vrot.slane %v4925_v61, 2 }
 0x62e   : > { %v4923_v0 = vadd.f32 %v4922_v62, %v4921_v60  ;;  %v4927_v1 = vadd.f32 %v4926_v63, %v4925_v61 }
 0x630   : > { %v4928_v2 = vrot.slane %v4927_v1, 1  ;;  %v4936_v3 = vpack.c.bf16 %v4923_v0, %v4923_v0 }
 0x632   : > { %v4929_v4 = vadd.f32 %v4928_v2, %v4927_v1  ;;  %v4994_v7 = vunpack.c.l.b16 %v4936_v3 }
 0x634   : > { %v4937_v5 = vpack.c.bf16 %v4929_v4, %v4929_v4  ;;  %v4933_v6 = vsel %vm4932_vm5, %v4929_v4, %v4923_v0 }
 0x635   : > { %4935 = vst [vmem:[%s8561_s26] sm:$0x3] %v4933_v6 }
 0x636   : > { %v4995_v8 = vunpack.c.l.b16 %v4937_v5 }
 0x638   : > { %v4996_v9 = vsel %vm4932_vm5, %v4995_v8, %v4994_v7 }
 0x639   : > { %v4997_v12 = vpack.c.b16 %v4996_v9, %v4996_v9 }
 0x63b   : > { %5192 = vmatmul.mubr.bf16.vlgmr.msra.gmra.mrb[8].mxu0 %v4997_v12  ;;  %5233 = vmatmul.mubr.bf16.vlgmr.msra.gmra.mrb[8].mxu1 %v4997_v12 }
 0x63c   : > { %6516 = vmatpush3.bf16.msra.mxu0 %v7620_v10  ;;  %6538 = vmatpush3.bf16.msra.mxu1 %v7621_v11 }
 0x63d   : > { %6517 = vmatprep.subr.bf16.mxu0 %v7622_v13  ;;  %6539 = vmatprep.subr.bf16.mxu1 %v7623_v14 }
 0x640   : > { %6518 = vmatpush3.bf16.msra.mxu0 %v7624_v15  ;;  %6540 = vmatpush3.bf16.msra.mxu1 %v7625_v16 }
 0x641   : > { %6519 = vmatprep.subr.bf16.mxu0 %v7626_v17  ;;  %6541 = vmatprep.subr.bf16.mxu1 %v7627_v21 }
 0x644   : > { %6520 = vmatpush3.bf16.msra.mxu0 %v7628_v24  ;;  %6542 = vmatpush3.bf16.msra.mxu1 %v7629_v25 }
 0x645   : > { %6521 = vmatprep.subr.bf16.mxu0 %v7630_v26  ;;  %6543 = vmatprep.subr.bf16.mxu1 %v7631_v27 }
 0x648   : > { %6522 = vmatpush3.bf16.msra.mxu0 %v7632_v28  ;;  %6544 = vmatpush3.bf16.msra.mxu1 %v7633_v29 }
 0x649   : > { %6523 = vmatprep.subr.bf16.mxu0 %v7634_v30  ;;  %6545 = vmatprep.subr.bf16.mxu1 %v7635_v31 }
 0x64c   : > { %6524 = vmatpush3.bf16.msra.mxu0 %v7636_v32  ;;  %6546 = vmatpush3.bf16.msra.mxu1 %v7637_v33 }
 0x64d   : > { %6525 = vmatprep.subr.bf16.mxu0 %v7638_v34  ;;  %6547 = vmatprep.subr.bf16.mxu1 %v7639_v35 }
 0x650   : > { %6526 = vmatpush3.bf16.msra.mxu0 %v7640_v36  ;;  %6548 = vmatpush3.bf16.msra.mxu1 %v7641_v37 }
 0x651   : > { %6527 = vmatprep.subr.bf16.mxu0 %v7642_v38  ;;  %6549 = vmatprep.subr.bf16.mxu1 %v7643_v39 }
 0x654   : > { %6528 = vmatpush3.bf16.msra.mxu0 %v7644_v40  ;;  %6550 = vmatpush3.bf16.msra.mxu1 %v7645_v41 }
 0x655   : > { %6529 = vmatprep.subr.bf16.mxu0 %v7646_v42  ;;  %6551 = vmatprep.subr.bf16.mxu1 %v7647_v43 }
 0x658   : > { %6530 = vmatpush3.bf16.msra.mxu0 %v7648_v44  ;;  %6552 = vmatpush3.bf16.msra.mxu1 %v7649_v45 }
 0x70e   : > { %v5193_v51 = vpop.f32.mrb[8].mxu0  ;;  %v5234_v52 = vpop.f32.mrb[8].mxu1 }
 0x70f   : > { %v5194_v53 = vadd.f32 %v5193_v51, %v4975_v47  ;;  %v5235_v54 = vadd.f32 %v5234_v52, %v4983_v48  ;;  %v5195_v55 = vpop.f32.mrb[9].mxu0  ;;  %v5236_v56 = vpop.f32.mrb[9].mxu1 }
 0x710   : > { %v5196_v57 = vadd.f32 %v5195_v55, %v4979_v49  ;;  %v5237_v19 = vadd.f32 %v5236_v56, %v4987_v50  ;;  %v5197_v58 = vpop.f32.mrb[10].mxu0  ;;  %v5238_v20 = vpop.f32.mrb[10].mxu1 }
 0x711   : > { %v5198_v59 = vpop.f32.mrb[11].mxu0  ;;  %v5239_v60 = vpop.f32.mrb[11].mxu1  ;;  %v5241_v23 = vpack.c.bf16 %v5194_v53, %v5194_v53  ;;  %v5243_v61 = vpack.c.bf16 %v5235_v54, %v5235_v54 }
 0x712   : > { %v5242_v22 = vpack.c.bf16 %v5196_v57, %v5196_v57  ;;  %v5244_v18 = vpack.c.bf16 %v5237_v19, %v5237_v19 }
 0x714   : > { %5540 = vmatprep.mubr.bf16.mxu0 %v5242_v22  ;;  %5580 = vmatprep.mubr.bf16.mxu1 %v5244_v18 }
 0x715   : > { %5541 = vmatmul.mubr.bf16.vlgmr.msra.gmra.mrb[12].mxu0 %v5241_v23  ;;  %5581 = vmatmul.mubr.bf16.vlgmr.msra.gmra.mrb[12].mxu1 %v5243_v61 }
 0x716   : > { %7927 = shalt.err (!%p7924_p0)
}
 0x717   : > { %s7928_s16 = scalar_lea.hbm %s8578_s27, 32  ;;  %s7932_s2 = scalar_lea.hbm %s8735_s18, 64 }
 0x718   : > { %p7929_p12 = scmp.ne.s32.totalorder %s8578_s27, %s7928_s16  ;;  %p7933_p8 = scmp.lt.u32.totalorder %s8578_s27, %s8735_s18 }
 0x719   : > { %p7934_p3 = scmp.lt.u32.totalorder %s7932_s2, %s7928_s16  ;;  %p7936_p6 = scmp.lt.u32.totalorder %s7928_s16, %s8578_s27 }
 0x71a   : > { %p7930_p4 = pnand %p7929_p12, %p8736_p10 }
 0x71b   : > { %p7935_p7 = por %p7934_p3, %p7933_p8 }
 0x71c   : > { %p7931_p5 = pneg %p7930_p4 }
 0x71d   : > { %p7937_p9 = por %p7936_p6, %p7935_p7 }
 0x71f   : > { %p7938_p2 = pnand %p7937_p9, %p7931_p5 }
 0x721   : > { %7941 = shalt.err (!%p7938_p2)
}
 0x722   : > { %6647 = dma.vmem_to_hbm [thread:$0]  (%p8736_p10), %s5609_s14, 32, %s8578_s27, %s5590_s8   ;;  %v6429_v0 = vld [vmem:[#allocation17] ss:$0 sm:$0xff] }
 0x723   : > { %s575_s10 = scalar_lea.vmem [#allocation19], %s5850_s15  ;;  %s8737_s27 = sld [smem:[#allocation42_spill]] }
 0x724   : > { %s5621_s26 = sshll.u32 %s575_s10, 4  ;;  %s5595_s8 = scalar_lea.sflag [#allocation20], %s8466_s3  ;;  %s8608_s26 = int_to_ptr.vmem [resolvable:$true] %s5621_s26 }
 0x725   : > { %s7942_s29 = scalar_lea.vmem %s8608_s26, 32  ;;  %s8074_s15 = smov [#allocation19]  }
 0x726   : > { %p7943_p13 = scmp.ne.s32.totalorder %s8608_s26, %s7942_s29  ;;  %s7946_s1 = sshll.u32 %s8074_s15, 4  ;;  %s7947_s1 = int_to_ptr.vmem [resolvable:$false] %s7946_s1 }
 0x727   : > { %s7948_s4 = scalar_lea.vmem %s7947_s1, 64  ;;  %p7949_p0 = scmp.lt.s32.totalorder %s8608_s26, %s7947_s1 }
 0x728   : > { %p7944_p1 = pnand %p7943_p13, %p8736_p10  ;;  %p7950_p12 = scmp.lt.s32.totalorder %s7948_s4, %s7942_s29 }
 0x729   : > { %s8606_s14 = scalar_lea.hbm %s8737_s27, %s6464_s11 }
 0x72a   : > { %p7945_p11 = pneg %p7944_p1  ;;  %p7951_p4 = por %p7950_p12, %p7949_p0 }
 0x72c   : > { %p7952_p5 = pnand %p7951_p4, %p7945_p11 }
 0x7e8   : > { %v6531_v62 = vpop.f32.mrb[12].mxu0  ;;  %v6553_v63 = vpop.f32.mrb[12].mxu1 }
 0x7e9   : > { %v6532_v1 = vpop.f32.mrb[13].mxu0  ;;  %v6554_v2 = vpop.f32.mrb[13].mxu1 }
 0x7ea   : > { %v6533_v3 = vadd.f32 %v6532_v1, %v6531_v62  ;;  %v6555_v4 = vadd.f32 %v6554_v2, %v6553_v63  ;;  %v6534_v5 = vpop.f32.mrb[14].mxu0  ;;  %v6556_v6 = vpop.f32.mrb[14].mxu1 }
 0x7eb   : > { %v6535_v7 = vpop.f32.mrb[15].mxu0  ;;  %v6557_v8 = vpop.f32.mrb[15].mxu1 }
 0x7ec   : > { %v5543_v9 = vadd.f32 %v6533_v3, %v6429_v0 }
 0x7ee   : > { %v5583_v10 = vadd.f32 %v6555_v4, %v5543_v9 }
 0x7f0   : > { %5588 = vst [vmem:[%s575_s10] sm:$0x3] %v5583_v10 }
 0x7f1   : > { %7955 = shalt.err (!%p7952_p5)
}
 0x7f2   : > { %s7956_s3 = scalar_lea.hbm %s8606_s14, 32  ;;  %s7960_s13 = scalar_lea.hbm %s8737_s27, 64 }
 0x7f3   : > { %p7957_p8 = scmp.ne.s32.totalorder %s8606_s14, %s7956_s3  ;;  %p7961_p6 = scmp.lt.u32.totalorder %s8606_s14, %s8737_s27 }
 0x7f4   : > { %p7962_p9 = scmp.lt.u32.totalorder %s7960_s13, %s7956_s3  ;;  %p7964_p13 = scmp.lt.u32.totalorder %s7956_s3, %s8606_s14 }
 0x7f5   : > { %p7958_p3 = pnand %p7957_p8, %p8736_p10 }
 0x7f6   : > { %p7963_p2 = por %p7962_p9, %p7961_p6 }
 0x7f7   : > { %p7959_p7 = pneg %p7958_p3 }
 0x7f8   : > { %p7965_p1 = por %p7964_p13, %p7963_p2 }
 0x7fa   : > { %p7966_p11 = pnand %p7965_p1, %p7959_p7 }
 0x7fc   : > { %7969 = shalt.err (!%p7966_p11)
}
 0x7fd   : > { %6648 = dma.vmem_to_hbm [thread:$0]  (%p8736_p10), %s8608_s26, 32, %s8606_s14, %s5595_s8  }
 0x7fe PF: > { %s8738_s28 = sld [smem:[#allocation32_spill]]  ;;  %s5633_s2 = sand.u32 1, %s8032_s19  }
 0x7ff   : > { %p8739_p0 = scmp.ne.s32.totalorder %s8711_s12, 0  ;;  %s5634_s22 = scalar_lea.sflag [#allocation6], %s5633_s2 }
 0x804   : > { %p8740_p12 = scmp.ge.s32.totalorder %s8738_s28, 2 }
 0x806   : > { %p6681_p4 = pnand %p8740_p12, %p8739_p0 }
 0x808   : > { %8023 = dma.done.wait (!%p6681_p4), %s5634_s22, 32  }
 0x809   : > { %8025 = vsyncadd (!%p6681_p4), %s5634_s22, 4294967264  ;;  %s5643_s24 = scalar_lea.sflag [#allocation20], %s5633_s2 }
 0x80a   : > { %8027 = dma.done.wait (!%p6681_p4), %s5643_s24, 32  }
 0x80b   : > { %8029 = vsyncadd (!%p6681_p4), %s5643_s24, 4294967264  ;;  %s36_s4 = sadd.s32 1, %s8738_s28   ;;  %s8741_s17 = sld [smem:[#allocation30_spill]] }
 0x80c   : > { %p33_p5 = scmp.ge.s32.totalorder %s36_s4, 4   ;;  %s8742_s21 = sld [smem:[#allocation35_spill]] }
 0x80d   : > { %s8743_s10 = sld [smem:[#allocation34_spill]]  ;;  %s8744_s19 = smov %s8036_s20 }
 0x80e   : > { %s8746_s22 = smov %s8048_s23  ;;  %35 = sbr.rel (!%p33_p5) target bundleno = 19 (0x13), region = 170 }
 0x811   : > { %s8745_s20 = smov %s8741_s17 }
 0x813   : > { %s8747_s23 = smov %s8743_s10 }
 0x815   :  { %5648 = vsyncpa [#allocation5], 1 }
 0x816   :  { %5650 = vsyncpa [#allocation5 + $0x1], 1 }
 0x817   :  { %5651 = vsyncpa [#allocation8], 1 }
 0x818   :  { %5652 = vsyncpa [#allocation11], 1 }
 0x819   :  { %5653 = vsyncpa [#allocation16], 1 }
 0x81a   :  { %5654 = vsyncpa [#allocation6], 1 }
 0x81b   :  { %5656 = vsyncpa [#allocation6 + $0x1], 1 }
 0x81c   :  { %5657 = vsyncpa [#allocation20], 1 }
 0x81d   :  { %5659 = vsyncpa [#allocation20 + $0x1], 1 }

</bundles_post_ra>
